<compile_context>
chip_gen: v6e
topology: v6e:2x2x1
jax: 0.10.0
libtpu: 0.0.40
codegen_flags: <defaults>
</compile_context>

<pallas_src>
import jax
import jax.numpy as jnp
from jax.experimental import pallas as pl
from jax.experimental.pallas import tpu as pltpu


def _round_up(x, m):
    return ((x + m - 1) // m) * m


# -----------------------------------------------------------------------------
# Per-generation sizing (v4/v5e/v6e: 128 MiB VMEM; v7x: 64 MiB, 2 TCs).
# -----------------------------------------------------------------------------
def _tpu_generation():
    try:
        kind = jax.devices()[0].device_kind.lower()
    except Exception:
        return 0
    for g in (7, 6, 5, 4, 3, 2):
        if ("v%d" % g) in kind:
            return g
    return 0


_GEN = _tpu_generation()
_BIG_VMEM = _GEN in (4, 5, 6)          # 128 MiB physical VMEM generations
_DEF_TILE_N = 512 if _BIG_VMEM else 256
_DEF_TILE_V = 1024 if _BIG_VMEM else 512
_DEF_T_CHUNK = 32 if _BIG_VMEM else 16


def _vmem_limit_bytes():
    if _BIG_VMEM:
        return 96 * 1024 * 1024        # leave headroom below 128 MiB physical
    if _GEN >= 7:
        return 48 * 1024 * 1024        # v7x: 64 MiB physical per TC
    return None                        # unknown generation: compiler default


# -----------------------------------------------------------------------------
# Tiled linear kernel:  out[N, V] = x[N, K] @ w[K, V] + b[1, V]   (f32 accum)
# Used for the vocab projection. V-tiles are the OUTER grid axis so the big
# (K, tv) weight block stays VMEM-resident across every inner row tile.
# -----------------------------------------------------------------------------
def _linear_kernel(x_ref, w_ref, b_ref, o_ref):
    x = x_ref[...].astype(w_ref.dtype)           # cast activations to weight dtype
    acc = jnp.dot(x, w_ref[...], preferred_element_type=jnp.float32)
    o_ref[...] = acc + b_ref[...]                # bias kept/accumulated in f32


def linear_pallas(x2d, w, b, *, tile_n=None, tile_v=None):
    """x2d: (N, K); w: (K, V); b: (1, V) f32. Returns (N, V) f32."""
    N, K = x2d.shape
    V = w.shape[1]
    tile_n = tile_n or _DEF_TILE_N               # multiple of 8
    tile_v = tile_v or _DEF_TILE_V               # multiple of 128
    tn = N if N <= tile_n else tile_n
    tv = V if V <= tile_v else tile_v
    grid = (pl.cdiv(V, tv), pl.cdiv(N, tn))      # weight tile outer-resident
    return pl.pallas_call(
        _linear_kernel,
        out_shape=jax.ShapeDtypeStruct((N, V), jnp.float32),
        grid_spec=pltpu.PrefetchScalarGridSpec(
            num_scalar_prefetch=0,
            grid=grid,
            in_specs=[
                pl.BlockSpec((tn, K), lambda j, i: (i, 0)),   # activations (re-fetched)
                pl.BlockSpec((K, tv), lambda j, i: (0, j)),   # weight (resident over i)
                pl.BlockSpec((1, tv), lambda j, i: (0, j)),
            ],
            out_specs=pl.BlockSpec((tn, tv), lambda j, i: (i, j)),
        ),
        compiler_params=pltpu.CompilerParams(
            dimension_semantics=("parallel", "parallel"),
            vmem_limit_bytes=_vmem_limit_bytes(),
        ),
    )(x2d, w, b)


# -----------------------------------------------------------------------------
# Fused LSTM kernel: per chunk, one (tc*tb, E) x (E, 4Hp) input-projection
# matmul (staged in VMEM scratch), then the recurrence with per-step h @ W_hh.
# Grid = (batch tiles [parallel], time chunks [arbitrary]); h/c state lives in
# VMEM scratch and is reset at the start of each batch tile.
# Output is written batch-major: (tb, tc, Hp).
# -----------------------------------------------------------------------------
def _lstm_kernel(x_ref, w_ih_ref, b_ref, w_hh_ref, out_ref, gx_sc, h_sc, c_sc):
    @pl.when(pl.program_id(1) == 0)              # new batch tile -> reset state
    def _():
        h_sc[...] = jnp.zeros_like(h_sc)
        c_sc[...] = jnp.zeros_like(c_sc)

    tc, tb, E = x_ref.shape
    Hp = h_sc.shape[1]

    # Fused input projection for the whole chunk (one MXU-friendly matmul).
    x = x_ref[...].reshape(tc * tb, E).astype(w_ih_ref.dtype)
    gx = jnp.dot(x, w_ih_ref[...], preferred_element_type=jnp.float32) + b_ref[...]
    gx_sc[...] = gx.reshape(tc, tb, 4 * Hp)      # stage in VMEM (not vregs)

    w_hh = w_hh_ref[...]                         # hoisted out of the time loop
    h = h_sc[...]
    c = c_sc[...]
    # Static unroll: every gx read and every output store uses static indices.
    for t in range(tc):
        gates = gx_sc[t] + jnp.dot(h.astype(w_hh.dtype), w_hh,
                                   preferred_element_type=jnp.float32)
        # PyTorch gate order (i, f, g, o); each gate is a lane-aligned Hp slab.
        i_g = jax.nn.sigmoid(gates[:, 0 * Hp:1 * Hp])
        f_g = jax.nn.sigmoid(gates[:, 1 * Hp:2 * Hp])
        g_g = jnp.tanh(gates[:, 2 * Hp:3 * Hp])
        o_g = jax.nn.sigmoid(gates[:, 3 * Hp:4 * Hp])
        c = f_g * c + i_g * g_g
        h = o_g * jnp.tanh(c)
        out_ref[:, t, :] = h                     # batch-major, lane-dense store
    h_sc[...] = h
    c_sc[...] = c


def _build_lstm_call(T_pad, Bp, E, G, Hp, tc, tb, *, single_buffer):
    inv = dict(pipeline_mode=pl.Buffered(1)) if single_buffer else {}
    return pl.pallas_call(
        _lstm_kernel,
        out_shape=jax.ShapeDtypeStruct((Bp, T_pad, Hp), jnp.float32),
        grid_spec=pltpu.PrefetchScalarGridSpec(
            num_scalar_prefetch=0,
            grid=(Bp // tb, T_pad // tc),
            in_specs=[
                pl.BlockSpec((tc, tb, E), lambda bi, ti: (ti, bi, 0)),
                pl.BlockSpec((E, G), lambda bi, ti: (0, 0), **inv),   # invariant
                pl.BlockSpec((1, G), lambda bi, ti: (0, 0), **inv),   # invariant
                pl.BlockSpec((Hp, G), lambda bi, ti: (0, 0), **inv),  # invariant
            ],
            out_specs=pl.BlockSpec((tb, tc, Hp), lambda bi, ti: (bi, ti, 0)),
            scratch_shapes=[
                pltpu.VMEM((tc, tb, G), jnp.float32),  # per-chunk x @ W_ih + b
                pltpu.VMEM((tb, Hp), jnp.float32),     # h state
                pltpu.VMEM((tb, Hp), jnp.float32),     # c state
            ],
        ),
        compiler_params=pltpu.CompilerParams(
            dimension_semantics=("parallel", "arbitrary"),
            vmem_limit_bytes=_vmem_limit_bytes(),
        ),
    )


def lstm_fused_pallas(x_tm, w_ih, b, w_hh, *, t_chunk=None, batch_tile=128):
    """x_tm: (T, B, E) f32 time-major. Returns batch-major (Bp, T_pad, Hp) f32."""
    T, B, E = x_tm.shape
    G = w_ih.shape[1]
    Hp = G // 4
    t_chunk = t_chunk or _DEF_T_CHUNK

    # Batch: pad to >= 8 rows (sublane-aligned recurrent matmul / stores) and a
    # whole number of batch tiles; padded rows evolve independently and are
    # dropped by the caller.
    Bp = _round_up(max(B, 8), 8)
    tb = Bp if Bp <= batch_tile else batch_tile
    Bp = _round_up(Bp, tb)

    # Time chunking: multiple of 8 (or the full sequence).
    if T <= t_chunk:
        tc, T_pad = T, T
    else:
        tc = max(8, (t_chunk // 8) * 8)
        T_pad = _round_up(T, tc)

    # Re-derive the chunk size against the per-generation VMEM budget.
    budget = _vmem_limit_bytes() or 32 * 1024 * 1024
    w_isz = w_ih.dtype.itemsize

    def vmem_need(tc_):
        return (2 * tc_ * tb * E * 4          # x block (double-buffered)
                + 2 * tb * tc_ * Hp * 4       # out block (double-buffered)
                + 2 * E * G * w_isz           # w_ih (<= 2 buffers)
                + 2 * Hp * G * w_isz          # w_hh (<= 2 buffers)
                + 2 * G * 4                   # bias
                + tc_ * tb * G * 4            # gx scratch
                + 2 * tb * Hp * 4)            # h, c state

    while tc > 8 and vmem_need(tc) > 0.9 * budget:
        tc = max(8, (tc // 2 // 8) * 8)
        T_pad = _round_up(T, tc)

    if (T_pad != T) or (Bp != B):
        # Zero-padded steps/rows are harmless; caller slices them away.
        x_tm = jnp.pad(x_tm, ((0, T_pad - T), (0, Bp - B), (0, 0)))

    try:
        out = _build_lstm_call(T_pad, Bp, E, G, Hp, tc, tb,
                               single_buffer=True)(x_tm, w_ih, b, w_hh)
    except Exception:
        # pl.Buffered(1) on the invariant weights not supported here -> default.
        out = _build_lstm_call(T_pad, Bp, E, G, Hp, tc, tb,
                               single_buffer=False)(x_tm, w_ih, b, w_hh)
    return out


# -----------------------------------------------------------------------------
# Parameter packing: gate-pad to lane-aligned Hp, pad w_lin rows to Hp, and
# (optionally) cast weights to bfloat16.  Biases stay f32; padded gate columns
# are zero so the recurrence keeps padded h/c columns exactly zero.
# -----------------------------------------------------------------------------
def pack_params(params, compute_dtype=jnp.float32):
    E = params["w_ih"].shape[0]
    H = params["w_hh"].shape[0]
    Hp = _round_up(H, 128)

    def pad_gates(w, rows):
        w4 = w.reshape(rows, 4, H)
        w4 = jnp.pad(w4, ((0, 0), (0, 0), (0, Hp - H)))
        return w4.reshape(rows, 4 * Hp)

    w_ih_p = pad_gates(params["w_ih"], E)                                   # (E, 4Hp)
    w_hh_p = jnp.pad(pad_gates(params["w_hh"], H), ((0, Hp - H), (0, 0)))   # (Hp, 4Hp)
    b_p = pad_gates(params["b_lstm"], 1)                                    # (1, 4Hp)
    w_lin_p = jnp.pad(params["w_lin"], ((0, Hp - H), (0, 0)))               # (Hp, V) zero rows

    return {
        "embed": params["embed"],
        "w_ih": w_ih_p.astype(compute_dtype),
        "w_hh": w_hh_p.astype(compute_dtype),
        "b_lstm": b_p.astype(jnp.float32),
        "w_lin": w_lin_p.astype(compute_dtype),
        "b_lin": params["b_lin"].astype(jnp.float32),
        "H": H,
        "Hp": Hp,
    }


# -----------------------------------------------------------------------------
# DecoderRNN forward (matches PyTorch semantics)
# -----------------------------------------------------------------------------
def decoder_rnn_forward(packed, features, captions):
    """features: (B, E) f32; captions: (B, L) int32. Returns (B, L, vocab) f32."""
    B, E = features.shape
    H, Hp = packed["H"], packed["Hp"]
    V = packed["w_lin"].shape[1]

    # Embedding gather of captions[:, :-1] (glue op, plain JAX).
    emb = jnp.take(packed["embed"], captions[:, :-1], axis=0)     # (B, L-1, E)
    x = jnp.concatenate([features[:, None, :], emb], axis=1)      # (B, T, E)
    T = x.shape[1]
    x_tm = jnp.transpose(x, (1, 0, 2))                            # (T, B, E), small

    # Fused LSTM (input projection + recurrence); hidden output is batch-major
    # straight from the kernel -> no host-side transpose of the big tensor.
    hiddens = lstm_fused_pallas(x_tm, packed["w_ih"], packed["b_lstm"],
                                packed["w_hh"])                   # (Bp, T_pad, Hp)
    hiddens = hiddens[:B, :T]                                     # (B, T, Hp)

    # Tiled vocab projection; w_lin rows are Hp-padded so no hidden-dim slice.
    logits = linear_pallas(hiddens.reshape(B * T, Hp), packed["w_lin"],
                           packed["b_lin"])                       # (B*T, V)
    return logits.reshape(B, T, V)


# -----------------------------------------------------------------------------
# Pure-JAX reference for correctness checking
# -----------------------------------------------------------------------------
def decoder_rnn_reference(params, features, captions):
    emb = jnp.take(params["embed"], captions[:, :-1], axis=0)
    x = jnp.concatenate([features[:, None, :], emb], axis=1)      # (B, T, E)
    B, T, E = x.shape
    H = params["w_hh"].shape[0]

    def step(carry, x_t):
        h, c = carry
        gates = x_t @ params["w_ih"] + h @ params["w_hh"] + params["b_lstm"][0]
        i_g = jax.nn.sigmoid(gates[:, 0 * H:1 * H])
        f_g = jax.nn.sigmoid(gates[:, 1 * H:2 * H])
        g_g = jnp.tanh(gates[:, 2 * H:3 * H])
        o_g = jax.nn.sigmoid(gates[:, 3 * H:4 * H])
        c = f_g * c + i_g * g_g
        h = o_g * jnp.tanh(c)
        return (h, c), h

    h0 = jnp.zeros((B, H), jnp.float32)
    c0 = jnp.zeros((B, H), jnp.float32)
    _, hs = jax.lax.scan(step, (h0, c0), jnp.transpose(x, (1, 0, 2)))
    hiddens = jnp.transpose(hs, (1, 0, 2))
    return hiddens @ params["w_lin"] + params["b_lin"][0]


# -----------------------------------------------------------------------------
# Deterministic parameter init (shapes from DecoderRNN.__init__, num_layers=1)
# -----------------------------------------------------------------------------
def init_params(key, embed_size, hidden_size, vocab_size):
    ks = jax.random.split(key, 7)
    s = 1.0 / jnp.sqrt(hidden_size)
    return {
        # nn.Embedding(vocab_size, embed_size)
        "embed": jax.random.normal(ks[0], (vocab_size, embed_size), jnp.float32) * 0.1,
        # nn.LSTM weights stored transposed: (E, 4H), (H, 4H); combined bias (1, 4H)
        "w_ih": jax.random.uniform(ks[1], (embed_size, 4 * hidden_size), jnp.float32, -s, s),
        "w_hh": jax.random.uniform(ks[2], (hidden_size, 4 * hidden_size), jnp.float32, -s, s),
        "b_lstm": jax.random.uniform(ks[3], (1, 4 * hidden_size), jnp.float32, -s, s)
        + jax.random.uniform(ks[4], (1, 4 * hidden_size), jnp.float32, -s, s),
        # nn.Linear(hidden_size, vocab_size) stored transposed: (H, V); bias (1, V)
        "w_lin": jax.random.uniform(ks[5], (hidden_size, vocab_size), jnp.float32, -s, s),
        "b_lin": jax.random.uniform(ks[6], (1, vocab_size), jnp.float32, -s, s),
    }


if __name__ == "__main__":
    EMBED, HIDDEN, VOCAB = 32, 32, 128
    BATCH, CAP_LEN = 2, 8  # forward sees T = CAP_LEN steps (feature + 7 tokens)

    key = jax.random.PRNGKey(0)
    k_param, k_feat, k_cap = jax.random.split(key, 3)

    params = init_params(k_param, EMBED, HIDDEN, VOCAB)
    features = jax.random.normal(k_feat, (BATCH, EMBED), jnp.float32)
    captions = jax.random.randint(k_cap, (BATCH, CAP_LEN), 0, VOCAB, jnp.int32)

    ref = decoder_rnn_reference(params, features, captions)

    # f32 weights: strict numerical check vs the pure-JAX reference.
    packed_f32 = pack_params(params, jnp.float32)
    out = jax.block_until_ready(decoder_rnn_forward(packed_f32, features, captions))
    assert out.shape == (BATCH, CAP_LEN, VOCAB), out.shape
    assert jnp.allclose(out, ref, atol=1e-4, rtol=1e-4), "f32 mismatch vs reference"

    # bf16 weights (f32 gate math / state / accumulation): loose check.
    packed_bf16 = pack_params(params, jnp.bfloat16)
    out_bf16 = jax.block_until_ready(decoder_rnn_forward(packed_bf16, features, captions))
    assert out_bf16.shape == (BATCH, CAP_LEN, VOCAB), out_bf16.shape
    assert float(jnp.max(jnp.abs(out_bf16 - ref))) < 0.1, "bf16 path diverged"

    print("KERNEL_OK")
</pallas_src>

<mosaic_0001>
module attributes {stable_mosaic.version = 11 : i64} {
  func.func @_lstm_kernel(%arg0: i32, %arg1: i32, %arg2: memref<8x8x32xf32, #tpu.memory_space<vmem>>, %arg3: memref<32x512xf32, #tpu.memory_space<vmem>>, %arg4: memref<1x512xf32, #tpu.memory_space<vmem>>, %arg5: memref<128x512xf32, #tpu.memory_space<vmem>>, %arg6: memref<8x8x128xf32, #tpu.memory_space<vmem>>, %arg7: memref<8x8x512xf32, #tpu.memory_space<vmem>>, %arg8: memref<8x128xf32, #tpu.memory_space<vmem>>, %arg9: memref<8x128xf32, #tpu.memory_space<vmem>>) attributes {dimension_semantics = [#tpu.dimension_semantics<parallel>, #tpu.dimension_semantics<arbitrary>], iteration_bounds = array<i64: 1, 1>, scalar_prefetch = 0 : i64, scratch_operands = 3 : i64, tpu.core_type = #tpu.core_type<tc>, window_params = [{transform_indices = @transform_0, window_bounds = array<i64: 8, 8, 32>}, {pipeline_mode = #tpu.pipeline_mode<synchronous>, transform_indices = @transform_1, window_bounds = array<i64: 32, 512>}, {pipeline_mode = #tpu.pipeline_mode<synchronous>, transform_indices = @transform_2, window_bounds = array<i64: 1, 512>}, {pipeline_mode = #tpu.pipeline_mode<synchronous>, transform_indices = @transform_3, window_bounds = array<i64: 128, 512>}, {transform_indices = @transform_4, window_bounds = array<i64: 8, 8, 128>}]} {
    %c0_i32 = arith.constant 0 : i32
    %0 = arith.cmpi eq, %arg1, %c0_i32 : i32
    %1 = arith.extui %0 : i1 to i32
    %c0_i32_0 = arith.constant 0 : i32
    %2 = arith.cmpi ne, %1, %c0_i32_0 : i32
    scf.if %2 {
      %cst_93 = arith.constant 0.000000e+00 : f32
      %273 = vector.broadcast %cst_93 : f32 to vector<8x128xf32>
      %c0_94 = arith.constant 0 : index
      %c0_95 = arith.constant 0 : index
      %274 = vector.load %arg8[%c0_94, %c0_95] : memref<8x128xf32, #tpu.memory_space<vmem>>, vector<8x128xf32>
      tpu.vector_store %arg8[%c0_94, %c0_95], %273 {strides = array<i32>} : memref<8x128xf32, #tpu.memory_space<vmem>>, vector<8x128xf32>,
      %cst_96 = arith.constant 0.000000e+00 : f32
      %275 = vector.broadcast %cst_96 : f32 to vector<8x128xf32>
      %c0_97 = arith.constant 0 : index
      %c0_98 = arith.constant 0 : index
      %276 = vector.load %arg9[%c0_97, %c0_98] : memref<8x128xf32, #tpu.memory_space<vmem>>, vector<8x128xf32>
      tpu.vector_store %arg9[%c0_97, %c0_98], %275 {strides = array<i32>} : memref<8x128xf32, #tpu.memory_space<vmem>>, vector<8x128xf32>,
    } else {
    }
    %c0 = arith.constant 0 : index
    %c0_1 = arith.constant 0 : index
    %c0_2 = arith.constant 0 : index
    %3 = vector.load %arg2[%c0, %c0_1, %c0_2] : memref<8x8x32xf32, #tpu.memory_space<vmem>>, vector<8x8x32xf32>
    %4 = vector.shape_cast %3 : vector<8x8x32xf32> to vector<64x32xf32>
    %c0_3 = arith.constant 0 : index
    %c0_4 = arith.constant 0 : index
    %5 = vector.load %arg3[%c0_3, %c0_4] : memref<32x512xf32, #tpu.memory_space<vmem>>, vector<32x512xf32>
    %cst = arith.constant dense<0.000000e+00> : vector<64x512xf32>
    %6 = tpu.matmul %4, %5, %cst {dimension_numbers = #tpu.dot_dimension_numbers<[1], [0], [0], [1], [0, 0, 1, 1], [], []>} : vector<64x32xf32>, vector<32x512xf32>, vector<64x512xf32> -> vector<64x512xf32>
    %c0_5 = arith.constant 0 : index
    %c0_6 = arith.constant 0 : index
    %7 = vector.load %arg4[%c0_5, %c0_6] : memref<1x512xf32, #tpu.memory_space<vmem>>, vector<1x512xf32>
    %8 = vector.broadcast %7 : vector<1x512xf32> to vector<64x512xf32>
    %9 = arith.addf %6, %8 : vector<64x512xf32>
    %10 = vector.shape_cast %9 : vector<64x512xf32> to vector<8x8x512xf32>
    %c0_7 = arith.constant 0 : index
    %c0_8 = arith.constant 0 : index
    %c0_9 = arith.constant 0 : index
    %11 = vector.load %arg7[%c0_7, %c0_8, %c0_9] : memref<8x8x512xf32, #tpu.memory_space<vmem>>, vector<8x8x512xf32>
    tpu.vector_store %arg7[%c0_7, %c0_8, %c0_9], %10 {strides = array<i32>} : memref<8x8x512xf32, #tpu.memory_space<vmem>>, vector<8x8x512xf32>,
    %c0_10 = arith.constant 0 : index
    %c0_11 = arith.constant 0 : index
    %12 = vector.load %arg5[%c0_10, %c0_11] : memref<128x512xf32, #tpu.memory_space<vmem>>, vector<128x512xf32>
    %c0_12 = arith.constant 0 : index
    %c0_13 = arith.constant 0 : index
    %13 = vector.load %arg8[%c0_12, %c0_13] : memref<8x128xf32, #tpu.memory_space<vmem>>, vector<8x128xf32>
    %c0_14 = arith.constant 0 : index
    %c0_15 = arith.constant 0 : index
    %14 = vector.load %arg9[%c0_14, %c0_15] : memref<8x128xf32, #tpu.memory_space<vmem>>, vector<8x128xf32>
    %c0_16 = arith.constant 0 : index
    %c0_17 = arith.constant 0 : index
    %c0_18 = arith.constant 0 : index
    %15 = vector.load %arg7[%c0_16, %c0_17, %c0_18] : memref<8x8x512xf32, #tpu.memory_space<vmem>>, vector<1x8x512xf32>
    %16 = vector.shape_cast %15 : vector<1x8x512xf32> to vector<8x512xf32>
    %cst_19 = arith.constant dense<0.000000e+00> : vector<8x512xf32>
    %17 = tpu.matmul %13, %12, %cst_19 {dimension_numbers = #tpu.dot_dimension_numbers<[1], [0], [0], [1], [0, 0, 1, 1], [], []>} : vector<8x128xf32>, vector<128x512xf32>, vector<8x512xf32> -> vector<8x512xf32>
    %18 = arith.addf %16, %17 : vector<8x512xf32>
    %19 = vector.extract_strided_slice %18 {offsets = [0, 0], sizes = [8, 128], strides = [1, 1]} : vector<8x512xf32> to vector<8x128xf32>
    %20 = arith.negf %19 : vector<8x128xf32>
    %21 = math.exp %20 : vector<8x128xf32>
    %cst_20 = arith.constant 1.000000e+00 : f32
    %22 = vector.broadcast %cst_20 : f32 to vector<8x128xf32>
    %23 = arith.addf %22, %21 : vector<8x128xf32>
    %24 = arith.divf %22, %23 : vector<8x128xf32>
    %25 = vector.extract_strided_slice %18 {offsets = [0, 128], sizes = [8, 128], strides = [1, 1]} : vector<8x512xf32> to vector<8x128xf32>
    %26 = arith.negf %25 : vector<8x128xf32>
    %27 = math.exp %26 : vector<8x128xf32>
    %cst_21 = arith.constant 1.000000e+00 : f32
    %28 = vector.broadcast %cst_21 : f32 to vector<8x128xf32>
    %29 = arith.addf %28, %27 : vector<8x128xf32>
    %30 = arith.divf %28, %29 : vector<8x128xf32>
    %31 = vector.extract_strided_slice %18 {offsets = [0, 256], sizes = [8, 128], strides = [1, 1]} : vector<8x512xf32> to vector<8x128xf32>
    %32 = math.tanh %31 : vector<8x128xf32>
    %33 = vector.extract_strided_slice %18 {offsets = [0, 384], sizes = [8, 128], strides = [1, 1]} : vector<8x512xf32> to vector<8x128xf32>
    %34 = arith.negf %33 : vector<8x128xf32>
    %35 = math.exp %34 : vector<8x128xf32>
    %cst_22 = arith.constant 1.000000e+00 : f32
    %36 = vector.broadcast %cst_22 : f32 to vector<8x128xf32>
    %37 = arith.addf %36, %35 : vector<8x128xf32>
    %38 = arith.divf %36, %37 : vector<8x128xf32>
    %39 = arith.mulf %30, %14 : vector<8x128xf32>
    %40 = arith.mulf %24, %32 : vector<8x128xf32>
    %41 = arith.addf %39, %40 : vector<8x128xf32>
    %42 = math.tanh %41 : vector<8x128xf32>
    %43 = arith.mulf %38, %42 : vector<8x128xf32>
    %c0_23 = arith.constant 0 : index
    %c0_24 = arith.constant 0 : index
    %c0_25 = arith.constant 0 : index
    %44 = vector.load %arg6[%c0_23, %c0_24, %c0_25] : memref<8x8x128xf32, #tpu.memory_space<vmem>>, vector<8x1x128xf32>
    %45 = vector.shape_cast %44 : vector<8x1x128xf32> to vector<8x128xf32>
    %46 = vector.shape_cast %43 : vector<8x128xf32> to vector<8x1x128xf32>
    tpu.vector_store %arg6[%c0_23, %c0_24, %c0_25], %46 {strides = array<i32>} : memref<8x8x128xf32, #tpu.memory_space<vmem>>, vector<8x1x128xf32>,
    %c1 = arith.constant 1 : index
    %c0_26 = arith.constant 0 : index
    %c0_27 = arith.constant 0 : index
    %47 = vector.load %arg7[%c1, %c0_26, %c0_27] : memref<8x8x512xf32, #tpu.memory_space<vmem>>, vector<1x8x512xf32>
    %48 = vector.shape_cast %47 : vector<1x8x512xf32> to vector<8x512xf32>
    %cst_28 = arith.constant dense<0.000000e+00> : vector<8x512xf32>
    %49 = tpu.matmul %43, %12, %cst_28 {dimension_numbers = #tpu.dot_dimension_numbers<[1], [0], [0], [1], [0, 0, 1, 1], [], []>} : vector<8x128xf32>, vector<128x512xf32>, vector<8x512xf32> -> vector<8x512xf32>
    %50 = arith.addf %48, %49 : vector<8x512xf32>
    %51 = vector.extract_strided_slice %50 {offsets = [0, 0], sizes = [8, 128], strides = [1, 1]} : vector<8x512xf32> to vector<8x128xf32>
    %52 = arith.negf %51 : vector<8x128xf32>
    %53 = math.exp %52 : vector<8x128xf32>
    %cst_29 = arith.constant 1.000000e+00 : f32
    %54 = vector.broadcast %cst_29 : f32 to vector<8x128xf32>
    %55 = arith.addf %54, %53 : vector<8x128xf32>
    %56 = arith.divf %54, %55 : vector<8x128xf32>
    %57 = vector.extract_strided_slice %50 {offsets = [0, 128], sizes = [8, 128], strides = [1, 1]} : vector<8x512xf32> to vector<8x128xf32>
    %58 = arith.negf %57 : vector<8x128xf32>
    %59 = math.exp %58 : vector<8x128xf32>
    %cst_30 = arith.constant 1.000000e+00 : f32
    %60 = vector.broadcast %cst_30 : f32 to vector<8x128xf32>
    %61 = arith.addf %60, %59 : vector<8x128xf32>
    %62 = arith.divf %60, %61 : vector<8x128xf32>
    %63 = vector.extract_strided_slice %50 {offsets = [0, 256], sizes = [8, 128], strides = [1, 1]} : vector<8x512xf32> to vector<8x128xf32>
    %64 = math.tanh %63 : vector<8x128xf32>
    %65 = vector.extract_strided_slice %50 {offsets = [0, 384], sizes = [8, 128], strides = [1, 1]} : vector<8x512xf32> to vector<8x128xf32>
    %66 = arith.negf %65 : vector<8x128xf32>
    %67 = math.exp %66 : vector<8x128xf32>
    %cst_31 = arith.constant 1.000000e+00 : f32
    %68 = vector.broadcast %cst_31 : f32 to vector<8x128xf32>
    %69 = arith.addf %68, %67 : vector<8x128xf32>
    %70 = arith.divf %68, %69 : vector<8x128xf32>
    %71 = arith.mulf %62, %41 : vector<8x128xf32>
    %72 = arith.mulf %56, %64 : vector<8x128xf32>
    %73 = arith.addf %71, %72 : vector<8x128xf32>
    %74 = math.tanh %73 : vector<8x128xf32>
    %75 = arith.mulf %70, %74 : vector<8x128xf32>
    %c0_32 = arith.constant 0 : index
    %c1_33 = arith.constant 1 : index
    %c0_34 = arith.constant 0 : index
    %76 = vector.load %arg6[%c0_32, %c1_33, %c0_34] : memref<8x8x128xf32, #tpu.memory_space<vmem>>, vector<8x1x128xf32>
    %77 = vector.shape_cast %76 : vector<8x1x128xf32> to vector<8x128xf32>
    %78 = vector.shape_cast %75 : vector<8x128xf32> to vector<8x1x128xf32>
    tpu.vector_store %arg6[%c0_32, %c1_33, %c0_34], %78 {strides = array<i32>} : memref<8x8x128xf32, #tpu.memory_space<vmem>>, vector<8x1x128xf32>,
    %c2 = arith.constant 2 : index
    %c0_35 = arith.constant 0 : index
    %c0_36 = arith.constant 0 : index
    %79 = vector.load %arg7[%c2, %c0_35, %c0_36] : memref<8x8x512xf32, #tpu.memory_space<vmem>>, vector<1x8x512xf32>
    %80 = vector.shape_cast %79 : vector<1x8x512xf32> to vector<8x512xf32>
    %cst_37 = arith.constant dense<0.000000e+00> : vector<8x512xf32>
    %81 = tpu.matmul %75, %12, %cst_37 {dimension_numbers = #tpu.dot_dimension_numbers<[1], [0], [0], [1], [0, 0, 1, 1], [], []>} : vector<8x128xf32>, vector<128x512xf32>, vector<8x512xf32> -> vector<8x512xf32>
    %82 = arith.addf %80, %81 : vector<8x512xf32>
    %83 = vector.extract_strided_slice %82 {offsets = [0, 0], sizes = [8, 128], strides = [1, 1]} : vector<8x512xf32> to vector<8x128xf32>
    %84 = arith.negf %83 : vector<8x128xf32>
    %85 = math.exp %84 : vector<8x128xf32>
    %cst_38 = arith.constant 1.000000e+00 : f32
    %86 = vector.broadcast %cst_38 : f32 to vector<8x128xf32>
    %87 = arith.addf %86, %85 : vector<8x128xf32>
    %88 = arith.divf %86, %87 : vector<8x128xf32>
    %89 = vector.extract_strided_slice %82 {offsets = [0, 128], sizes = [8, 128], strides = [1, 1]} : vector<8x512xf32> to vector<8x128xf32>
    %90 = arith.negf %89 : vector<8x128xf32>
    %91 = math.exp %90 : vector<8x128xf32>
    %cst_39 = arith.constant 1.000000e+00 : f32
    %92 = vector.broadcast %cst_39 : f32 to vector<8x128xf32>
    %93 = arith.addf %92, %91 : vector<8x128xf32>
    %94 = arith.divf %92, %93 : vector<8x128xf32>
    %95 = vector.extract_strided_slice %82 {offsets = [0, 256], sizes = [8, 128], strides = [1, 1]} : vector<8x512xf32> to vector<8x128xf32>
    %96 = math.tanh %95 : vector<8x128xf32>
    %97 = vector.extract_strided_slice %82 {offsets = [0, 384], sizes = [8, 128], strides = [1, 1]} : vector<8x512xf32> to vector<8x128xf32>
    %98 = arith.negf %97 : vector<8x128xf32>
    %99 = math.exp %98 : vector<8x128xf32>
    %cst_40 = arith.constant 1.000000e+00 : f32
    %100 = vector.broadcast %cst_40 : f32 to vector<8x128xf32>
    %101 = arith.addf %100, %99 : vector<8x128xf32>
    %102 = arith.divf %100, %101 : vector<8x128xf32>
    %103 = arith.mulf %94, %73 : vector<8x128xf32>
    %104 = arith.mulf %88, %96 : vector<8x128xf32>
    %105 = arith.addf %103, %104 : vector<8x128xf32>
    %106 = math.tanh %105 : vector<8x128xf32>
    %107 = arith.mulf %102, %106 : vector<8x128xf32>
    %c0_41 = arith.constant 0 : index
    %c2_42 = arith.constant 2 : index
    %c0_43 = arith.constant 0 : index
    %108 = vector.load %arg6[%c0_41, %c2_42, %c0_43] : memref<8x8x128xf32, #tpu.memory_space<vmem>>, vector<8x1x128xf32>
    %109 = vector.shape_cast %108 : vector<8x1x128xf32> to vector<8x128xf32>
    %110 = vector.shape_cast %107 : vector<8x128xf32> to vector<8x1x128xf32>
    tpu.vector_store %arg6[%c0_41, %c2_42, %c0_43], %110 {strides = array<i32>} : memref<8x8x128xf32, #tpu.memory_space<vmem>>, vector<8x1x128xf32>,
    %c3 = arith.constant 3 : index
    %c0_44 = arith.constant 0 : index
    %c0_45 = arith.constant 0 : index
    %111 = vector.load %arg7[%c3, %c0_44, %c0_45] : memref<8x8x512xf32, #tpu.memory_space<vmem>>, vector<1x8x512xf32>
    %112 = vector.shape_cast %111 : vector<1x8x512xf32> to vector<8x512xf32>
    %cst_46 = arith.constant dense<0.000000e+00> : vector<8x512xf32>
    %113 = tpu.matmul %107, %12, %cst_46 {dimension_numbers = #tpu.dot_dimension_numbers<[1], [0], [0], [1], [0, 0, 1, 1], [], []>} : vector<8x128xf32>, vector<128x512xf32>, vector<8x512xf32> -> vector<8x512xf32>
    %114 = arith.addf %112, %113 : vector<8x512xf32>
    %115 = vector.extract_strided_slice %114 {offsets = [0, 0], sizes = [8, 128], strides = [1, 1]} : vector<8x512xf32> to vector<8x128xf32>
    %116 = arith.negf %115 : vector<8x128xf32>
    %117 = math.exp %116 : vector<8x128xf32>
    %cst_47 = arith.constant 1.000000e+00 : f32
    %118 = vector.broadcast %cst_47 : f32 to vector<8x128xf32>
    %119 = arith.addf %118, %117 : vector<8x128xf32>
    %120 = arith.divf %118, %119 : vector<8x128xf32>
    %121 = vector.extract_strided_slice %114 {offsets = [0, 128], sizes = [8, 128], strides = [1, 1]} : vector<8x512xf32> to vector<8x128xf32>
    %122 = arith.negf %121 : vector<8x128xf32>
    %123 = math.exp %122 : vector<8x128xf32>
    %cst_48 = arith.constant 1.000000e+00 : f32
    %124 = vector.broadcast %cst_48 : f32 to vector<8x128xf32>
    %125 = arith.addf %124, %123 : vector<8x128xf32>
    %126 = arith.divf %124, %125 : vector<8x128xf32>
    %127 = vector.extract_strided_slice %114 {offsets = [0, 256], sizes = [8, 128], strides = [1, 1]} : vector<8x512xf32> to vector<8x128xf32>
    %128 = math.tanh %127 : vector<8x128xf32>
    %129 = vector.extract_strided_slice %114 {offsets = [0, 384], sizes = [8, 128], strides = [1, 1]} : vector<8x512xf32> to vector<8x128xf32>
    %130 = arith.negf %129 : vector<8x128xf32>
    %131 = math.exp %130 : vector<8x128xf32>
    %cst_49 = arith.constant 1.000000e+00 : f32
    %132 = vector.broadcast %cst_49 : f32 to vector<8x128xf32>
    %133 = arith.addf %132, %131 : vector<8x128xf32>
    %134 = arith.divf %132, %133 : vector<8x128xf32>
    %135 = arith.mulf %126, %105 : vector<8x128xf32>
    %136 = arith.mulf %120, %128 : vector<8x128xf32>
    %137 = arith.addf %135, %136 : vector<8x128xf32>
    %138 = math.tanh %137 : vector<8x128xf32>
    %139 = arith.mulf %134, %138 : vector<8x128xf32>
    %c0_50 = arith.constant 0 : index
    %c3_51 = arith.constant 3 : index
    %c0_52 = arith.constant 0 : index
    %140 = vector.load %arg6[%c0_50, %c3_51, %c0_52] : memref<8x8x128xf32, #tpu.memory_space<vmem>>, vector<8x1x128xf32>
    %141 = vector.shape_cast %140 : vector<8x1x128xf32> to vector<8x128xf32>
    %142 = vector.shape_cast %139 : vector<8x128xf32> to vector<8x1x128xf32>
    tpu.vector_store %arg6[%c0_50, %c3_51, %c0_52], %142 {strides = array<i32>} : memref<8x8x128xf32, #tpu.memory_space<vmem>>, vector<8x1x128xf32>,
    %c4 = arith.constant 4 : index
    %c0_53 = arith.constant 0 : index
    %c0_54 = arith.constant 0 : index
    %143 = vector.load %arg7[%c4, %c0_53, %c0_54] : memref<8x8x512xf32, #tpu.memory_space<vmem>>, vector<1x8x512xf32>
    %144 = vector.shape_cast %143 : vector<1x8x512xf32> to vector<8x512xf32>
    %cst_55 = arith.constant dense<0.000000e+00> : vector<8x512xf32>
    %145 = tpu.matmul %139, %12, %cst_55 {dimension_numbers = #tpu.dot_dimension_numbers<[1], [0], [0], [1], [0, 0, 1, 1], [], []>} : vector<8x128xf32>, vector<128x512xf32>, vector<8x512xf32> -> vector<8x512xf32>
    %146 = arith.addf %144, %145 : vector<8x512xf32>
    %147 = vector.extract_strided_slice %146 {offsets = [0, 0], sizes = [8, 128], strides = [1, 1]} : vector<8x512xf32> to vector<8x128xf32>
    %148 = arith.negf %147 : vector<8x128xf32>
    %149 = math.exp %148 : vector<8x128xf32>
    %cst_56 = arith.constant 1.000000e+00 : f32
    %150 = vector.broadcast %cst_56 : f32 to vector<8x128xf32>
    %151 = arith.addf %150, %149 : vector<8x128xf32>
    %152 = arith.divf %150, %151 : vector<8x128xf32>
    %153 = vector.extract_strided_slice %146 {offsets = [0, 128], sizes = [8, 128], strides = [1, 1]} : vector<8x512xf32> to vector<8x128xf32>
    %154 = arith.negf %153 : vector<8x128xf32>
    %155 = math.exp %154 : vector<8x128xf32>
    %cst_57 = arith.constant 1.000000e+00 : f32
    %156 = vector.broadcast %cst_57 : f32 to vector<8x128xf32>
    %157 = arith.addf %156, %155 : vector<8x128xf32>
    %158 = arith.divf %156, %157 : vector<8x128xf32>
    %159 = vector.extract_strided_slice %146 {offsets = [0, 256], sizes = [8, 128], strides = [1, 1]} : vector<8x512xf32> to vector<8x128xf32>
    %160 = math.tanh %159 : vector<8x128xf32>
    %161 = vector.extract_strided_slice %146 {offsets = [0, 384], sizes = [8, 128], strides = [1, 1]} : vector<8x512xf32> to vector<8x128xf32>
    %162 = arith.negf %161 : vector<8x128xf32>
    %163 = math.exp %162 : vector<8x128xf32>
    %cst_58 = arith.constant 1.000000e+00 : f32
    %164 = vector.broadcast %cst_58 : f32 to vector<8x128xf32>
    %165 = arith.addf %164, %163 : vector<8x128xf32>
    %166 = arith.divf %164, %165 : vector<8x128xf32>
    %167 = arith.mulf %158, %137 : vector<8x128xf32>
    %168 = arith.mulf %152, %160 : vector<8x128xf32>
    %169 = arith.addf %167, %168 : vector<8x128xf32>
    %170 = math.tanh %169 : vector<8x128xf32>
    %171 = arith.mulf %166, %170 : vector<8x128xf32>
    %c0_59 = arith.constant 0 : index
    %c4_60 = arith.constant 4 : index
    %c0_61 = arith.constant 0 : index
    %172 = vector.load %arg6[%c0_59, %c4_60, %c0_61] : memref<8x8x128xf32, #tpu.memory_space<vmem>>, vector<8x1x128xf32>
    %173 = vector.shape_cast %172 : vector<8x1x128xf32> to vector<8x128xf32>
    %174 = vector.shape_cast %171 : vector<8x128xf32> to vector<8x1x128xf32>
    tpu.vector_store %arg6[%c0_59, %c4_60, %c0_61], %174 {strides = array<i32>} : memref<8x8x128xf32, #tpu.memory_space<vmem>>, vector<8x1x128xf32>,
    %c5 = arith.constant 5 : index
    %c0_62 = arith.constant 0 : index
    %c0_63 = arith.constant 0 : index
    %175 = vector.load %arg7[%c5, %c0_62, %c0_63] : memref<8x8x512xf32, #tpu.memory_space<vmem>>, vector<1x8x512xf32>
    %176 = vector.shape_cast %175 : vector<1x8x512xf32> to vector<8x512xf32>
    %cst_64 = arith.constant dense<0.000000e+00> : vector<8x512xf32>
    %177 = tpu.matmul %171, %12, %cst_64 {dimension_numbers = #tpu.dot_dimension_numbers<[1], [0], [0], [1], [0, 0, 1, 1], [], []>} : vector<8x128xf32>, vector<128x512xf32>, vector<8x512xf32> -> vector<8x512xf32>
    %178 = arith.addf %176, %177 : vector<8x512xf32>
    %179 = vector.extract_strided_slice %178 {offsets = [0, 0], sizes = [8, 128], strides = [1, 1]} : vector<8x512xf32> to vector<8x128xf32>
    %180 = arith.negf %179 : vector<8x128xf32>
    %181 = math.exp %180 : vector<8x128xf32>
    %cst_65 = arith.constant 1.000000e+00 : f32
    %182 = vector.broadcast %cst_65 : f32 to vector<8x128xf32>
    %183 = arith.addf %182, %181 : vector<8x128xf32>
    %184 = arith.divf %182, %183 : vector<8x128xf32>
    %185 = vector.extract_strided_slice %178 {offsets = [0, 128], sizes = [8, 128], strides = [1, 1]} : vector<8x512xf32> to vector<8x128xf32>
    %186 = arith.negf %185 : vector<8x128xf32>
    %187 = math.exp %186 : vector<8x128xf32>
    %cst_66 = arith.constant 1.000000e+00 : f32
    %188 = vector.broadcast %cst_66 : f32 to vector<8x128xf32>
    %189 = arith.addf %188, %187 : vector<8x128xf32>
    %190 = arith.divf %188, %189 : vector<8x128xf32>
    %191 = vector.extract_strided_slice %178 {offsets = [0, 256], sizes = [8, 128], strides = [1, 1]} : vector<8x512xf32> to vector<8x128xf32>
    %192 = math.tanh %191 : vector<8x128xf32>
    %193 = vector.extract_strided_slice %178 {offsets = [0, 384], sizes = [8, 128], strides = [1, 1]} : vector<8x512xf32> to vector<8x128xf32>
    %194 = arith.negf %193 : vector<8x128xf32>
    %195 = math.exp %194 : vector<8x128xf32>
    %cst_67 = arith.constant 1.000000e+00 : f32
    %196 = vector.broadcast %cst_67 : f32 to vector<8x128xf32>
    %197 = arith.addf %196, %195 : vector<8x128xf32>
    %198 = arith.divf %196, %197 : vector<8x128xf32>
    %199 = arith.mulf %190, %169 : vector<8x128xf32>
    %200 = arith.mulf %184, %192 : vector<8x128xf32>
    %201 = arith.addf %199, %200 : vector<8x128xf32>
    %202 = math.tanh %201 : vector<8x128xf32>
    %203 = arith.mulf %198, %202 : vector<8x128xf32>
    %c0_68 = arith.constant 0 : index
    %c5_69 = arith.constant 5 : index
    %c0_70 = arith.constant 0 : index
    %204 = vector.load %arg6[%c0_68, %c5_69, %c0_70] : memref<8x8x128xf32, #tpu.memory_space<vmem>>, vector<8x1x128xf32>
    %205 = vector.shape_cast %204 : vector<8x1x128xf32> to vector<8x128xf32>
    %206 = vector.shape_cast %203 : vector<8x128xf32> to vector<8x1x128xf32>
    tpu.vector_store %arg6[%c0_68, %c5_69, %c0_70], %206 {strides = array<i32>} : memref<8x8x128xf32, #tpu.memory_space<vmem>>, vector<8x1x128xf32>,
    %c6 = arith.constant 6 : index
    %c0_71 = arith.constant 0 : index
    %c0_72 = arith.constant 0 : index
    %207 = vector.load %arg7[%c6, %c0_71, %c0_72] : memref<8x8x512xf32, #tpu.memory_space<vmem>>, vector<1x8x512xf32>
    %208 = vector.shape_cast %207 : vector<1x8x512xf32> to vector<8x512xf32>
    %cst_73 = arith.constant dense<0.000000e+00> : vector<8x512xf32>
    %209 = tpu.matmul %203, %12, %cst_73 {dimension_numbers = #tpu.dot_dimension_numbers<[1], [0], [0], [1], [0, 0, 1, 1], [], []>} : vector<8x128xf32>, vector<128x512xf32>, vector<8x512xf32> -> vector<8x512xf32>
    %210 = arith.addf %208, %209 : vector<8x512xf32>
    %211 = vector.extract_strided_slice %210 {offsets = [0, 0], sizes = [8, 128], strides = [1, 1]} : vector<8x512xf32> to vector<8x128xf32>
    %212 = arith.negf %211 : vector<8x128xf32>
    %213 = math.exp %212 : vector<8x128xf32>
    %cst_74 = arith.constant 1.000000e+00 : f32
    %214 = vector.broadcast %cst_74 : f32 to vector<8x128xf32>
    %215 = arith.addf %214, %213 : vector<8x128xf32>
    %216 = arith.divf %214, %215 : vector<8x128xf32>
    %217 = vector.extract_strided_slice %210 {offsets = [0, 128], sizes = [8, 128], strides = [1, 1]} : vector<8x512xf32> to vector<8x128xf32>
    %218 = arith.negf %217 : vector<8x128xf32>
    %219 = math.exp %218 : vector<8x128xf32>
    %cst_75 = arith.constant 1.000000e+00 : f32
    %220 = vector.broadcast %cst_75 : f32 to vector<8x128xf32>
    %221 = arith.addf %220, %219 : vector<8x128xf32>
    %222 = arith.divf %220, %221 : vector<8x128xf32>
    %223 = vector.extract_strided_slice %210 {offsets = [0, 256], sizes = [8, 128], strides = [1, 1]} : vector<8x512xf32> to vector<8x128xf32>
    %224 = math.tanh %223 : vector<8x128xf32>
    %225 = vector.extract_strided_slice %210 {offsets = [0, 384], sizes = [8, 128], strides = [1, 1]} : vector<8x512xf32> to vector<8x128xf32>
    %226 = arith.negf %225 : vector<8x128xf32>
    %227 = math.exp %226 : vector<8x128xf32>
    %cst_76 = arith.constant 1.000000e+00 : f32
    %228 = vector.broadcast %cst_76 : f32 to vector<8x128xf32>
    %229 = arith.addf %228, %227 : vector<8x128xf32>
    %230 = arith.divf %228, %229 : vector<8x128xf32>
    %231 = arith.mulf %222, %201 : vector<8x128xf32>
    %232 = arith.mulf %216, %224 : vector<8x128xf32>
    %233 = arith.addf %231, %232 : vector<8x128xf32>
    %234 = math.tanh %233 : vector<8x128xf32>
    %235 = arith.mulf %230, %234 : vector<8x128xf32>
    %c0_77 = arith.constant 0 : index
    %c6_78 = arith.constant 6 : index
    %c0_79 = arith.constant 0 : index
    %236 = vector.load %arg6[%c0_77, %c6_78, %c0_79] : memref<8x8x128xf32, #tpu.memory_space<vmem>>, vector<8x1x128xf32>
    %237 = vector.shape_cast %236 : vector<8x1x128xf32> to vector<8x128xf32>
    %238 = vector.shape_cast %235 : vector<8x128xf32> to vector<8x1x128xf32>
    tpu.vector_store %arg6[%c0_77, %c6_78, %c0_79], %238 {strides = array<i32>} : memref<8x8x128xf32, #tpu.memory_space<vmem>>, vector<8x1x128xf32>,
    %c7 = arith.constant 7 : index
    %c0_80 = arith.constant 0 : index
    %c0_81 = arith.constant 0 : index
    %239 = vector.load %arg7[%c7, %c0_80, %c0_81] : memref<8x8x512xf32, #tpu.memory_space<vmem>>, vector<1x8x512xf32>
    %240 = vector.shape_cast %239 : vector<1x8x512xf32> to vector<8x512xf32>
    %cst_82 = arith.constant dense<0.000000e+00> : vector<8x512xf32>
    %241 = tpu.matmul %235, %12, %cst_82 {dimension_numbers = #tpu.dot_dimension_numbers<[1], [0], [0], [1], [0, 0, 1, 1], [], []>} : vector<8x128xf32>, vector<128x512xf32>, vector<8x512xf32> -> vector<8x512xf32>
    %242 = arith.addf %240, %241 : vector<8x512xf32>
    %243 = vector.extract_strided_slice %242 {offsets = [0, 0], sizes = [8, 128], strides = [1, 1]} : vector<8x512xf32> to vector<8x128xf32>
    %244 = arith.negf %243 : vector<8x128xf32>
    %245 = math.exp %244 : vector<8x128xf32>
    %cst_83 = arith.constant 1.000000e+00 : f32
    %246 = vector.broadcast %cst_83 : f32 to vector<8x128xf32>
    %247 = arith.addf %246, %245 : vector<8x128xf32>
    %248 = arith.divf %246, %247 : vector<8x128xf32>
    %249 = vector.extract_strided_slice %242 {offsets = [0, 128], sizes = [8, 128], strides = [1, 1]} : vector<8x512xf32> to vector<8x128xf32>
    %250 = arith.negf %249 : vector<8x128xf32>
    %251 = math.exp %250 : vector<8x128xf32>
    %cst_84 = arith.constant 1.000000e+00 : f32
    %252 = vector.broadcast %cst_84 : f32 to vector<8x128xf32>
    %253 = arith.addf %252, %251 : vector<8x128xf32>
    %254 = arith.divf %252, %253 : vector<8x128xf32>
    %255 = vector.extract_strided_slice %242 {offsets = [0, 256], sizes = [8, 128], strides = [1, 1]} : vector<8x512xf32> to vector<8x128xf32>
    %256 = math.tanh %255 : vector<8x128xf32>
    %257 = vector.extract_strided_slice %242 {offsets = [0, 384], sizes = [8, 128], strides = [1, 1]} : vector<8x512xf32> to vector<8x128xf32>
    %258 = arith.negf %257 : vector<8x128xf32>
    %259 = math.exp %258 : vector<8x128xf32>
    %cst_85 = arith.constant 1.000000e+00 : f32
    %260 = vector.broadcast %cst_85 : f32 to vector<8x128xf32>
    %261 = arith.addf %260, %259 : vector<8x128xf32>
    %262 = arith.divf %260, %261 : vector<8x128xf32>
    %263 = arith.mulf %254, %233 : vector<8x128xf32>
    %264 = arith.mulf %248, %256 : vector<8x128xf32>
    %265 = arith.addf %263, %264 : vector<8x128xf32>
    %266 = math.tanh %265 : vector<8x128xf32>
    %267 = arith.mulf %262, %266 : vector<8x128xf32>
    %c0_86 = arith.constant 0 : index
    %c7_87 = arith.constant 7 : index
    %c0_88 = arith.constant 0 : index
    %268 = vector.load %arg6[%c0_86, %c7_87, %c0_88] : memref<8x8x128xf32, #tpu.memory_space<vmem>>, vector<8x1x128xf32>
    %269 = vector.shape_cast %268 : vector<8x1x128xf32> to vector<8x128xf32>
    %270 = vector.shape_cast %267 : vector<8x128xf32> to vector<8x1x128xf32>
    tpu.vector_store %arg6[%c0_86, %c7_87, %c0_88], %270 {strides = array<i32>} : memref<8x8x128xf32, #tpu.memory_space<vmem>>, vector<8x1x128xf32>,
    %c0_89 = arith.constant 0 : index
    %c0_90 = arith.constant 0 : index
    %271 = vector.load %arg8[%c0_89, %c0_90] : memref<8x128xf32, #tpu.memory_space<vmem>>, vector<8x128xf32>
    tpu.vector_store %arg8[%c0_89, %c0_90], %267 {strides = array<i32>} : memref<8x128xf32, #tpu.memory_space<vmem>>, vector<8x128xf32>,
    %c0_91 = arith.constant 0 : index
    %c0_92 = arith.constant 0 : index
    %272 = vector.load %arg9[%c0_91, %c0_92] : memref<8x128xf32, #tpu.memory_space<vmem>>, vector<8x128xf32>
    tpu.vector_store %arg9[%c0_91, %c0_92], %265 {strides = array<i32>} : memref<8x128xf32, #tpu.memory_space<vmem>>, vector<8x128xf32>,
    return
  }
  func.func @transform_0(%arg0: i32, %arg1: i32) -> (i32, i32, i32) {
    %c0_i32 = arith.constant 0 : i32
    %c0_i32_0 = arith.constant 0 : i32
    return %arg1, %arg0, %c0_i32 : i32, i32, i32
  }
  func.func @transform_1(%arg0: i32, %arg1: i32) -> (i32, i32) {
    %c0_i32 = arith.constant 0 : i32
    %c0_i32_0 = arith.constant 0 : i32
    %c0_i32_1 = arith.constant 0 : i32
    return %c0_i32, %c0_i32_0 : i32, i32
  }
  func.func @transform_2(%arg0: i32, %arg1: i32) -> (i32, i32) {
    %c0_i32 = arith.constant 0 : i32
    %c0_i32_0 = arith.constant 0 : i32
    %c0_i32_1 = arith.constant 0 : i32
    return %c0_i32, %c0_i32_0 : i32, i32
  }
  func.func @transform_3(%arg0: i32, %arg1: i32) -> (i32, i32) {
    %c0_i32 = arith.constant 0 : i32
    %c0_i32_0 = arith.constant 0 : i32
    %c0_i32_1 = arith.constant 0 : i32
    return %c0_i32, %c0_i32_0 : i32, i32
  }
  func.func @transform_4(%arg0: i32, %arg1: i32) -> (i32, i32, i32) {
    %c0_i32 = arith.constant 0 : i32
    %c0_i32_0 = arith.constant 0 : i32
    return %arg0, %arg1, %c0_i32 : i32, i32, i32
  }
}

module attributes {stable_mosaic.version = 11 : i64} {
  func.func @_lstm_kernel(%arg0: i32, %arg1: i32, %arg2: memref<8x8x32xf32, #tpu.memory_space<vmem>>, %arg3: memref<32x512xf32, #tpu.memory_space<vmem>>, %arg4: memref<1x512xf32, #tpu.memory_space<vmem>>, %arg5: memref<128x512xf32, #tpu.memory_space<vmem>>, %arg6: memref<8x8x128xf32, #tpu.memory_space<vmem>>, %arg7: memref<8x8x512xf32, #tpu.memory_space<vmem>>, %arg8: memref<8x128xf32, #tpu.memory_space<vmem>>, %arg9: memref<8x128xf32, #tpu.memory_space<vmem>>) attributes {dimension_semantics = [#tpu.dimension_semantics<parallel>, #tpu.dimension_semantics<arbitrary>], iteration_bounds = array<i64: 1, 1>, scalar_prefetch = 0 : i64, scratch_operands = 3 : i64, tpu.core_type = #tpu.core_type<tc>, window_params = [{transform_indices = @transform_0, window_bounds = array<i64: 8, 8, 32>}, {pipeline_mode = #tpu.pipeline_mode<synchronous>, transform_indices = @transform_1, window_bounds = array<i64: 32, 512>}, {pipeline_mode = #tpu.pipeline_mode<synchronous>, transform_indices = @transform_2, window_bounds = array<i64: 1, 512>}, {pipeline_mode = #tpu.pipeline_mode<synchronous>, transform_indices = @transform_3, window_bounds = array<i64: 128, 512>}, {transform_indices = @transform_4, window_bounds = array<i64: 8, 8, 128>}]} {
    %c0_i32 = arith.constant 0 : i32
    %0 = arith.cmpi eq, %arg1, %c0_i32 : i32
    %1 = arith.extui %0 : i1 to i32
    %c0_i32_0 = arith.constant 0 : i32
    %2 = arith.cmpi ne, %1, %c0_i32_0 : i32
    scf.if %2 {
      %cst_93 = arith.constant 0.000000e+00 : f32
      %273 = vector.broadcast %cst_93 : f32 to vector<8x128xf32>
      %c0_94 = arith.constant 0 : index
      %c0_95 = arith.constant 0 : index
      %274 = vector.load %arg8[%c0_94, %c0_95] : memref<8x128xf32, #tpu.memory_space<vmem>>, vector<8x128xf32>
      tpu.vector_store %arg8[%c0_94, %c0_95], %273 {strides = array<i32>} : memref<8x128xf32, #tpu.memory_space<vmem>>, vector<8x128xf32>,
      %cst_96 = arith.constant 0.000000e+00 : f32
      %275 = vector.broadcast %cst_96 : f32 to vector<8x128xf32>
      %c0_97 = arith.constant 0 : index
      %c0_98 = arith.constant 0 : index
      %276 = vector.load %arg9[%c0_97, %c0_98] : memref<8x128xf32, #tpu.memory_space<vmem>>, vector<8x128xf32>
      tpu.vector_store %arg9[%c0_97, %c0_98], %275 {strides = array<i32>} : memref<8x128xf32, #tpu.memory_space<vmem>>, vector<8x128xf32>,
    } else {
    }
    %c0 = arith.constant 0 : index
    %c0_1 = arith.constant 0 : index
    %c0_2 = arith.constant 0 : index
    %3 = vector.load %arg2[%c0, %c0_1, %c0_2] : memref<8x8x32xf32, #tpu.memory_space<vmem>>, vector<8x8x32xf32>
    %4 = vector.shape_cast %3 : vector<8x8x32xf32> to vector<64x32xf32>
    %c0_3 = arith.constant 0 : index
    %c0_4 = arith.constant 0 : index
    %5 = vector.load %arg3[%c0_3, %c0_4] : memref<32x512xf32, #tpu.memory_space<vmem>>, vector<32x512xf32>
    %cst = arith.constant dense<0.000000e+00> : vector<64x512xf32>
    %6 = tpu.matmul %4, %5, %cst {dimension_numbers = #tpu.dot_dimension_numbers<[1], [0], [0], [1], [0, 0, 1, 1], [], []>} : vector<64x32xf32>, vector<32x512xf32>, vector<64x512xf32> -> vector<64x512xf32>
    %c0_5 = arith.constant 0 : index
    %c0_6 = arith.constant 0 : index
    %7 = vector.load %arg4[%c0_5, %c0_6] : memref<1x512xf32, #tpu.memory_space<vmem>>, vector<1x512xf32>
    %8 = vector.broadcast %7 : vector<1x512xf32> to vector<64x512xf32>
    %9 = arith.addf %6, %8 : vector<64x512xf32>
    %10 = vector.shape_cast %9 : vector<64x512xf32> to vector<8x8x512xf32>
    %c0_7 = arith.constant 0 : index
    %c0_8 = arith.constant 0 : index
    %c0_9 = arith.constant 0 : index
    %11 = vector.load %arg7[%c0_7, %c0_8, %c0_9] : memref<8x8x512xf32, #tpu.memory_space<vmem>>, vector<8x8x512xf32>
    tpu.vector_store %arg7[%c0_7, %c0_8, %c0_9], %10 {strides = array<i32>} : memref<8x8x512xf32, #tpu.memory_space<vmem>>, vector<8x8x512xf32>,
    %c0_10 = arith.constant 0 : index
    %c0_11 = arith.constant 0 : index
    %12 = vector.load %arg5[%c0_10, %c0_11] : memref<128x512xf32, #tpu.memory_space<vmem>>, vector<128x512xf32>
    %c0_12 = arith.constant 0 : index
    %c0_13 = arith.constant 0 : index
    %13 = vector.load %arg8[%c0_12, %c0_13] : memref<8x128xf32, #tpu.memory_space<vmem>>, vector<8x128xf32>
    %c0_14 = arith.constant 0 : index
    %c0_15 = arith.constant 0 : index
    %14 = vector.load %arg9[%c0_14, %c0_15] : memref<8x128xf32, #tpu.memory_space<vmem>>, vector<8x128xf32>
    %c0_16 = arith.constant 0 : index
    %c0_17 = arith.constant 0 : index
    %c0_18 = arith.constant 0 : index
    %15 = vector.load %arg7[%c0_16, %c0_17, %c0_18] : memref<8x8x512xf32, #tpu.memory_space<vmem>>, vector<1x8x512xf32>
    %16 = vector.shape_cast %15 : vector<1x8x512xf32> to vector<8x512xf32>
    %cst_19 = arith.constant dense<0.000000e+00> : vector<8x512xf32>
    %17 = tpu.matmul %13, %12, %cst_19 {dimension_numbers = #tpu.dot_dimension_numbers<[1], [0], [0], [1], [0, 0, 1, 1], [], []>} : vector<8x128xf32>, vector<128x512xf32>, vector<8x512xf32> -> vector<8x512xf32>
    %18 = arith.addf %16, %17 : vector<8x512xf32>
    %19 = vector.extract_strided_slice %18 {offsets = [0, 0], sizes = [8, 128], strides = [1, 1]} : vector<8x512xf32> to vector<8x128xf32>
    %20 = arith.negf %19 : vector<8x128xf32>
    %21 = math.exp %20 : vector<8x128xf32>
    %cst_20 = arith.constant 1.000000e+00 : f32
    %22 = vector.broadcast %cst_20 : f32 to vector<8x128xf32>
    %23 = arith.addf %22, %21 : vector<8x128xf32>
    %24 = arith.divf %22, %23 : vector<8x128xf32>
    %25 = vector.extract_strided_slice %18 {offsets = [0, 128], sizes = [8, 128], strides = [1, 1]} : vector<8x512xf32> to vector<8x128xf32>
    %26 = arith.negf %25 : vector<8x128xf32>
    %27 = math.exp %26 : vector<8x128xf32>
    %cst_21 = arith.constant 1.000000e+00 : f32
    %28 = vector.broadcast %cst_21 : f32 to vector<8x128xf32>
    %29 = arith.addf %28, %27 : vector<8x128xf32>
    %30 = arith.divf %28, %29 : vector<8x128xf32>
    %31 = vector.extract_strided_slice %18 {offsets = [0, 256], sizes = [8, 128], strides = [1, 1]} : vector<8x512xf32> to vector<8x128xf32>
    %32 = math.tanh %31 : vector<8x128xf32>
    %33 = vector.extract_strided_slice %18 {offsets = [0, 384], sizes = [8, 128], strides = [1, 1]} : vector<8x512xf32> to vector<8x128xf32>
    %34 = arith.negf %33 : vector<8x128xf32>
    %35 = math.exp %34 : vector<8x128xf32>
    %cst_22 = arith.constant 1.000000e+00 : f32
    %36 = vector.broadcast %cst_22 : f32 to vector<8x128xf32>
    %37 = arith.addf %36, %35 : vector<8x128xf32>
    %38 = arith.divf %36, %37 : vector<8x128xf32>
    %39 = arith.mulf %30, %14 : vector<8x128xf32>
    %40 = arith.mulf %24, %32 : vector<8x128xf32>
    %41 = arith.addf %39, %40 : vector<8x128xf32>
    %42 = math.tanh %41 : vector<8x128xf32>
    %43 = arith.mulf %38, %42 : vector<8x128xf32>
    %c0_23 = arith.constant 0 : index
    %c0_24 = arith.constant 0 : index
    %c0_25 = arith.constant 0 : index
    %44 = vector.load %arg6[%c0_23, %c0_24, %c0_25] : memref<8x8x128xf32, #tpu.memory_space<vmem>>, vector<8x1x128xf32>
    %45 = vector.shape_cast %44 : vector<8x1x128xf32> to vector<8x128xf32>
    %46 = vector.shape_cast %43 : vector<8x128xf32> to vector<8x1x128xf32>
    tpu.vector_store %arg6[%c0_23, %c0_24, %c0_25], %46 {strides = array<i32>} : memref<8x8x128xf32, #tpu.memory_space<vmem>>, vector<8x1x128xf32>,
    %c1 = arith.constant 1 : index
    %c0_26 = arith.constant 0 : index
    %c0_27 = arith.constant 0 : index
    %47 = vector.load %arg7[%c1, %c0_26, %c0_27] : memref<8x8x512xf32, #tpu.memory_space<vmem>>, vector<1x8x512xf32>
    %48 = vector.shape_cast %47 : vector<1x8x512xf32> to vector<8x512xf32>
    %cst_28 = arith.constant dense<0.000000e+00> : vector<8x512xf32>
    %49 = tpu.matmul %43, %12, %cst_28 {dimension_numbers = #tpu.dot_dimension_numbers<[1], [0], [0], [1], [0, 0, 1, 1], [], []>} : vector<8x128xf32>, vector<128x512xf32>, vector<8x512xf32> -> vector<8x512xf32>
    %50 = arith.addf %48, %49 : vector<8x512xf32>
    %51 = vector.extract_strided_slice %50 {offsets = [0, 0], sizes = [8, 128], strides = [1, 1]} : vector<8x512xf32> to vector<8x128xf32>
    %52 = arith.negf %51 : vector<8x128xf32>
    %53 = math.exp %52 : vector<8x128xf32>
    %cst_29 = arith.constant 1.000000e+00 : f32
    %54 = vector.broadcast %cst_29 : f32 to vector<8x128xf32>
    %55 = arith.addf %54, %53 : vector<8x128xf32>
    %56 = arith.divf %54, %55 : vector<8x128xf32>
    %57 = vector.extract_strided_slice %50 {offsets = [0, 128], sizes = [8, 128], strides = [1, 1]} : vector<8x512xf32> to vector<8x128xf32>
    %58 = arith.negf %57 : vector<8x128xf32>
    %59 = math.exp %58 : vector<8x128xf32>
    %cst_30 = arith.constant 1.000000e+00 : f32
    %60 = vector.broadcast %cst_30 : f32 to vector<8x128xf32>
    %61 = arith.addf %60, %59 : vector<8x128xf32>
    %62 = arith.divf %60, %61 : vector<8x128xf32>
    %63 = vector.extract_strided_slice %50 {offsets = [0, 256], sizes = [8, 128], strides = [1, 1]} : vector<8x512xf32> to vector<8x128xf32>
    %64 = math.tanh %63 : vector<8x128xf32>
    %65 = vector.extract_strided_slice %50 {offsets = [0, 384], sizes = [8, 128], strides = [1, 1]} : vector<8x512xf32> to vector<8x128xf32>
    %66 = arith.negf %65 : vector<8x128xf32>
    %67 = math.exp %66 : vector<8x128xf32>
    %cst_31 = arith.constant 1.000000e+00 : f32
    %68 = vector.broadcast %cst_31 : f32 to vector<8x128xf32>
    %69 = arith.addf %68, %67 : vector<8x128xf32>
    %70 = arith.divf %68, %69 : vector<8x128xf32>
    %71 = arith.mulf %62, %41 : vector<8x128xf32>
    %72 = arith.mulf %56, %64 : vector<8x128xf32>
    %73 = arith.addf %71, %72 : vector<8x128xf32>
    %74 = math.tanh %73 : vector<8x128xf32>
    %75 = arith.mulf %70, %74 : vector<8x128xf32>
    %c0_32 = arith.constant 0 : index
    %c1_33 = arith.constant 1 : index
    %c0_34 = arith.constant 0 : index
    %76 = vector.load %arg6[%c0_32, %c1_33, %c0_34] : memref<8x8x128xf32, #tpu.memory_space<vmem>>, vector<8x1x128xf32>
    %77 = vector.shape_cast %76 : vector<8x1x128xf32> to vector<8x128xf32>
    %78 = vector.shape_cast %75 : vector<8x128xf32> to vector<8x1x128xf32>
    tpu.vector_store %arg6[%c0_32, %c1_33, %c0_34], %78 {strides = array<i32>} : memref<8x8x128xf32, #tpu.memory_space<vmem>>, vector<8x1x128xf32>,
    %c2 = arith.constant 2 : index
    %c0_35 = arith.constant 0 : index
    %c0_36 = arith.constant 0 : index
    %79 = vector.load %arg7[%c2, %c0_35, %c0_36] : memref<8x8x512xf32, #tpu.memory_space<vmem>>, vector<1x8x512xf32>
    %80 = vector.shape_cast %79 : vector<1x8x512xf32> to vector<8x512xf32>
    %cst_37 = arith.constant dense<0.000000e+00> : vector<8x512xf32>
    %81 = tpu.matmul %75, %12, %cst_37 {dimension_numbers = #tpu.dot_dimension_numbers<[1], [0], [0], [1], [0, 0, 1, 1], [], []>} : vector<8x128xf32>, vector<128x512xf32>, vector<8x512xf32> -> vector<8x512xf32>
    %82 = arith.addf %80, %81 : vector<8x512xf32>
    %83 = vector.extract_strided_slice %82 {offsets = [0, 0], sizes = [8, 128], strides = [1, 1]} : vector<8x512xf32> to vector<8x128xf32>
    %84 = arith.negf %83 : vector<8x128xf32>
    %85 = math.exp %84 : vector<8x128xf32>
    %cst_38 = arith.constant 1.000000e+00 : f32
    %86 = vector.broadcast %cst_38 : f32 to vector<8x128xf32>
    %87 = arith.addf %86, %85 : vector<8x128xf32>
    %88 = arith.divf %86, %87 : vector<8x128xf32>
    %89 = vector.extract_strided_slice %82 {offsets = [0, 128], sizes = [8, 128], strides = [1, 1]} : vector<8x512xf32> to vector<8x128xf32>
    %90 = arith.negf %89 : vector<8x128xf32>
    %91 = math.exp %90 : vector<8x128xf32>
    %cst_39 = arith.constant 1.000000e+00 : f32
    %92 = vector.broadcast %cst_39 : f32 to vector<8x128xf32>
    %93 = arith.addf %92, %91 : vector<8x128xf32>
    %94 = arith.divf %92, %93 : vector<8x128xf32>
    %95 = vector.extract_strided_slice %82 {offsets = [0, 256], sizes = [8, 128], strides = [1, 1]} : vector<8x512xf32> to vector<8x128xf32>
    %96 = math.tanh %95 : vector<8x128xf32>
    %97 = vector.extract_strided_slice %82 {offsets = [0, 384], sizes = [8, 128], strides = [1, 1]} : vector<8x512xf32> to vector<8x128xf32>
    %98 = arith.negf %97 : vector<8x128xf32>
    %99 = math.exp %98 : vector<8x128xf32>
    %cst_40 = arith.constant 1.000000e+00 : f32
    %100 = vector.broadcast %cst_40 : f32 to vector<8x128xf32>
    %101 = arith.addf %100, %99 : vector<8x128xf32>
    %102 = arith.divf %100, %101 : vector<8x128xf32>
    %103 = arith.mulf %94, %73 : vector<8x128xf32>
    %104 = arith.mulf %88, %96 : vector<8x128xf32>
    %105 = arith.addf %103, %104 : vector<8x128xf32>
    %106 = math.tanh %105 : vector<8x128xf32>
    %107 = arith.mulf %102, %106 : vector<8x128xf32>
    %c0_41 = arith.constant 0 : index
    %c2_42 = arith.constant 2 : index
    %c0_43 = arith.constant 0 : index
    %108 = vector.load %arg6[%c0_41, %c2_42, %c0_43] : memref<8x8x128xf32, #tpu.memory_space<vmem>>, vector<8x1x128xf32>
    %109 = vector.shape_cast %108 : vector<8x1x128xf32> to vector<8x128xf32>
    %110 = vector.shape_cast %107 : vector<8x128xf32> to vector<8x1x128xf32>
    tpu.vector_store %arg6[%c0_41, %c2_42, %c0_43], %110 {strides = array<i32>} : memref<8x8x128xf32, #tpu.memory_space<vmem>>, vector<8x1x128xf32>,
    %c3 = arith.constant 3 : index
    %c0_44 = arith.constant 0 : index
    %c0_45 = arith.constant 0 : index
    %111 = vector.load %arg7[%c3, %c0_44, %c0_45] : memref<8x8x512xf32, #tpu.memory_space<vmem>>, vector<1x8x512xf32>
    %112 = vector.shape_cast %111 : vector<1x8x512xf32> to vector<8x512xf32>
    %cst_46 = arith.constant dense<0.000000e+00> : vector<8x512xf32>
    %113 = tpu.matmul %107, %12, %cst_46 {dimension_numbers = #tpu.dot_dimension_numbers<[1], [0], [0], [1], [0, 0, 1, 1], [], []>} : vector<8x128xf32>, vector<128x512xf32>, vector<8x512xf32> -> vector<8x512xf32>
    %114 = arith.addf %112, %113 : vector<8x512xf32>
    %115 = vector.extract_strided_slice %114 {offsets = [0, 0], sizes = [8, 128], strides = [1, 1]} : vector<8x512xf32> to vector<8x128xf32>
    %116 = arith.negf %115 : vector<8x128xf32>
    %117 = math.exp %116 : vector<8x128xf32>
    %cst_47 = arith.constant 1.000000e+00 : f32
    %118 = vector.broadcast %cst_47 : f32 to vector<8x128xf32>
    %119 = arith.addf %118, %117 : vector<8x128xf32>
    %120 = arith.divf %118, %119 : vector<8x128xf32>
    %121 = vector.extract_strided_slice %114 {offsets = [0, 128], sizes = [8, 128], strides = [1, 1]} : vector<8x512xf32> to vector<8x128xf32>
    %122 = arith.negf %121 : vector<8x128xf32>
    %123 = math.exp %122 : vector<8x128xf32>
    %cst_48 = arith.constant 1.000000e+00 : f32
    %124 = vector.broadcast %cst_48 : f32 to vector<8x128xf32>
    %125 = arith.addf %124, %123 : vector<8x128xf32>
    %126 = arith.divf %124, %125 : vector<8x128xf32>
    %127 = vector.extract_strided_slice %114 {offsets = [0, 256], sizes = [8, 128], strides = [1, 1]} : vector<8x512xf32> to vector<8x128xf32>
    %128 = math.tanh %127 : vector<8x128xf32>
    %129 = vector.extract_strided_slice %114 {offsets = [0, 384], sizes = [8, 128], strides = [1, 1]} : vector<8x512xf32> to vector<8x128xf32>
    %130 = arith.negf %129 : vector<8x128xf32>
    %131 = math.exp %130 : vector<8x128xf32>
    %cst_49 = arith.constant 1.000000e+00 : f32
    %132 = vector.broadcast %cst_49 : f32 to vector<8x128xf32>
    %133 = arith.addf %132, %131 : vector<8x128xf32>
    %134 = arith.divf %132, %133 : vector<8x128xf32>
    %135 = arith.mulf %126, %105 : vector<8x128xf32>
    %136 = arith.mulf %120, %128 : vector<8x128xf32>
    %137 = arith.addf %135, %136 : vector<8x128xf32>
    %138 = math.tanh %137 : vector<8x128xf32>
    %139 = arith.mulf %134, %138 : vector<8x128xf32>
    %c0_50 = arith.constant 0 : index
    %c3_51 = arith.constant 3 : index
    %c0_52 = arith.constant 0 : index
    %140 = vector.load %arg6[%c0_50, %c3_51, %c0_52] : memref<8x8x128xf32, #tpu.memory_space<vmem>>, vector<8x1x128xf32>
    %141 = vector.shape_cast %140 : vector<8x1x128xf32> to vector<8x128xf32>
    %142 = vector.shape_cast %139 : vector<8x128xf32> to vector<8x1x128xf32>
    tpu.vector_store %arg6[%c0_50, %c3_51, %c0_52], %142 {strides = array<i32>} : memref<8x8x128xf32, #tpu.memory_space<vmem>>, vector<8x1x128xf32>,
    %c4 = arith.constant 4 : index
    %c0_53 = arith.constant 0 : index
    %c0_54 = arith.constant 0 : index
    %143 = vector.load %arg7[%c4, %c0_53, %c0_54] : memref<8x8x512xf32, #tpu.memory_space<vmem>>, vector<1x8x512xf32>
    %144 = vector.shape_cast %143 : vector<1x8x512xf32> to vector<8x512xf32>
    %cst_55 = arith.constant dense<0.000000e+00> : vector<8x512xf32>
    %145 = tpu.matmul %139, %12, %cst_55 {dimension_numbers = #tpu.dot_dimension_numbers<[1], [0], [0], [1], [0, 0, 1, 1], [], []>} : vector<8x128xf32>, vector<128x512xf32>, vector<8x512xf32> -> vector<8x512xf32>
    %146 = arith.addf %144, %145 : vector<8x512xf32>
    %147 = vector.extract_strided_slice %146 {offsets = [0, 0], sizes = [8, 128], strides = [1, 1]} : vector<8x512xf32> to vector<8x128xf32>
    %148 = arith.negf %147 : vector<8x128xf32>
    %149 = math.exp %148 : vector<8x128xf32>
    %cst_56 = arith.constant 1.000000e+00 : f32
    %150 = vector.broadcast %cst_56 : f32 to vector<8x128xf32>
    %151 = arith.addf %150, %149 : vector<8x128xf32>
    %152 = arith.divf %150, %151 : vector<8x128xf32>
    %153 = vector.extract_strided_slice %146 {offsets = [0, 128], sizes = [8, 128], strides = [1, 1]} : vector<8x512xf32> to vector<8x128xf32>
    %154 = arith.negf %153 : vector<8x128xf32>
    %155 = math.exp %154 : vector<8x128xf32>
    %cst_57 = arith.constant 1.000000e+00 : f32
    %156 = vector.broadcast %cst_57 : f32 to vector<8x128xf32>
    %157 = arith.addf %156, %155 : vector<8x128xf32>
    %158 = arith.divf %156, %157 : vector<8x128xf32>
    %159 = vector.extract_strided_slice %146 {offsets = [0, 256], sizes = [8, 128], strides = [1, 1]} : vector<8x512xf32> to vector<8x128xf32>
    %160 = math.tanh %159 : vector<8x128xf32>
    %161 = vector.extract_strided_slice %146 {offsets = [0, 384], sizes = [8, 128], strides = [1, 1]} : vector<8x512xf32> to vector<8x128xf32>
    %162 = arith.negf %161 : vector<8x128xf32>
    %163 = math.exp %162 : vector<8x128xf32>
    %cst_58 = arith.constant 1.000000e+00 : f32
    %164 = vector.broadcast %cst_58 : f32 to vector<8x128xf32>
    %165 = arith.addf %164, %163 : vector<8x128xf32>
    %166 = arith.divf %164, %165 : vector<8x128xf32>
    %167 = arith.mulf %158, %137 : vector<8x128xf32>
    %168 = arith.mulf %152, %160 : vector<8x128xf32>
    %169 = arith.addf %167, %168 : vector<8x128xf32>
    %170 = math.tanh %169 : vector<8x128xf32>
    %171 = arith.mulf %166, %170 : vector<8x128xf32>
    %c0_59 = arith.constant 0 : index
    %c4_60 = arith.constant 4 : index
    %c0_61 = arith.constant 0 : index
    %172 = vector.load %arg6[%c0_59, %c4_60, %c0_61] : memref<8x8x128xf32, #tpu.memory_space<vmem>>, vector<8x1x128xf32>
    %173 = vector.shape_cast %172 : vector<8x1x128xf32> to vector<8x128xf32>
    %174 = vector.shape_cast %171 : vector<8x128xf32> to vector<8x1x128xf32>
    tpu.vector_store %arg6[%c0_59, %c4_60, %c0_61], %174 {strides = array<i32>} : memref<8x8x128xf32, #tpu.memory_space<vmem>>, vector<8x1x128xf32>,
    %c5 = arith.constant 5 : index
    %c0_62 = arith.constant 0 : index
    %c0_63 = arith.constant 0 : index
    %175 = vector.load %arg7[%c5, %c0_62, %c0_63] : memref<8x8x512xf32, #tpu.memory_space<vmem>>, vector<1x8x512xf32>
    %176 = vector.shape_cast %175 : vector<1x8x512xf32> to vector<8x512xf32>
    %cst_64 = arith.constant dense<0.000000e+00> : vector<8x512xf32>
    %177 = tpu.matmul %171, %12, %cst_64 {dimension_numbers = #tpu.dot_dimension_numbers<[1], [0], [0], [1], [0, 0, 1, 1], [], []>} : vector<8x128xf32>, vector<128x512xf32>, vector<8x512xf32> -> vector<8x512xf32>
    %178 = arith.addf %176, %177 : vector<8x512xf32>
    %179 = vector.extract_strided_slice %178 {offsets = [0, 0], sizes = [8, 128], strides = [1, 1]} : vector<8x512xf32> to vector<8x128xf32>
    %180 = arith.negf %179 : vector<8x128xf32>
    %181 = math.exp %180 : vector<8x128xf32>
    %cst_65 = arith.constant 1.000000e+00 : f32
    %182 = vector.broadcast %cst_65 : f32 to vector<8x128xf32>
    %183 = arith.addf %182, %181 : vector<8x128xf32>
    %184 = arith.divf %182, %183 : vector<8x128xf32>
    %185 = vector.extract_strided_slice %178 {offsets = [0, 128], sizes = [8, 128], strides = [1, 1]} : vector<8x512xf32> to vector<8x128xf32>
    %186 = arith.negf %185 : vector<8x128xf32>
    %187 = math.exp %186 : vector<8x128xf32>
    %cst_66 = arith.constant 1.000000e+00 : f32
    %188 = vector.broadcast %cst_66 : f32 to vector<8x128xf32>
    %189 = arith.addf %188, %187 : vector<8x128xf32>
    %190 = arith.divf %188, %189 : vector<8x128xf32>
    %191 = vector.extract_strided_slice %178 {offsets = [0, 256], sizes = [8, 128], strides = [1, 1]} : vector<8x512xf32> to vector<8x128xf32>
    %192 = math.tanh %191 : vector<8x128xf32>
    %193 = vector.extract_strided_slice %178 {offsets = [0, 384], sizes = [8, 128], strides = [1, 1]} : vector<8x512xf32> to vector<8x128xf32>
    %194 = arith.negf %193 : vector<8x128xf32>
    %195 = math.exp %194 : vector<8x128xf32>
    %cst_67 = arith.constant 1.000000e+00 : f32
    %196 = vector.broadcast %cst_67 : f32 to vector<8x128xf32>
    %197 = arith.addf %196, %195 : vector<8x128xf32>
    %198 = arith.divf %196, %197 : vector<8x128xf32>
    %199 = arith.mulf %190, %169 : vector<8x128xf32>
    %200 = arith.mulf %184, %192 : vector<8x128xf32>
    %201 = arith.addf %199, %200 : vector<8x128xf32>
    %202 = math.tanh %201 : vector<8x128xf32>
    %203 = arith.mulf %198, %202 : vector<8x128xf32>
    %c0_68 = arith.constant 0 : index
    %c5_69 = arith.constant 5 : index
    %c0_70 = arith.constant 0 : index
    %204 = vector.load %arg6[%c0_68, %c5_69, %c0_70] : memref<8x8x128xf32, #tpu.memory_space<vmem>>, vector<8x1x128xf32>
    %205 = vector.shape_cast %204 : vector<8x1x128xf32> to vector<8x128xf32>
    %206 = vector.shape_cast %203 : vector<8x128xf32> to vector<8x1x128xf32>
    tpu.vector_store %arg6[%c0_68, %c5_69, %c0_70], %206 {strides = array<i32>} : memref<8x8x128xf32, #tpu.memory_space<vmem>>, vector<8x1x128xf32>,
    %c6 = arith.constant 6 : index
    %c0_71 = arith.constant 0 : index
    %c0_72 = arith.constant 0 : index
    %207 = vector.load %arg7[%c6, %c0_71, %c0_72] : memref<8x8x512xf32, #tpu.memory_space<vmem>>, vector<1x8x512xf32>
    %208 = vector.shape_cast %207 : vector<1x8x512xf32> to vector<8x512xf32>
    %cst_73 = arith.constant dense<0.000000e+00> : vector<8x512xf32>
    %209 = tpu.matmul %203, %12, %cst_73 {dimension_numbers = #tpu.dot_dimension_numbers<[1], [0], [0], [1], [0, 0, 1, 1], [], []>} : vector<8x128xf32>, vector<128x512xf32>, vector<8x512xf32> -> vector<8x512xf32>
    %210 = arith.addf %208, %209 : vector<8x512xf32>
    %211 = vector.extract_strided_slice %210 {offsets = [0, 0], sizes = [8, 128], strides = [1, 1]} : vector<8x512xf32> to vector<8x128xf32>
    %212 = arith.negf %211 : vector<8x128xf32>
    %213 = math.exp %212 : vector<8x128xf32>
    %cst_74 = arith.constant 1.000000e+00 : f32
    %214 = vector.broadcast %cst_74 : f32 to vector<8x128xf32>
    %215 = arith.addf %214, %213 : vector<8x128xf32>
    %216 = arith.divf %214, %215 : vector<8x128xf32>
    %217 = vector.extract_strided_slice %210 {offsets = [0, 128], sizes = [8, 128], strides = [1, 1]} : vector<8x512xf32> to vector<8x128xf32>
    %218 = arith.negf %217 : vector<8x128xf32>
    %219 = math.exp %218 : vector<8x128xf32>
    %cst_75 = arith.constant 1.000000e+00 : f32
    %220 = vector.broadcast %cst_75 : f32 to vector<8x128xf32>
    %221 = arith.addf %220, %219 : vector<8x128xf32>
    %222 = arith.divf %220, %221 : vector<8x128xf32>
    %223 = vector.extract_strided_slice %210 {offsets = [0, 256], sizes = [8, 128], strides = [1, 1]} : vector<8x512xf32> to vector<8x128xf32>
    %224 = math.tanh %223 : vector<8x128xf32>
    %225 = vector.extract_strided_slice %210 {offsets = [0, 384], sizes = [8, 128], strides = [1, 1]} : vector<8x512xf32> to vector<8x128xf32>
    %226 = arith.negf %225 : vector<8x128xf32>
    %227 = math.exp %226 : vector<8x128xf32>
    %cst_76 = arith.constant 1.000000e+00 : f32
    %228 = vector.broadcast %cst_76 : f32 to vector<8x128xf32>
    %229 = arith.addf %228, %227 : vector<8x128xf32>
    %230 = arith.divf %228, %229 : vector<8x128xf32>
    %231 = arith.mulf %222, %201 : vector<8x128xf32>
    %232 = arith.mulf %216, %224 : vector<8x128xf32>
    %233 = arith.addf %231, %232 : vector<8x128xf32>
    %234 = math.tanh %233 : vector<8x128xf32>
    %235 = arith.mulf %230, %234 : vector<8x128xf32>
    %c0_77 = arith.constant 0 : index
    %c6_78 = arith.constant 6 : index
    %c0_79 = arith.constant 0 : index
    %236 = vector.load %arg6[%c0_77, %c6_78, %c0_79] : memref<8x8x128xf32, #tpu.memory_space<vmem>>, vector<8x1x128xf32>
    %237 = vector.shape_cast %236 : vector<8x1x128xf32> to vector<8x128xf32>
    %238 = vector.shape_cast %235 : vector<8x128xf32> to vector<8x1x128xf32>
    tpu.vector_store %arg6[%c0_77, %c6_78, %c0_79], %238 {strides = array<i32>} : memref<8x8x128xf32, #tpu.memory_space<vmem>>, vector<8x1x128xf32>,
    %c7 = arith.constant 7 : index
    %c0_80 = arith.constant 0 : index
    %c0_81 = arith.constant 0 : index
    %239 = vector.load %arg7[%c7, %c0_80, %c0_81] : memref<8x8x512xf32, #tpu.memory_space<vmem>>, vector<1x8x512xf32>
    %240 = vector.shape_cast %239 : vector<1x8x512xf32> to vector<8x512xf32>
    %cst_82 = arith.constant dense<0.000000e+00> : vector<8x512xf32>
    %241 = tpu.matmul %235, %12, %cst_82 {dimension_numbers = #tpu.dot_dimension_numbers<[1], [0], [0], [1], [0, 0, 1, 1], [], []>} : vector<8x128xf32>, vector<128x512xf32>, vector<8x512xf32> -> vector<8x512xf32>
    %242 = arith.addf %240, %241 : vector<8x512xf32>
    %243 = vector.extract_strided_slice %242 {offsets = [0, 0], sizes = [8, 128], strides = [1, 1]} : vector<8x512xf32> to vector<8x128xf32>
    %244 = arith.negf %243 : vector<8x128xf32>
    %245 = math.exp %244 : vector<8x128xf32>
    %cst_83 = arith.constant 1.000000e+00 : f32
    %246 = vector.broadcast %cst_83 : f32 to vector<8x128xf32>
    %247 = arith.addf %246, %245 : vector<8x128xf32>
    %248 = arith.divf %246, %247 : vector<8x128xf32>
    %249 = vector.extract_strided_slice %242 {offsets = [0, 128], sizes = [8, 128], strides = [1, 1]} : vector<8x512xf32> to vector<8x128xf32>
    %250 = arith.negf %249 : vector<8x128xf32>
    %251 = math.exp %250 : vector<8x128xf32>
    %cst_84 = arith.constant 1.000000e+00 : f32
    %252 = vector.broadcast %cst_84 : f32 to vector<8x128xf32>
    %253 = arith.addf %252, %251 : vector<8x128xf32>
    %254 = arith.divf %252, %253 : vector<8x128xf32>
    %255 = vector.extract_strided_slice %242 {offsets = [0, 256], sizes = [8, 128], strides = [1, 1]} : vector<8x512xf32> to vector<8x128xf32>
    %256 = math.tanh %255 : vector<8x128xf32>
    %257 = vector.extract_strided_slice %242 {offsets = [0, 384], sizes = [8, 128], strides = [1, 1]} : vector<8x512xf32> to vector<8x128xf32>
    %258 = arith.negf %257 : vector<8x128xf32>
    %259 = math.exp %258 : vector<8x128xf32>
    %cst_85 = arith.constant 1.000000e+00 : f32
    %260 = vector.broadcast %cst_85 : f32 to vector<8x128xf32>
    %261 = arith.addf %260, %259 : vector<8x128xf32>
    %262 = arith.divf %260, %261 : vector<8x128xf32>
    %263 = arith.mulf %254, %233 : vector<8x128xf32>
    %264 = arith.mulf %248, %256 : vector<8x128xf32>
    %265 = arith.addf %263, %264 : vector<8x128xf32>
    %266 = math.tanh %265 : vector<8x128xf32>
    %267 = arith.mulf %262, %266 : vector<8x128xf32>
    %c0_86 = arith.constant 0 : index
    %c7_87 = arith.constant 7 : index
    %c0_88 = arith.constant 0 : index
    %268 = vector.load %arg6[%c0_86, %c7_87, %c0_88] : memref<8x8x128xf32, #tpu.memory_space<vmem>>, vector<8x1x128xf32>
    %269 = vector.shape_cast %268 : vector<8x1x128xf32> to vector<8x128xf32>
    %270 = vector.shape_cast %267 : vector<8x128xf32> to vector<8x1x128xf32>
    tpu.vector_store %arg6[%c0_86, %c7_87, %c0_88], %270 {strides = array<i32>} : memref<8x8x128xf32, #tpu.memory_space<vmem>>, vector<8x1x128xf32>,
    %c0_89 = arith.constant 0 : index
    %c0_90 = arith.constant 0 : index
    %271 = vector.load %arg8[%c0_89, %c0_90] : memref<8x128xf32, #tpu.memory_space<vmem>>, vector<8x128xf32>
    tpu.vector_store %arg8[%c0_89, %c0_90], %267 {strides = array<i32>} : memref<8x128xf32, #tpu.memory_space<vmem>>, vector<8x128xf32>,
    %c0_91 = arith.constant 0 : index
    %c0_92 = arith.constant 0 : index
    %272 = vector.load %arg9[%c0_91, %c0_92] : memref<8x128xf32, #tpu.memory_space<vmem>>, vector<8x128xf32>
    tpu.vector_store %arg9[%c0_91, %c0_92], %265 {strides = array<i32>} : memref<8x128xf32, #tpu.memory_space<vmem>>, vector<8x128xf32>,
    return
  }
  func.func @transform_0(%arg0: i32, %arg1: i32) -> (i32, i32, i32) {
    %c0_i32 = arith.constant 0 : i32
    %c0_i32_0 = arith.constant 0 : i32
    return %arg1, %arg0, %c0_i32 : i32, i32, i32
  }
  func.func @transform_1(%arg0: i32, %arg1: i32) -> (i32, i32) {
    %c0_i32 = arith.constant 0 : i32
    %c0_i32_0 = arith.constant 0 : i32
    %c0_i32_1 = arith.constant 0 : i32
    return %c0_i32, %c0_i32_0 : i32, i32
  }
  func.func @transform_2(%arg0: i32, %arg1: i32) -> (i32, i32) {
    %c0_i32 = arith.constant 0 : i32
    %c0_i32_0 = arith.constant 0 : i32
    %c0_i32_1 = arith.constant 0 : i32
    return %c0_i32, %c0_i32_0 : i32, i32
  }
  func.func @transform_3(%arg0: i32, %arg1: i32) -> (i32, i32) {
    %c0_i32 = arith.constant 0 : i32
    %c0_i32_0 = arith.constant 0 : i32
    %c0_i32_1 = arith.constant 0 : i32
    return %c0_i32, %c0_i32_0 : i32, i32
  }
  func.func @transform_4(%arg0: i32, %arg1: i32) -> (i32, i32, i32) {
    %c0_i32 = arith.constant 0 : i32
    %c0_i32_0 = arith.constant 0 : i32
    return %arg0, %arg1, %c0_i32 : i32, i32, i32
  }
}

</mosaic_0001>

<bundles_post_ra>
// kernel: tpu_custom_call.1
= control target key start
LH: loop header
LB: loop body
LE: loop exit
PB: predicated region body
PF: predicated region fallthrough
CT: control target
= control target key end

     0   :  { %9 = vsyncpa [#allocation6], 0  ;;  %s3881_s0 = inlined_call_operand.hbm [shape: f32[8,8,32], index: 0, kind: input, shape index: {}]   ;;  %s3882_s1 = inlined_call_operand.hbm [shape: f32[32,512], index: 1, kind: input, shape index: {}]   ;;  %s3883_s2 = inlined_call_operand.hbm [shape: f32[1,512], index: 2, kind: input, shape index: {}]   ;;  %s3884_s3 = inlined_call_operand.hbm [shape: f32[128,512], index: 3, kind: input, shape index: {}]   ;;  %s3885_s4 = inlined_call_operand.hbm [shape: f32[8,8,128], index: 4, kind: output, shape index: {}]  }
   0x1   :  { %10 = vsyncpa [#allocation9], 0 }
   0x2   :  { %11 = vsyncpa [#allocation12], 0 }
   0x3   :  { %12 = vsyncpa [#allocation7], 0  ;;  %s2803_s15 = smov [#allocation8]  }
   0x4   :  { %s30_s16 = sshll.u32 %s2803_s15, 4  ;;  %s31_s16 = int_to_ptr.vmem [resolvable:$true] %s30_s16 }
   0x5   :  { %s2703_s17 = scalar_lea.vmem %s31_s16, 2048  ;;  %p2708_p1 = scmp.lt.s32.totalorder %s31_s16, %s31_s16 }
   0x6   :  { %p2704_p0 = scmp.ne.s32.totalorder %s31_s16, %s2703_s17  ;;  %p2709_p2 = scmp.lt.s32.totalorder %s2703_s17, %s2703_s17 }
   0x8   :  { %p2710_p3 = por %p2709_p2, %p2708_p1 }
   0xa   :  { %p2711_p4 = pnand %p2710_p3, %p2704_p0 }
   0xc   :  { %2714 = shalt.err (!%p2711_p4)
}
   0xd   :  { %s2804_s18 = smov 512   ;;  %s2805_s19 = smov 32  }
   0xe   :  { %36 = dma.hbm_to_vmem [thread:$0]  %s3882_s1, 2048, %s31_s16, [#allocation9], %s2804_s18, %s2804_s18, %s2805_s19  }
   0xf   :  { %s2806_s22 = smov [#allocation5]  }
  0x10   :  { %s18_s23 = sshll.u32 %s2806_s22, 4  ;;  %s19_s23 = int_to_ptr.vmem [resolvable:$true] %s18_s23 }
  0x11   :  { %s2723_s24 = scalar_lea.vmem %s19_s23, 1024  ;;  %p2728_p6 = scmp.lt.s32.totalorder %s19_s23, %s19_s23 }
  0x12   :  { %p2724_p5 = scmp.ne.s32.totalorder %s19_s23, %s2723_s24  ;;  %p2729_p7 = scmp.lt.s32.totalorder %s2723_s24, %s2723_s24 }
  0x14   :  { %p2730_p8 = por %p2729_p7, %p2728_p6 }
  0x16   :  { %p2731_p9 = pnand %p2730_p8, %p2724_p5 }
  0x18   :  { %2734 = shalt.err (!%p2731_p9)
}
  0x19   :  { %s2807_s25 = smov 128   ;;  %s2808_s26 = smov 8  }
  0x1a   :  { %24 = dma.hbm_to_vmem [thread:$0]  %s3881_s0, 1024, %s19_s23, [#allocation6], %s2807_s25, %s2807_s25, %s2808_s26  }
  0x1b   :  { %s2809_s1 = smov [#allocation10]   ;;  %s2810_s30 = smov [#allocation11]  }
  0x1c   :  { %s43_s29 = sshll.u32 %s2809_s1, 4  ;;  %s52_s5 = sshll.u32 %s2810_s30, 4  ;;  %s44_s29 = int_to_ptr.vmem [resolvable:$true] %s43_s29  ;;  %s53_s5 = int_to_ptr.vmem [resolvable:$true] %s52_s5 }
  0x1d   :  { %s2743_s6 = scalar_lea.vmem %s44_s29, 64  ;;  %p2748_p11 = scmp.lt.s32.totalorder %s44_s29, %s44_s29 }
  0x1e   :  { %p2744_p10 = scmp.ne.s32.totalorder %s44_s29, %s2743_s6  ;;  %p2749_p12 = scmp.lt.s32.totalorder %s2743_s6, %s2743_s6 }
  0x20   :  { %p2750_p13 = por %p2749_p12, %p2748_p11 }
  0x22   :  { %p2751_p0 = pnand %p2750_p13, %p2744_p10 }
  0x24   :  { %2754 = shalt.err (!%p2751_p0)
}
  0x25   :  { %46 = dma.hbm_to_vmem [thread:$0]  %s3883_s2, 64, %s44_s29, [#allocation9]  }
  0x26   :  { %s2763_s9 = scalar_lea.vmem %s53_s5, 8192  ;;  %p2768_p2 = scmp.lt.s32.totalorder %s53_s5, %s53_s5 }
  0x27   :  { %p2764_p1 = scmp.ne.s32.totalorder %s53_s5, %s2763_s9  ;;  %p2769_p3 = scmp.lt.s32.totalorder %s2763_s9, %s2763_s9 }
  0x29   :  { %p2770_p4 = por %p2769_p3, %p2768_p2 }
  0x2b   :  { %p2771_p5 = pnand %p2770_p4, %p2764_p1 }
  0x2d   :  { %2774 = shalt.err (!%p2771_p5)
}
  0x2e   :  { %58 = dma.hbm_to_vmem [thread:$0]  %s3884_s3, 8192, %s53_s5, [#allocation12], %s2804_s18, %s2804_s18, %s2805_s19  }
  0x2f   :  { %2795 = dma.done.wait [#allocation6], 1024  }
  0x30   :  { %2796 = vsyncadd [#allocation6], 4294966272 }
  0x31   :  { %2797 = dma.done.wait [#allocation9], 2112  }
  0x32   :  { %2798 = vsyncadd [#allocation9], 4294965184 }
  0x33   :  { %2799 = dma.done.wait [#allocation12], 8192  }
  0x34   :  { %2800 = vsyncadd [#allocation12], 4294959104  ;;  %v3886_v0 = vmov 0.0   ;;  %v98_v1 = vld [vmem:[#allocation8 + $0x68] sm:$0xff]  ;;  %v100_v2 = vld [vmem:[#allocation8 + $0x78] sm:$0xff]  ;;  %vm123_vm0 = vcmask 261120  }
  0x35   :  { %212 = vmatprep.mubr.f32.mxu0 %v3886_v0  ;;  %325 = vmatprep.mubr.f32.mxu1 %v3886_v0  ;;  %v97_v3 = vld [vmem:[#allocation8 + $0x60] sm:$0xff]  ;;  %v99_v4 = vld [vmem:[#allocation8 + $0x70] sm:$0xff]  ;;  %v94_v5 = vld [vmem:[#allocation8 + $0x48] sm:$0xff]  ;;  %s2813_s2 = smov [#allocation13]  }
  0x36   :  { %172 = vmatprep.subr.mxu0 %v98_v1  ;;  %285 = vmatprep.subr.mxu1 %v100_v2  ;;  %v96_v6 = vld [vmem:[#allocation8 + $0x58] sm:$0xff]  ;;  %v93_v7 = vld [vmem:[#allocation8 + $0x40] sm:$0xff]  ;;  %v95_v8 = vld [vmem:[#allocation8 + $0x50] sm:$0xff]  ;;  %s2406_s3 = sshll.u32 %s2813_s2, 4  ;;  %s2407_s3 = int_to_ptr.vmem [resolvable:$true] %s2406_s3 }
  0x37   :  { %173 = vmatpush1.msra.mxu0 %v97_v3  ;;  %286 = vmatpush1.msra.mxu1 %v99_v4  ;;  %v90_v9 = vld [vmem:[#allocation8 + $0x28] sm:$0xff]  ;;  %v92_v10 = vld [vmem:[#allocation8 + $0x38] sm:$0xff]  ;;  %v89_v11 = vld [vmem:[#allocation8 + $0x20] sm:$0xff]  ;;  %s2775_s11 = scalar_lea.vmem %s2407_s3, 1024  ;;  %p2780_p7 = scmp.lt.s32.totalorder %s2407_s3, %s2407_s3 }
  0x38   :  { %174 = vmatprep.subr.mxu0 %v94_v5  ;;  %287 = vmatprep.subr.mxu1 %v96_v6  ;;  %v91_v12 = vld [vmem:[#allocation8 + $0x30] sm:$0xff]  ;;  %v86_v13 = vld [vmem:[#allocation8 + $0x8] sm:$0xff]  ;;  %v88_v14 = vld [vmem:[#allocation8 + $0x18] sm:$0xff]  ;;  %p2776_p6 = scmp.ne.s32.totalorder %s2407_s3, %s2775_s11  ;;  %p2781_p8 = scmp.lt.s32.totalorder %s2775_s11, %s2775_s11 }
  0x39   :  { %175 = vmatpush1.msra.mxu0 %v93_v7  ;;  %288 = vmatpush1.msra.mxu1 %v95_v8  ;;  %v85_v15 = vld [vmem:[#allocation8] sm:$0xff]  ;;  %v87_v16 = vld [vmem:[#allocation8 + $0x10] sm:$0xff]  ;;  %v78_v26 = vld [vmem:[#allocation5 + $0x8] sm:$0xff] }
  0x3a   :  { %176 = vmatprep.subr.mxu0 %v90_v9  ;;  %289 = vmatprep.subr.mxu1 %v92_v10  ;;  %v77_v17 = vld [vmem:[#allocation5] sm:$0xff]  ;;  %v2862_v18 = vld [vmem:[#allocation11 + $0x1e8] sm:$0xff]  ;;  %v2868_v21 = vld [vmem:[#allocation11 + $0x1f0] sm:$0xff]  ;;  %p2782_p9 = por %p2781_p8, %p2780_p7 }
  0x3b   :  { %177 = vmatpush1.msra.mxu0 %v89_v11  ;;  %290 = vmatpush1.msra.mxu1 %v91_v12  ;;  %3977 = vst [vmem:[#allocation18_spill] sm:$0xff] %v2862_v18  ;;  %v2864_v19 = vld [vmem:[#allocation11 + $0x1f8] sm:$0xff]  ;;  %v2866_v20 = vld [vmem:[#allocation11 + $0x1e0] sm:$0xff]  ;;  %v2872_v22 = vld [vmem:[#allocation11 + $0x1c8] sm:$0xff] }
  0x3c   :  { %178 = vmatprep.subr.mxu0 %v86_v13  ;;  %291 = vmatprep.subr.mxu1 %v88_v14  ;;  %3978 = vst [vmem:[#allocation19_spill] sm:$0xff] %v2864_v19  ;;  %v2874_v23 = vld [vmem:[#allocation11 + $0x1d8] sm:$0xff]  ;;  %v2880_v24 = vld [vmem:[#allocation11 + $0x1c0] sm:$0xff]  ;;  %v2882_v25 = vld [vmem:[#allocation11 + $0x1d0] sm:$0xff]  ;;  %p2783_p10 = pnand %p2782_p9, %p2776_p6 }
  0x3d   :  { %179 = vmatpush1.msra.mxu0 %v85_v15  ;;  %292 = vmatpush1.msra.mxu1 %v87_v16  ;;  %v2888_v27 = vld [vmem:[#allocation11 + $0x1a8] sm:$0xff]  ;;  %v2890_v28 = vld [vmem:[#allocation11 + $0x1b8] sm:$0xff]  ;;  %v2894_v29 = vld [vmem:[#allocation11 + $0x1a0] sm:$0xff] }
  0x3e   :  { %2420 = vmatmul.mubr.msk.f32.vlgmr.msra.gmra.mxu0 %vm123_vm0, %v77_v17  ;;  %2428 = vmatmul.mubr.msk.f32.vlgmr.msra.gmra.mxu1 %vm123_vm0, %v77_v17  ;;  %v2896_v30 = vld [vmem:[#allocation11 + $0x1b0] sm:$0xff]  ;;  %v2900_v31 = vld [vmem:[#allocation11 + $0x188] sm:$0xff]  ;;  %v2902_v32 = vld [vmem:[#allocation11 + $0x198] sm:$0xff] }
  0x3f   :  { %476 = vmatprep.subr.mxu0 %v2862_v18  ;;  %547 = vmatprep.subr.mxu1 %v2864_v19  ;;  %v2908_v33 = vld [vmem:[#allocation11 + $0x180] sm:$0xff]  ;;  %v2910_v34 = vld [vmem:[#allocation11 + $0x190] sm:$0xff]  ;;  %v2916_v36 = vld [vmem:[#allocation11 + $0x168] sm:$0xff] }
  0x40   :  { %477 = vmatpush1.msra.mxu0 %v2866_v20  ;;  %548 = vmatpush1.msra.mxu1 %v2868_v21  ;;  %v79_v35 = vld [vmem:[#allocation5 + $0x10] sm:$0xff]  ;;  %v2918_v37 = vld [vmem:[#allocation11 + $0x178] sm:$0xff]  ;;  %v2922_v38 = vld [vmem:[#allocation11 + $0x160] sm:$0xff] }
  0x41   :  { %478 = vmatprep.subr.mxu0 %v2872_v22  ;;  %549 = vmatprep.subr.mxu1 %v2874_v23  ;;  %v2924_v39 = vld [vmem:[#allocation11 + $0x170] sm:$0xff]  ;;  %v2928_v40 = vld [vmem:[#allocation11 + $0x148] sm:$0xff]  ;;  %v2930_v41 = vld [vmem:[#allocation11 + $0x158] sm:$0xff] }
  0x42   :  { %218 = vmatprep.mubr.f32.mxu0 %v3886_v0  ;;  %331 = vmatprep.mubr.f32.mxu1 %v3886_v0  ;;  %v2936_v42 = vld [vmem:[#allocation11 + $0x140] sm:$0xff]  ;;  %v2938_v43 = vld [vmem:[#allocation11 + $0x150] sm:$0xff]  ;;  %v2944_v45 = vld [vmem:[#allocation11 + $0x128] sm:$0xff] }
  0x43   :  { %479 = vmatpush1.msra.mxu0 %v2880_v24  ;;  %550 = vmatpush1.msra.mxu1 %v2882_v25  ;;  %v80_v44 = vld [vmem:[#allocation5 + $0x18] sm:$0xff]  ;;  %v2950_v47 = vld [vmem:[#allocation11 + $0x120] sm:$0xff]  ;;  %v2956_v49 = vld [vmem:[#allocation11 + $0x108] sm:$0xff] }
  0x44   :  { %2421 = vmatmul.mubr.msk.f32.gmra.mxu0 %vm123_vm0, %v78_v26  ;;  %2429 = vmatmul.mubr.msk.f32.gmra.mxu1 %vm123_vm0, %v78_v26  ;;  %v2946_v46 = vld [vmem:[#allocation11 + $0x138] sm:$0xff]  ;;  %v2952_v48 = vld [vmem:[#allocation11 + $0x130] sm:$0xff]  ;;  %v2964_v51 = vld [vmem:[#allocation11 + $0x100] sm:$0xff] }
  0x45   :  { %480 = vmatprep.subr.mxu0 %v2888_v27  ;;  %551 = vmatprep.subr.mxu1 %v2890_v28  ;;  %v2958_v50 = vld [vmem:[#allocation11 + $0x118] sm:$0xff]  ;;  %v2966_v52 = vld [vmem:[#allocation11 + $0x110] sm:$0xff]  ;;  %v2972_v54 = vld [vmem:[#allocation11 + $0xe8] sm:$0xff] }
  0x46   :  { %481 = vmatpush1.msra.mxu0 %v2894_v29  ;;  %552 = vmatpush1.msra.mxu1 %v2896_v30  ;;  %v81_v53 = vld [vmem:[#allocation5 + $0x20] sm:$0xff]  ;;  %v2980_v57 = vld [vmem:[#allocation11 + $0xf0] sm:$0xff]  ;;  %v2984_v58 = vld [vmem:[#allocation11 + $0xc8] sm:$0xff] }
  0x47   :  { %482 = vmatprep.subr.mxu0 %v2900_v31  ;;  %553 = vmatprep.subr.mxu1 %v2902_v32  ;;  %v2974_v55 = vld [vmem:[#allocation11 + $0xf8] sm:$0xff]  ;;  %v2978_v56 = vld [vmem:[#allocation11 + $0xe0] sm:$0xff]  ;;  %v2994_v61 = vld [vmem:[#allocation11 + $0xd0] sm:$0xff] }
  0x48   :  { %224 = vmatprep.mubr.f32.mxu0 %v3886_v0  ;;  %337 = vmatprep.mubr.f32.mxu1 %v3886_v0  ;;  %v2986_v59 = vld [vmem:[#allocation11 + $0xd8] sm:$0xff]  ;;  %v2992_v60 = vld [vmem:[#allocation11 + $0xc0] sm:$0xff]  ;;  %v3000_v63 = vld [vmem:[#allocation11 + $0xa8] sm:$0xff] }
  0x49   :  { %483 = vmatpush1.msra.mxu0 %v2908_v33  ;;  %554 = vmatpush1.msra.mxu1 %v2910_v34  ;;  %v82_v62 = vld [vmem:[#allocation5 + $0x28] sm:$0xff]  ;;  %v3002_v1 = vld [vmem:[#allocation11 + $0xb8] sm:$0xff]  ;;  %v3008_v3 = vld [vmem:[#allocation11 + $0xb0] sm:$0xff] }
  0x4a   :  { %2422 = vmatmul.mubr.msk.f32.gmra.mxu0 %vm123_vm0, %v79_v35  ;;  %2430 = vmatmul.mubr.msk.f32.gmra.mxu1 %vm123_vm0, %v79_v35  ;;  %v3006_v2 = vld [vmem:[#allocation11 + $0xa0] sm:$0xff]  ;;  %3979 = vst [vmem:[#allocation20_spill] sm:$0xff] %v3008_v3  ;;  %v3012_v4 = vld [vmem:[#allocation11 + $0x88] sm:$0xff]  ;;  %v3014_v5 = vld [vmem:[#allocation11 + $0x98] sm:$0xff] }
  0x4b   :  { %484 = vmatprep.subr.mxu0 %v2916_v36  ;;  %555 = vmatprep.subr.mxu1 %v2918_v37  ;;  %3980 = vst [vmem:[#allocation21_spill] sm:$0xff] %v3012_v4  ;;  %3981 = vst [vmem:[#allocation22_spill] sm:$0xff] %v3014_v5  ;;  %v3020_v6 = vld [vmem:[#allocation11 + $0x80] sm:$0xff]  ;;  %v3022_v7 = vld [vmem:[#allocation11 + $0x90] sm:$0xff] }
  0x4c   :  { %485 = vmatpush1.msra.mxu0 %v2922_v38  ;;  %556 = vmatpush1.msra.mxu1 %v2924_v39  ;;  %3982 = vst [vmem:[#allocation23_spill] sm:$0xff] %v3020_v6  ;;  %3983 = vst [vmem:[#allocation24_spill] sm:$0xff] %v3022_v7  ;;  %v83_v8 = vld [vmem:[#allocation5 + $0x30] sm:$0xff]  ;;  %v3030_v10 = vld [vmem:[#allocation11 + $0x78] sm:$0xff] }
  0x4d   :  { %486 = vmatprep.subr.mxu0 %v2928_v40  ;;  %557 = vmatprep.subr.mxu1 %v2930_v41  ;;  %v3028_v9 = vld [vmem:[#allocation11 + $0x68] sm:$0xff]  ;;  %3985 = vst [vmem:[#allocation26_spill] sm:$0xff] %v3030_v10  ;;  %v3034_v11 = vld [vmem:[#allocation11 + $0x60] sm:$0xff]  ;;  %v3036_v12 = vld [vmem:[#allocation11 + $0x70] sm:$0xff] }
  0x4e   :  { %230 = vmatprep.mubr.f32.mxu0 %v3886_v0  ;;  %343 = vmatprep.mubr.f32.mxu1 %v3886_v0  ;;  %3984 = vst [vmem:[#allocation25_spill] sm:$0xff] %v3028_v9  ;;  %3986 = vst [vmem:[#allocation27_spill] sm:$0xff] %v3034_v11  ;;  %v3040_v13 = vld [vmem:[#allocation11 + $0x48] sm:$0xff]  ;;  %v3042_v14 = vld [vmem:[#allocation11 + $0x58] sm:$0xff] }
  0x4f   :  { %487 = vmatpush1.msra.mxu0 %v2936_v42  ;;  %558 = vmatpush1.msra.mxu1 %v2938_v43  ;;  %3987 = vst [vmem:[#allocation28_spill] sm:$0xff] %v3036_v12  ;;  %3988 = vst [vmem:[#allocation29_spill] sm:$0xff] %v3040_v13  ;;  %v3048_v15 = vld [vmem:[#allocation11 + $0x40] sm:$0xff]  ;;  %v3050_v16 = vld [vmem:[#allocation11 + $0x50] sm:$0xff] }
  0x50   :  { %2423 = vmatmul.mubr.msk.f32.gmra.mxu0 %vm123_vm0, %v80_v44  ;;  %2431 = vmatmul.mubr.msk.f32.gmra.mxu1 %vm123_vm0, %v80_v44  ;;  %3989 = vst [vmem:[#allocation30_spill] sm:$0xff] %v3042_v14  ;;  %3990 = vst [vmem:[#allocation31_spill] sm:$0xff] %v3048_v15  ;;  %v84_v17 = vld [vmem:[#allocation5 + $0x38] sm:$0xff]  ;;  %v3056_v26 = vld [vmem:[#allocation11 + $0x28] sm:$0xff] }
  0x51   :  { %488 = vmatprep.subr.mxu0 %v2944_v45  ;;  %559 = vmatprep.subr.mxu1 %v2946_v46  ;;  %3991 = vst [vmem:[#allocation32_spill] sm:$0xff] %v3050_v16  ;;  %3992 = vst [vmem:[#allocation33_spill] sm:$0xff] %v3056_v26  ;;  %v3058_v35 = vld [vmem:[#allocation11 + $0x38] sm:$0xff]  ;;  %v3062_v44 = vld [vmem:[#allocation11 + $0x20] sm:$0xff] }
  0x52   :  { %489 = vmatpush1.msra.mxu0 %v2950_v47  ;;  %560 = vmatpush1.msra.mxu1 %v2952_v48  ;;  %3993 = vst [vmem:[#allocation34_spill] sm:$0xff] %v3058_v35  ;;  %3994 = vst [vmem:[#allocation35_spill] sm:$0xff] %v3062_v44 }
  0x53   :  { %490 = vmatprep.subr.mxu0 %v2956_v49  ;;  %561 = vmatprep.subr.mxu1 %v2958_v50 }
  0x54   :  { %236 = vmatprep.mubr.f32.mxu0 %v3886_v0  ;;  %349 = vmatprep.mubr.f32.mxu1 %v3886_v0 }
  0x55   :  { %491 = vmatpush1.msra.mxu0 %v2964_v51  ;;  %562 = vmatpush1.msra.mxu1 %v2966_v52 }
  0x56   :  { %2424 = vmatmul.mubr.msk.f32.gmra.mxu0 %vm123_vm0, %v81_v53  ;;  %2432 = vmatmul.mubr.msk.f32.gmra.mxu1 %vm123_vm0, %v81_v53  ;;  %v3064_v53 = vld [vmem:[#allocation11 + $0x30] sm:$0xff] }
  0x57   :  { %492 = vmatprep.subr.mxu0 %v2972_v54  ;;  %563 = vmatprep.subr.mxu1 %v2974_v55  ;;  %3995 = vst [vmem:[#allocation36_spill] sm:$0xff] %v3064_v53 }
  0x58   :  { %493 = vmatpush1.msra.mxu0 %v2978_v56  ;;  %564 = vmatpush1.msra.mxu1 %v2980_v57 }
  0x59   :  { %494 = vmatprep.subr.mxu0 %v2984_v58  ;;  %565 = vmatprep.subr.mxu1 %v2986_v59 }
  0x5a   :  { %242 = vmatprep.mubr.f32.mxu0 %v3886_v0  ;;  %355 = vmatprep.mubr.f32.mxu1 %v3886_v0 }
  0x5b   :  { %495 = vmatpush1.msra.mxu0 %v2992_v60  ;;  %566 = vmatpush1.msra.mxu1 %v2994_v61 }
  0x5c   :  { %2425 = vmatmul.mubr.msk.f32.gmra.mxu0 %vm123_vm0, %v82_v62  ;;  %2433 = vmatmul.mubr.msk.f32.gmra.mxu1 %vm123_vm0, %v82_v62  ;;  %v3068_v62 = vld [vmem:[#allocation11 + $0x8] sm:$0xff] }
  0x5d   :  { %496 = vmatprep.subr.mxu0 %v3000_v63  ;;  %567 = vmatprep.subr.mxu1 %v3002_v1  ;;  %3996 = vst [vmem:[#allocation37_spill] sm:$0xff] %v3068_v62 }
  0x5e   :  { %497 = vmatpush1.msra.mxu0 %v3006_v2  ;;  %568 = vmatpush1.msra.mxu1 %v3008_v3 }
  0x5f   :  { %498 = vmatprep.subr.mxu0 %v3012_v4  ;;  %569 = vmatprep.subr.mxu1 %v3014_v5 }
  0x60   :  { %248 = vmatprep.mubr.f32.mxu0 %v3886_v0  ;;  %361 = vmatprep.mubr.f32.mxu1 %v3886_v0 }
  0x61   :  { %499 = vmatpush1.msra.mxu0 %v3020_v6  ;;  %570 = vmatpush1.msra.mxu1 %v3022_v7 }
  0x62   :  { %2426 = vmatmul.mubr.msk.f32.gmra.mxu0 %vm123_vm0, %v83_v8  ;;  %2434 = vmatmul.mubr.msk.f32.gmra.mxu1 %vm123_vm0, %v83_v8  ;;  %v3070_v8 = vld [vmem:[#allocation11 + $0x18] sm:$0xff] }
  0x63   :  { %500 = vmatprep.subr.mxu0 %v3028_v9  ;;  %571 = vmatprep.subr.mxu1 %v3030_v10  ;;  %3997 = vst [vmem:[#allocation38_spill] sm:$0xff] %v3070_v8 }
  0x64   :  { %501 = vmatpush1.msra.mxu0 %v3034_v11  ;;  %572 = vmatpush1.msra.mxu1 %v3036_v12 }
  0x65   :  { %502 = vmatprep.subr.mxu0 %v3040_v13  ;;  %573 = vmatprep.subr.mxu1 %v3042_v14 }
  0x66   :  { %254 = vmatprep.mubr.f32.mxu0 %v3886_v0  ;;  %367 = vmatprep.mubr.f32.mxu1 %v3886_v0  ;;  %v3074_v0 = vld [vmem:[#allocation11] sm:$0xff] }
  0x67   :  { %503 = vmatpush1.msra.mxu0 %v3048_v15  ;;  %574 = vmatpush1.msra.mxu1 %v3050_v16  ;;  %3998 = vst [vmem:[#allocation39_spill] sm:$0xff] %v3074_v0  ;;  %v3078_v16 = vld [vmem:[#allocation11 + $0x10] sm:$0xff] }
  0x68   :  { %2427 = vmatmul.mubr.msk.f32.gmra.mxu0 %vm123_vm0, %v84_v17  ;;  %2435 = vmatmul.mubr.msk.f32.gmra.mxu1 %vm123_vm0, %v84_v17  ;;  %3999 = vst [vmem:[#allocation40_spill] sm:$0xff] %v3078_v16  ;;  %v4000_v17 = vmov 0.0  }
  0x69   :  { %504 = vmatprep.subr.mxu0 %v3056_v26  ;;  %575 = vmatprep.subr.mxu1 %v3058_v35 }
  0x6a   :  { %505 = vmatpush1.msra.mxu0 %v3062_v44  ;;  %576 = vmatpush1.msra.mxu1 %v3064_v53 }
  0x6b   :  { %506 = vmatprep.subr.mxu0 %v3068_v62  ;;  %577 = vmatprep.subr.mxu1 %v3070_v8 }
  0x6c   :  { %507 = vmatpush1.msra.mxu0 %v3074_v0  ;;  %540 = vmatprep.mubr.f32.mxu0 %v4000_v17 }
  0x6d   :  { %578 = vmatpush1.msra.mxu1 %v3078_v16  ;;  %611 = vmatprep.mubr.f32.mxu1 %v4000_v17 }
  0x6e   :  { %541 = vmatmul.mubr.f32.vlgmr.msra.gmra.mxu0 %v4000_v17  ;;  %612 = vmatmul.mubr.f32.vlgmr.msra.gmra.mxu1 %v4000_v17 }
  0x6f   :  { %717 = vmatprep.subr.mxu0 %v2862_v18  ;;  %788 = vmatprep.subr.mxu1 %v2864_v19 }
  0x70   :  { %718 = vmatpush1.msra.mxu0 %v2866_v20  ;;  %789 = vmatpush1.msra.mxu1 %v2868_v21 }
  0x71   :  { %719 = vmatprep.subr.mxu0 %v2872_v22  ;;  %790 = vmatprep.subr.mxu1 %v2874_v23 }
  0x72   :  { %720 = vmatpush1.msra.mxu0 %v2880_v24  ;;  %791 = vmatpush1.msra.mxu1 %v2882_v25 }
  0x73   :  { %721 = vmatprep.subr.mxu0 %v2888_v27  ;;  %792 = vmatprep.subr.mxu1 %v2890_v28 }
  0x74   :  { %722 = vmatpush1.msra.mxu0 %v2894_v29  ;;  %793 = vmatpush1.msra.mxu1 %v2896_v30 }
  0x75   :  { %723 = vmatprep.subr.mxu0 %v2900_v31  ;;  %794 = vmatprep.subr.mxu1 %v2902_v32 }
  0x76   :  { %724 = vmatpush1.msra.mxu0 %v2908_v33  ;;  %795 = vmatpush1.msra.mxu1 %v2910_v34 }
  0x77   :  { %725 = vmatprep.subr.mxu0 %v2916_v36  ;;  %796 = vmatprep.subr.mxu1 %v2918_v37 }
  0x78   :  { %726 = vmatpush1.msra.mxu0 %v2922_v38  ;;  %797 = vmatpush1.msra.mxu1 %v2924_v39 }
  0x79   :  { %727 = vmatprep.subr.mxu0 %v2928_v40  ;;  %798 = vmatprep.subr.mxu1 %v2930_v41 }
  0x7a   :  { %728 = vmatpush1.msra.mxu0 %v2936_v42  ;;  %799 = vmatpush1.msra.mxu1 %v2938_v43 }
  0x7b   :  { %729 = vmatprep.subr.mxu0 %v2944_v45  ;;  %800 = vmatprep.subr.mxu1 %v2946_v46 }
  0x7c   :  { %730 = vmatpush1.msra.mxu0 %v2950_v47  ;;  %801 = vmatpush1.msra.mxu1 %v2952_v48 }
  0x7d   :  { %731 = vmatprep.subr.mxu0 %v2956_v49  ;;  %802 = vmatprep.subr.mxu1 %v2958_v50 }
  0x7e   :  { %732 = vmatpush1.msra.mxu0 %v2964_v51  ;;  %803 = vmatpush1.msra.mxu1 %v2966_v52 }
  0x7f   :  { %733 = vmatprep.subr.mxu0 %v2972_v54  ;;  %804 = vmatprep.subr.mxu1 %v2974_v55 }
  0x80   :  { %734 = vmatpush1.msra.mxu0 %v2978_v56  ;;  %805 = vmatpush1.msra.mxu1 %v2980_v57 }
  0x81   :  { %735 = vmatprep.subr.mxu0 %v2984_v58  ;;  %806 = vmatprep.subr.mxu1 %v2986_v59 }
  0x82   :  { %736 = vmatpush1.msra.mxu0 %v2992_v60  ;;  %807 = vmatpush1.msra.mxu1 %v2994_v61 }
  0x83   :  { %737 = vmatprep.subr.mxu0 %v3000_v63  ;;  %808 = vmatprep.subr.mxu1 %v3002_v1 }
  0x84   :  { %738 = vmatpush1.msra.mxu0 %v3006_v2  ;;  %809 = vmatpush1.msra.mxu1 %v3008_v3 }
  0x85   :  { %739 = vmatprep.subr.mxu0 %v3012_v4  ;;  %810 = vmatprep.subr.mxu1 %v3014_v5  ;;  %v4001_v4 = vld [vmem:[#allocation32_spill] sm:$0xff] }
  0x86   :  { %740 = vmatpush1.msra.mxu0 %v3020_v6  ;;  %811 = vmatpush1.msra.mxu1 %v3022_v7 }
  0x87   :  { %741 = vmatprep.subr.mxu0 %v3028_v9  ;;  %812 = vmatprep.subr.mxu1 %v3030_v10 }
  0x88   :  { %742 = vmatpush1.msra.mxu0 %v3034_v11  ;;  %813 = vmatpush1.msra.mxu1 %v3036_v12 }
  0x89   :  { %743 = vmatprep.subr.mxu0 %v3040_v13  ;;  %814 = vmatprep.subr.mxu1 %v3042_v14 }
  0x8a   :  { %744 = vmatpush1.msra.mxu0 %v3048_v15  ;;  %815 = vmatpush1.msra.mxu1 %v4001_v4 }
  0x8b   :  { %745 = vmatprep.subr.mxu0 %v3056_v26  ;;  %816 = vmatprep.subr.mxu1 %v3058_v35  ;;  %v103_v35 = vlaneseq  ;;  %v101_v26 = vld [vmem:[#allocation10] sm:$0xf] }
  0x8c   :  { %746 = vmatpush1.msra.mxu0 %v3062_v44  ;;  %817 = vmatpush1.msra.mxu1 %v3064_v53 }
  0x8d   :  { %747 = vmatprep.subr.mxu0 %v3068_v62  ;;  %818 = vmatprep.subr.mxu1 %v3070_v8  ;;  %v3156_v44 = vshrl.u32 %v103_v35, 7 }
  0x8e   :  { %748 = vmatpush1.msra.mxu0 %v3074_v0  ;;  %781 = vmatprep.mubr.f32.mxu0 %v4000_v17 }
  0x8f   :  { %819 = vmatpush1.msra.mxu1 %v3078_v16  ;;  %852 = vmatprep.mubr.f32.mxu1 %v4000_v17  ;;  %v105_v8 = vsub.s32 0, %v3156_v44  ;;  %v113_v0 = vsub.s32 2, %v3156_v44 }
  0x90   :  { %958 = vmatprep.subr.mxu0 %v2862_v18  ;;  %1029 = vmatprep.subr.mxu1 %v2864_v19  ;;  %v109_v18 = vsub.s32 1, %v3156_v44  ;;  %v117_v19 = vsub.s32 3, %v3156_v44 }
  0x91   :  { %v106_v17 = vrot.slane %v101_v26, %v105_v8  ;;  %v3170_v35 = vrot.slane %v101_v26, %v113_v0 }
  0x92   :  { %v110_v13 = vrot.slane %v101_v26, %v109_v18  ;;  %v3172_v12 = vrot.slane %v101_v26, %v117_v19 }
  0xfe   :  { %v3158_v53 = vpop.f32.mrf.mxu0  ;;  %v3160_v62 = vpop.f32.mrf.mxu1 }
 0x100   :  { %v3164_v4 = vpop.f32.mrf.mxu0  ;;  %v3166_v16 = vpop.f32.mrf.mxu1 }
 0x104   :  { %v220_v15 = vpop.f32.mrf.mxu0  ;;  %v333_v14 = vpop.f32.mrf.mxu1 }
 0x105   :  { %v3174_v11 = vadd.f32 %v220_v15, %v106_v17  ;;  %v3177_v10 = vadd.f32 %v333_v14, %v3170_v35 }
 0x106   :  { %v222_v9 = vpop.f32.mrf.mxu0  ;;  %v335_v7 = vpop.f32.mrf.mxu1 }
 0x107   :  { %4002 = vst [vmem:[#allocation41_spill] sm:$0xff] %v3174_v11  ;;  %4003 = vst [vmem:[#allocation42_spill] sm:$0xff] %v3177_v10  ;;  %v3179_v6 = vadd.f32 %v222_v9, %v110_v13  ;;  %v3182_v5 = vadd.f32 %v335_v7, %v3172_v12 }
 0x109   :  { %4004 = vst [vmem:[#allocation43_spill] sm:$0xff] %v3179_v6  ;;  %4005 = vst [vmem:[#allocation44_spill] sm:$0xff] %v3182_v5 }
 0x10a   :  { %v226_v8 = vpop.f32.mrf.mxu0  ;;  %v339_v0 = vpop.f32.mrf.mxu1 }
 0x10b   :  { %v3184_v3 = vadd.f32 %v226_v8, %v106_v17  ;;  %v3187_v18 = vadd.f32 %v339_v0, %v3170_v35 }
 0x10c   :  { %v228_v19 = vpop.f32.mrf.mxu0  ;;  %v341_v15 = vpop.f32.mrf.mxu1 }
 0x10d   :  { %4006 = vst [vmem:[#allocation45_spill] sm:$0xff] %v3184_v3  ;;  %4007 = vst [vmem:[#allocation46_spill] sm:$0xff] %v3187_v18  ;;  %v3189_v26 = vadd.f32 %v228_v19, %v110_v13  ;;  %v3192_v14 = vadd.f32 %v341_v15, %v3172_v12 }
 0x10f   :  { %4008 = vst [vmem:[#allocation47_spill] sm:$0xff] %v3189_v26  ;;  %4009 = vst [vmem:[#allocation48_spill] sm:$0xff] %v3192_v14 }
 0x110   :  { %v232_v10 = vpop.f32.mrf.mxu0  ;;  %v345_v9 = vpop.f32.mrf.mxu1 }
 0x111   :  { %v3194_v6 = vadd.f32 %v232_v10, %v106_v17  ;;  %v3197_v7 = vadd.f32 %v345_v9, %v3170_v35 }
 0x112   :  { %v234_v5 = vpop.f32.mrf.mxu0  ;;  %v347_v8 = vpop.f32.mrf.mxu1 }
 0x113   :  { %4010 = vst [vmem:[#allocation49_spill] sm:$0xff] %v3194_v6  ;;  %4011 = vst [vmem:[#allocation50_spill] sm:$0xff] %v3197_v7  ;;  %v3199_v3 = vadd.f32 %v234_v5, %v110_v13  ;;  %v3202_v0 = vadd.f32 %v347_v8, %v3172_v12 }
 0x115   :  { %4012 = vst [vmem:[#allocation51_spill] sm:$0xff] %v3199_v3  ;;  %4013 = vst [vmem:[#allocation52_spill] sm:$0xff] %v3202_v0 }
 0x116   :  { %v238_v18 = vpop.f32.mrf.mxu0  ;;  %v351_v19 = vpop.f32.mrf.mxu1 }
 0x117   :  { %v3204_v26 = vadd.f32 %v238_v18, %v106_v17  ;;  %v3207_v15 = vadd.f32 %v351_v19, %v3170_v35 }
 0x118   :  { %v240_v14 = vpop.f32.mrf.mxu0  ;;  %v353_v10 = vpop.f32.mrf.mxu1 }
 0x119   :  { %4014 = vst [vmem:[#allocation53_spill] sm:$0xff] %v3204_v26  ;;  %4015 = vst [vmem:[#allocation54_spill] sm:$0xff] %v3207_v15  ;;  %v3209_v6 = vadd.f32 %v240_v14, %v110_v13  ;;  %v3212_v9 = vadd.f32 %v353_v10, %v3172_v12 }
 0x11b   :  { %4016 = vst [vmem:[#allocation55_spill] sm:$0xff] %v3209_v6  ;;  %4017 = vst [vmem:[#allocation56_spill] sm:$0xff] %v3212_v9 }
 0x11c   :  { %v244_v7 = vpop.f32.mrf.mxu0  ;;  %v357_v5 = vpop.f32.mrf.mxu1 }
 0x11d   :  { %v3214_v3 = vadd.f32 %v244_v7, %v106_v17  ;;  %v3217_v8 = vadd.f32 %v357_v5, %v3170_v35 }
 0x11e   :  { %v246_v0 = vpop.f32.mrf.mxu0  ;;  %v359_v18 = vpop.f32.mrf.mxu1 }
 0x11f   :  { %4018 = vst [vmem:[#allocation57_spill] sm:$0xff] %v3214_v3  ;;  %4019 = vst [vmem:[#allocation58_spill] sm:$0xff] %v3217_v8  ;;  %v3219_v26 = vadd.f32 %v246_v0, %v110_v13  ;;  %v3222_v19 = vadd.f32 %v359_v18, %v3172_v12 }
 0x121   :  { %4020 = vst [vmem:[#allocation59_spill] sm:$0xff] %v3219_v26  ;;  %4021 = vst [vmem:[#allocation60_spill] sm:$0xff] %v3222_v19 }
 0x122   :  { %v250_v15 = vpop.f32.mrf.mxu0  ;;  %v363_v14 = vpop.f32.mrf.mxu1 }
 0x123   :  { %v3224_v6 = vadd.f32 %v250_v15, %v106_v17  ;;  %v3227_v10 = vadd.f32 %v363_v14, %v3170_v35 }
 0x124   :  { %v252_v9 = vpop.f32.mrf.mxu0  ;;  %v365_v7 = vpop.f32.mrf.mxu1 }
 0x125   :  { %4022 = vst [vmem:[#allocation61_spill] sm:$0xff] %v3224_v6  ;;  %4023 = vst [vmem:[#allocation62_spill] sm:$0xff] %v3227_v10  ;;  %v3229_v3 = vadd.f32 %v252_v9, %v110_v13  ;;  %v3232_v5 = vadd.f32 %v365_v7, %v3172_v12  ;;  %v215_v9 = vadd.f32 %v3158_v53, %v106_v17 }
 0x126   :  { %v217_v7 = vadd.f32 %v3164_v4, %v110_v13 }
 0x127   :  { %4024 = vst [vmem:[#allocation63_spill] sm:$0xff] %v3229_v3  ;;  %4025 = vst [vmem:[#allocation64_spill] sm:$0xff] %v3232_v5 }
 0x128   :  { %v256_v8 = vpop.f32.mrf.mxu0  ;;  %v369_v0 = vpop.f32.mrf.mxu1 }
 0x129   :  { %v3234_v26 = vadd.f32 %v256_v8, %v106_v17  ;;  %v3237_v18 = vadd.f32 %v369_v0, %v3170_v35 }
 0x12a   :  { %v258_v19 = vpop.f32.mrf.mxu0  ;;  %v371_v15 = vpop.f32.mrf.mxu1 }
 0x12b   :  { %4026 = vst [vmem:[#allocation65_spill] sm:$0xff] %v3234_v26  ;;  %4027 = vst [vmem:[#allocation66_spill] sm:$0xff] %v3237_v18  ;;  %v3239_v6 = vadd.f32 %v258_v19, %v110_v13  ;;  %v3242_v14 = vadd.f32 %v371_v15, %v3172_v12  ;;  %v330_v19 = vadd.f32 %v3166_v16, %v3172_v12 }
 0x12c   :  { %v328_v15 = vadd.f32 %v3160_v62, %v3170_v35 }
 0x12d   :  { %4028 = vst [vmem:[#allocation67_spill] sm:$0xff] %v3239_v6  ;;  %4029 = vst [vmem:[#allocation68_spill] sm:$0xff] %v3242_v14 }
 0x12e   :  { %v542_v10 = vpop.f32.mrf.mxu0  ;;  %v613_v26 = vpop.f32.mrf.mxu1 }
 0x12f   :  { %v618_v5 = vadd.f32 %v542_v10, %v215_v9  ;;  %v620_v14 = vadd.f32 %v613_v26, %v328_v15 }
 0x130   :  { %v544_v3 = vpop.f32.mrf.mxu0  ;;  %v615_v18 = vpop.f32.mrf.mxu1 }
 0x131   :  { %v2436_v11 = vmul.f32 -1.442695, %v618_v5  ;;  %v619_v8 = vadd.f32 %v544_v3, %v217_v7  ;;  %v621_v6 = vadd.f32 %v615_v18, %v330_v19 }
 0x133   :  { %2503 = vpow2.f32 %v2436_v11  ;;  %v2437_v0 = vmul.f32 -1.442695, %v619_v8  ;;  %v2438_v53 = vmul.f32 -1.442695, %v621_v6  ;;  %v2812_v6 = vmov 1966171168  }
 0x134   :  { %v649_v62 = vunpack.c.l.s4 %v2812_v6  ;;  %v4032_v6 = vld [vmem:[#allocation22_spill] sm:$0xff] }
 0x135   :  { %2505 = vpow2.f32 %v2437_v0 }
 0x136   :  { %2507 = vpow2.f32 %v2438_v53  ;;  %v650_v35 = vunpack.c.0.s8 %v649_v62  ;;  %v4033_v62 = vld [vmem:[#allocation23_spill] sm:$0xff] }
 0x138   :  { %v3254_v8 = vsub.s32 %v650_v35, %v3156_v44  ;;  %v4034_v35 = vld [vmem:[#allocation24_spill] sm:$0xff] }
 0x140   :  { %v2504_v17 = vpop.eup %2503 }
 0x141   :  { %v625_v4 = vadd.f32 1.0, %v2504_v17 }
 0x142   :  { %v2506_v13 = vpop.eup %2505 }
 0x143   :  { %2509 = vrcp.f32 %v625_v4  ;;  %v631_v3 = vadd.f32 1.0, %v2506_v13  ;;  %v2508_v11 = vpop.eup %2507 }
 0x144   :  { %2511 = vtanh.f32 %v620_v14  ;;  %v638_v7 = vadd.f32 1.0, %v2508_v11 }
 0x145   :  { %2513 = vrcp.f32 %v631_v3 }
 0x146   :  { %2515 = vrcp.f32 %v638_v7 }
 0x150   :  { %v2510_v10 = vpop.eup %2509 }
 0x151   :  { %v2512_v5 = vpop.eup %2511 }
 0x152   :  { %v2514_v9 = vpop.eup %2513  ;;  %v642_v16 = vmul.f32 %v2512_v5, %v2510_v10 }
 0x153   :  { %v641_v12 = vmul.f32 0.0, %v2514_v9  ;;  %v2516_v26 = vpop.eup %2515 }
 0x155   :  { %v3250_v18 = vadd.f32 %v642_v16, %v641_v12  ;;  %v4030_v12 = vld [vmem:[#allocation20_spill] sm:$0xff]  ;;  %v4031_v16 = vld [vmem:[#allocation21_spill] sm:$0xff] }
 0x157   :  { %2517 = vtanh.f32 %v3250_v18 }
 0x164   :  { %v2518_v14 = vpop.eup %2517 }
 0x165   :  { %v645_v0 = vmul.f32 %v2518_v14, %v2516_v26  ;;  %v4035_v26 = vld [vmem:[#allocation25_spill] sm:$0xff]  ;;  %v4036_v14 = vld [vmem:[#allocation26_spill] sm:$0xff] }
 0x167   :  { %v647_v19 = vcombine.high %v645_v0, %v645_v0  ;;  %v654_v15 = vrot.slane %v645_v0, %v3254_v8  ;;  %782 = vmatmul.mubr.f32.vlgmr.msra.gmra.mxu0 %v645_v0  ;;  %853 = vmatmul.mubr.f32.vlgmr.msra.gmra.mxu1 %v645_v0  ;;  %v4037_v0 = vld [vmem:[#allocation27_spill] sm:$0xff] }
 0x168   :  { %959 = vmatpush1.msra.mxu0 %v2866_v20  ;;  %1030 = vmatpush1.msra.mxu1 %v2868_v21 }
 0x169   :  { %v661_v53 = vrot.slane %v647_v19, %v3254_v8  ;;  %v662_v17 = vcombine.high %v654_v15, %v654_v15  ;;  %v670_v4 = vrot.slane %v654_v15, %v3254_v8  ;;  %2439 = vst.sshfl [vmem:[#allocation13] sm:$0x1 pattern:$0x73625140] %v654_v15  ;;  %960 = vmatprep.subr.mxu0 %v2872_v22  ;;  %v4038_v19 = vld [vmem:[#allocation28_spill] sm:$0xff]  ;;  %v4039_v15 = vld [vmem:[#allocation29_spill] sm:$0xff] }
 0x16a   :  { %1031 = vmatprep.subr.mxu1 %v2874_v23  ;;  %961 = vmatpush1.msra.mxu0 %v2880_v24 }
 0x16b   :  { %1032 = vmatpush1.msra.mxu1 %v2882_v25  ;;  %v663_v44 = vcombine.high %v661_v53, %v661_v53  ;;  %v677_v13 = vrot.slane %v661_v53, %v3254_v8  ;;  %v684_v3 = vrot.slane %v662_v17, %v3254_v8  ;;  %v692_v11 = vcombine.high %v670_v4, %v670_v4  ;;  %v4042_v4 = vld [vmem:[#allocation32_spill] sm:$0xff] }
 0x16c   :  { %2440 = vst.sshfl [vmem:[#allocation13 + $0x8] sm:$0x1 pattern:$0x73625140] %v662_v17  ;;  %962 = vmatprep.subr.mxu0 %v2888_v27  ;;  %1033 = vmatprep.subr.mxu1 %v2890_v28  ;;  %v4041_v17 = vld [vmem:[#allocation31_spill] sm:$0xff] }
 0x16d   :  { %2441 = vst.sshfl [vmem:[#allocation13 + $0x20] sm:$0x1 pattern:$0x73625140] %v661_v53  ;;  %963 = vmatpush1.msra.mxu0 %v2894_v29  ;;  %v691_v10 = vrot.slane %v663_v44, %v3254_v8  ;;  %v693_v5 = vcombine.high %v677_v13, %v677_v13  ;;  %v694_v9 = vcombine.high %v684_v3, %v684_v3  ;;  %706 = vst [vmem:[#allocation13 + $0x10] sm:$0x1] %v692_v11 }
 0x16e   :  { %2442 = vst.sshfl [vmem:[#allocation13 + $0x28] sm:$0x1 pattern:$0x73625140] %v663_v44  ;;  %1034 = vmatpush1.msra.mxu1 %v2896_v30  ;;  %964 = vmatprep.subr.mxu0 %v2900_v31  ;;  %v4040_v53 = vld [vmem:[#allocation30_spill] sm:$0xff]  ;;  %v4043_v44 = vld [vmem:[#allocation33_spill] sm:$0xff] }
 0x16f   :  { %1035 = vmatprep.subr.mxu1 %v2902_v32  ;;  %965 = vmatpush1.msra.mxu0 %v2908_v33  ;;  %v695_v7 = vcombine.high %v691_v10, %v691_v10  ;;  %707 = vst [vmem:[#allocation13 + $0x18] sm:$0x1] %v694_v9  ;;  %710 = vst [vmem:[#allocation13 + $0x30] sm:$0x1] %v693_v5  ;;  %v4044_v13 = vld [vmem:[#allocation34_spill] sm:$0xff]  ;;  %v4045_v3 = vld [vmem:[#allocation35_spill] sm:$0xff] }
 0x170   :  { %1036 = vmatpush1.msra.mxu1 %v2910_v34  ;;  %966 = vmatprep.subr.mxu0 %v2916_v36  ;;  %v4046_v11 = vld [vmem:[#allocation36_spill] sm:$0xff]  ;;  %v4047_v10 = vld [vmem:[#allocation37_spill] sm:$0xff]  ;;  %v4048_v5 = vld [vmem:[#allocation38_spill] sm:$0xff] }
 0x171   :  { %1037 = vmatprep.subr.mxu1 %v2918_v37  ;;  %967 = vmatpush1.msra.mxu0 %v2922_v38  ;;  %711 = vst [vmem:[#allocation13 + $0x38] sm:$0x1] %v695_v7  ;;  %v4049_v9 = vld [vmem:[#allocation39_spill] sm:$0xff]  ;;  %v4050_v7 = vmov 0.0  }
 0x172   :  { %1038 = vmatpush1.msra.mxu1 %v2924_v39  ;;  %968 = vmatprep.subr.mxu0 %v2928_v40 }
 0x173   :  { %1039 = vmatprep.subr.mxu1 %v2930_v41  ;;  %969 = vmatpush1.msra.mxu0 %v2936_v42 }
 0x174   :  { %1040 = vmatpush1.msra.mxu1 %v2938_v43  ;;  %970 = vmatprep.subr.mxu0 %v2944_v45 }
 0x175   :  { %1041 = vmatprep.subr.mxu1 %v2946_v46  ;;  %971 = vmatpush1.msra.mxu0 %v2950_v47 }
 0x176   :  { %1042 = vmatpush1.msra.mxu1 %v2952_v48  ;;  %972 = vmatprep.subr.mxu0 %v2956_v49 }
 0x177   :  { %1043 = vmatprep.subr.mxu1 %v2958_v50  ;;  %973 = vmatpush1.msra.mxu0 %v2964_v51 }
 0x178   :  { %1044 = vmatpush1.msra.mxu1 %v2966_v52  ;;  %974 = vmatprep.subr.mxu0 %v2972_v54 }
 0x179   :  { %1045 = vmatprep.subr.mxu1 %v2974_v55  ;;  %975 = vmatpush1.msra.mxu0 %v2978_v56 }
 0x17a   :  { %1046 = vmatpush1.msra.mxu1 %v2980_v57  ;;  %976 = vmatprep.subr.mxu0 %v2984_v58 }
 0x17b   :  { %1047 = vmatprep.subr.mxu1 %v2986_v59  ;;  %977 = vmatpush1.msra.mxu0 %v2992_v60 }
 0x17c   :  { %1048 = vmatpush1.msra.mxu1 %v2994_v61  ;;  %978 = vmatprep.subr.mxu0 %v3000_v63 }
 0x17d   :  { %1049 = vmatprep.subr.mxu1 %v3002_v1  ;;  %979 = vmatpush1.msra.mxu0 %v3006_v2 }
 0x17e   :  { %1050 = vmatpush1.msra.mxu1 %v4030_v12  ;;  %980 = vmatprep.subr.mxu0 %v4031_v16 }
 0x17f   :  { %1051 = vmatprep.subr.mxu1 %v4032_v6  ;;  %981 = vmatpush1.msra.mxu0 %v4033_v62 }
 0x180   :  { %1052 = vmatpush1.msra.mxu1 %v4034_v35  ;;  %982 = vmatprep.subr.mxu0 %v4035_v26  ;;  %v4057_v26 = vld [vmem:[#allocation42_spill] sm:$0xff] }
 0x181   :  { %1053 = vmatprep.subr.mxu1 %v4036_v14  ;;  %983 = vmatpush1.msra.mxu0 %v4037_v0  ;;  %v4056_v14 = vld [vmem:[#allocation44_spill] sm:$0xff] }
 0x182   :  { %1054 = vmatpush1.msra.mxu1 %v4038_v19  ;;  %984 = vmatprep.subr.mxu0 %v4039_v15 }
 0x183   :  { %1055 = vmatprep.subr.mxu1 %v4040_v53  ;;  %985 = vmatpush1.msra.mxu0 %v4041_v17  ;;  %v4051_v53 = vld [vmem:[#allocation40_spill] sm:$0xff] }
 0x184   :  { %1056 = vmatpush1.msra.mxu1 %v4042_v4  ;;  %986 = vmatprep.subr.mxu0 %v4043_v44  ;;  %v4052_v4 = vld [vmem:[#allocation18_spill] sm:$0xff]  ;;  %v4053_v44 = vld [vmem:[#allocation19_spill] sm:$0xff] }
 0x185   :  { %1057 = vmatprep.subr.mxu1 %v4044_v13  ;;  %987 = vmatpush1.msra.mxu0 %v4045_v3  ;;  %v4054_v3 = vld [vmem:[#allocation41_spill] sm:$0xff] }
 0x186   :  { %1058 = vmatpush1.msra.mxu1 %v4046_v11  ;;  %988 = vmatprep.subr.mxu0 %v4047_v10  ;;  %v4055_v10 = vld [vmem:[#allocation43_spill] sm:$0xff] }
 0x187   :  { %1059 = vmatprep.subr.mxu1 %v4048_v5  ;;  %989 = vmatpush1.msra.mxu0 %v4049_v9 }
 0x188   :  { %1022 = vmatprep.mubr.f32.mxu0 %v4050_v7  ;;  %1060 = vmatpush1.msra.mxu1 %v4051_v53 }
 0x189   :  { %1093 = vmatprep.mubr.f32.mxu1 %v4050_v7  ;;  %1199 = vmatprep.subr.mxu0 %v4052_v4 }
 0x18a   :  { %1270 = vmatprep.subr.mxu1 %v4053_v44 }
 0x227   :  { %v783_v13 = vpop.f32.mrf.mxu0  ;;  %v854_v5 = vpop.f32.mrf.mxu1 }
 0x228   :  { %v859_v17 = vadd.f32 %v783_v13, %v4054_v3  ;;  %v861_v7 = vadd.f32 %v854_v5, %v4057_v26 }
 0x229   :  { %v785_v11 = vpop.f32.mrf.mxu0  ;;  %v856_v0 = vpop.f32.mrf.mxu1 }
 0x22a   :  { %v2443_v15 = vmul.f32 -1.442695, %v859_v17  ;;  %v860_v19 = vadd.f32 %v785_v11, %v4055_v10  ;;  %v862_v53 = vadd.f32 %v856_v0, %v4056_v14 }
 0x22c   :  { %2519 = vpow2.f32 %v2443_v15  ;;  %v2444_v9 = vmul.f32 -1.442695, %v860_v19  ;;  %v2445_v35 = vmul.f32 -1.442695, %v862_v53 }
 0x22e   :  { %2521 = vpow2.f32 %v2444_v9 }
 0x22f   :  { %2523 = vtanh.f32 %v861_v7 }
 0x230   :  { %2525 = vpow2.f32 %v2445_v35 }
 0x239   :  { %v2520_v4 = vpop.eup %2519 }
 0x23a   :  { %v866_v62 = vadd.f32 1.0, %v2520_v4 }
 0x23b   :  { %v2522_v44 = vpop.eup %2521 }
 0x23c   :  { %2527 = vrcp.f32 %v866_v62  ;;  %v872_v13 = vadd.f32 1.0, %v2522_v44  ;;  %v2524_v17 = vpop.eup %2523 }
 0x23d   :  { %v2526_v3 = vpop.eup %2525 }
 0x23e   :  { %2529 = vrcp.f32 %v872_v13  ;;  %v879_v10 = vadd.f32 1.0, %v2526_v3 }
 0x240   :  { %2531 = vrcp.f32 %v879_v10 }
 0x249   :  { %v2528_v15 = vpop.eup %2527 }
 0x24a   :  { %v883_v11 = vmul.f32 %v2528_v15, %v2524_v17 }
 0x24b   :  { %v2530_v19 = vpop.eup %2529 }
 0x24c   :  { %v882_v9 = vmul.f32 %v2530_v19, %v3250_v18 }
 0x24d   :  { %v2532_v26 = vpop.eup %2531 }
 0x24e   :  { %v3333_v14 = vadd.f32 %v883_v11, %v882_v9 }
 0x250   :  { %2533 = vtanh.f32 %v3333_v14 }
 0x25d   :  { %v2534_v0 = vpop.eup %2533 }
 0x25e   :  { %v886_v53 = vmul.f32 %v2534_v0, %v2532_v26 }
 0x260   :  { %v888_v35 = vcombine.high %v886_v53, %v886_v53  ;;  %v895_v62 = vrot.slane %v886_v53, %v3254_v8  ;;  %1023 = vmatmul.mubr.f32.vlgmr.msra.gmra.mxu0 %v886_v53  ;;  %1094 = vmatmul.mubr.f32.vlgmr.msra.gmra.mxu1 %v886_v53 }
 0x261   :  { %1200 = vmatpush1.msra.mxu0 %v2866_v20  ;;  %1271 = vmatpush1.msra.mxu1 %v2868_v21 }
 0x262   :  { %v902_v5 = vrot.slane %v888_v35, %v3254_v8  ;;  %v903_v18 = vcombine.high %v895_v62, %v895_v62  ;;  %v911_v7 = vrot.slane %v895_v62, %v3254_v8  ;;  %2446 = vst.sshfl [vmem:[#allocation13 + $0x1] sm:$0x1 pattern:$0x73625140] %v895_v62  ;;  %1201 = vmatprep.subr.mxu0 %v2872_v22 }
 0x263   :  { %1272 = vmatprep.subr.mxu1 %v2874_v23  ;;  %1202 = vmatpush1.msra.mxu0 %v2880_v24 }
 0x264   :  { %1273 = vmatpush1.msra.mxu1 %v2882_v25  ;;  %v904_v4 = vcombine.high %v902_v5, %v902_v5  ;;  %v918_v44 = vrot.slane %v902_v5, %v3254_v8  ;;  %v925_v20 = vrot.slane %v903_v18, %v3254_v8  ;;  %v933_v21 = vcombine.high %v911_v7, %v911_v7  ;;  %v3421_v7 = vld [vmem:[#allocation11 + $0x1e0] sm:$0xff] }
 0x265   :  { %2447 = vst.sshfl [vmem:[#allocation13 + $0x9] sm:$0x1 pattern:$0x73625140] %v903_v18  ;;  %1203 = vmatprep.subr.mxu0 %v2888_v27  ;;  %1274 = vmatprep.subr.mxu1 %v2890_v28  ;;  %v4058_v27 = vld [vmem:[#allocation23_spill] sm:$0xff]  ;;  %v4059_v28 = vld [vmem:[#allocation24_spill] sm:$0xff] }
 0x266   :  { %2448 = vst.sshfl [vmem:[#allocation13 + $0x21] sm:$0x1 pattern:$0x73625140] %v902_v5  ;;  %1204 = vmatpush1.msra.mxu0 %v2894_v29  ;;  %v932_v22 = vrot.slane %v904_v4, %v3254_v8  ;;  %v934_v23 = vcombine.high %v918_v44, %v918_v44  ;;  %v935_v24 = vcombine.high %v925_v20, %v925_v20  ;;  %947 = vst [vmem:[#allocation13 + $0x11] sm:$0x1] %v933_v21 }
 0x267   :  { %2449 = vst.sshfl [vmem:[#allocation13 + $0x29] sm:$0x1 pattern:$0x73625140] %v904_v4  ;;  %1275 = vmatpush1.msra.mxu1 %v2896_v30  ;;  %1205 = vmatprep.subr.mxu0 %v2900_v31  ;;  %v4060_v29 = vld [vmem:[#allocation25_spill] sm:$0xff]  ;;  %v4061_v30 = vld [vmem:[#allocation26_spill] sm:$0xff] }
 0x268   :  { %1276 = vmatprep.subr.mxu1 %v2902_v32  ;;  %1206 = vmatpush1.msra.mxu0 %v2908_v33  ;;  %v936_v25 = vcombine.high %v932_v22, %v932_v22  ;;  %948 = vst [vmem:[#allocation13 + $0x19] sm:$0x1] %v935_v24  ;;  %951 = vst [vmem:[#allocation13 + $0x31] sm:$0x1] %v934_v23  ;;  %v4062_v31 = vld [vmem:[#allocation27_spill] sm:$0xff]  ;;  %v4063_v32 = vld [vmem:[#allocation28_spill] sm:$0xff] }
 0x269   :  { %1277 = vmatpush1.msra.mxu1 %v2910_v34  ;;  %1207 = vmatprep.subr.mxu0 %v2916_v36  ;;  %v4064_v33 = vld [vmem:[#allocation29_spill] sm:$0xff]  ;;  %v4065_v34 = vld [vmem:[#allocation30_spill] sm:$0xff]  ;;  %v4066_v36 = vld [vmem:[#allocation31_spill] sm:$0xff] }
 0x26a   :  { %1278 = vmatprep.subr.mxu1 %v2918_v37  ;;  %1208 = vmatpush1.msra.mxu0 %v2922_v38  ;;  %952 = vst [vmem:[#allocation13 + $0x39] sm:$0x1] %v936_v25  ;;  %v4067_v37 = vld [vmem:[#allocation32_spill] sm:$0xff]  ;;  %v4068_v38 = vld [vmem:[#allocation33_spill] sm:$0xff]  ;;  %v3429_v21 = vld [vmem:[#allocation11 + $0x1c8] sm:$0xff] }
 0x26b   :  { %1279 = vmatpush1.msra.mxu1 %v2924_v39  ;;  %1209 = vmatprep.subr.mxu0 %v2928_v40  ;;  %v4069_v39 = vld [vmem:[#allocation34_spill] sm:$0xff]  ;;  %v4070_v40 = vld [vmem:[#allocation35_spill] sm:$0xff]  ;;  %v3424_v4 = vld [vmem:[#allocation11 + $0x1f0] sm:$0xff] }
 0x26c   :  { %1280 = vmatprep.subr.mxu1 %v2930_v41  ;;  %1210 = vmatpush1.msra.mxu0 %v2936_v42  ;;  %v4071_v41 = vld [vmem:[#allocation36_spill] sm:$0xff]  ;;  %v4072_v42 = vld [vmem:[#allocation37_spill] sm:$0xff]  ;;  %v3435_v23 = vld [vmem:[#allocation11 + $0x1c0] sm:$0xff] }
 0x26d   :  { %1281 = vmatpush1.msra.mxu1 %v2938_v43  ;;  %1211 = vmatprep.subr.mxu0 %v2944_v45  ;;  %v4073_v43 = vld [vmem:[#allocation38_spill] sm:$0xff]  ;;  %v4074_v45 = vld [vmem:[#allocation39_spill] sm:$0xff]  ;;  %v3432_v22 = vld [vmem:[#allocation11 + $0x1d8] sm:$0xff] }
 0x26e   :  { %1282 = vmatprep.subr.mxu1 %v2946_v46  ;;  %1212 = vmatpush1.msra.mxu0 %v2950_v47  ;;  %v4075_v46 = vmov 0.0   ;;  %v4076_v47 = vld [vmem:[#allocation40_spill] sm:$0xff] }
 0x26f   :  { %1283 = vmatpush1.msra.mxu1 %v2952_v48  ;;  %1213 = vmatprep.subr.mxu0 %v2956_v49  ;;  %v3406_v48 = vld [vmem:[#allocation11 + $0x1e8] sm:$0xff]  ;;  %v3409_v49 = vld [vmem:[#allocation11 + $0x1f8] sm:$0xff]  ;;  %v3438_v24 = vld [vmem:[#allocation11 + $0x1d0] sm:$0xff] }
 0x270   :  { %1284 = vmatprep.subr.mxu1 %v2958_v50  ;;  %1214 = vmatpush1.msra.mxu0 %v2964_v51  ;;  %4077 = vst [vmem:[#allocation20_spill] sm:$0xff] %v3406_v48  ;;  %4078 = vst [vmem:[#allocation21_spill] sm:$0xff] %v3409_v49  ;;  %v4079_v51 = vld [vmem:[#allocation45_spill] sm:$0xff] }
 0x271   :  { %1285 = vmatpush1.msra.mxu1 %v2966_v52  ;;  %1215 = vmatprep.subr.mxu0 %v2972_v54 }
 0x272   :  { %1286 = vmatprep.subr.mxu1 %v2974_v55  ;;  %1216 = vmatpush1.msra.mxu0 %v2978_v56  ;;  %v4080_v56 = vld [vmem:[#allocation47_spill] sm:$0xff] }
 0x273   :  { %1287 = vmatpush1.msra.mxu1 %v2980_v57  ;;  %1217 = vmatprep.subr.mxu0 %v2984_v58 }
 0x274   :  { %1288 = vmatprep.subr.mxu1 %v2986_v59  ;;  %1218 = vmatpush1.msra.mxu0 %v2992_v60 }
 0x275   :  { %1289 = vmatpush1.msra.mxu1 %v2994_v61  ;;  %1219 = vmatprep.subr.mxu0 %v3000_v63  ;;  %v4081_v61 = vld [vmem:[#allocation48_spill] sm:$0xff] }
 0x276   :  { %1290 = vmatprep.subr.mxu1 %v3002_v1  ;;  %1220 = vmatpush1.msra.mxu0 %v3006_v2  ;;  %v4082_v1 = vld [vmem:[#allocation46_spill] sm:$0xff] }
 0x277   :  { %1291 = vmatpush1.msra.mxu1 %v4030_v12  ;;  %1221 = vmatprep.subr.mxu0 %v4031_v16 }
 0x278   :  { %1292 = vmatprep.subr.mxu1 %v4032_v6  ;;  %1222 = vmatpush1.msra.mxu0 %v4058_v27 }
 0x279   :  { %1293 = vmatpush1.msra.mxu1 %v4059_v28  ;;  %1223 = vmatprep.subr.mxu0 %v4060_v29 }
 0x27a   :  { %1294 = vmatprep.subr.mxu1 %v4061_v30  ;;  %1224 = vmatpush1.msra.mxu0 %v4062_v31  ;;  %v3443_v30 = vld [vmem:[#allocation11 + $0x1a8] sm:$0xff]  ;;  %v3446_v31 = vld [vmem:[#allocation11 + $0x1b8] sm:$0xff] }
 0x27b   :  { %1295 = vmatpush1.msra.mxu1 %v4063_v32  ;;  %1225 = vmatprep.subr.mxu0 %v4064_v33  ;;  %v3449_v32 = vld [vmem:[#allocation11 + $0x1a0] sm:$0xff] }
 0x27c   :  { %1296 = vmatprep.subr.mxu1 %v4065_v34  ;;  %1226 = vmatpush1.msra.mxu0 %v4066_v36 }
 0x27d   :  { %1297 = vmatpush1.msra.mxu1 %v4067_v37  ;;  %1227 = vmatprep.subr.mxu0 %v4068_v38  ;;  %v3453_v37 = vld [vmem:[#allocation11 + $0x1b0] sm:$0xff]  ;;  %v3456_v38 = vld [vmem:[#allocation11 + $0x188] sm:$0xff] }
 0x27e   :  { %1298 = vmatprep.subr.mxu1 %v4069_v39  ;;  %1228 = vmatpush1.msra.mxu0 %v4070_v40  ;;  %v3459_v39 = vld [vmem:[#allocation11 + $0x198] sm:$0xff]  ;;  %v3462_v40 = vld [vmem:[#allocation11 + $0x180] sm:$0xff] }
 0x27f   :  { %1299 = vmatpush1.msra.mxu1 %v4071_v41  ;;  %1229 = vmatprep.subr.mxu0 %v4072_v42  ;;  %v3465_v42 = vld [vmem:[#allocation11 + $0x190] sm:$0xff] }
 0x280   :  { %1300 = vmatprep.subr.mxu1 %v4073_v43  ;;  %1230 = vmatpush1.msra.mxu0 %v4074_v45  ;;  %v3468_v43 = vld [vmem:[#allocation11 + $0x168] sm:$0xff]  ;;  %v3471_v45 = vld [vmem:[#allocation11 + $0x178] sm:$0xff] }
 0x281   :  { %1263 = vmatprep.mubr.f32.mxu0 %v4075_v46  ;;  %1301 = vmatpush1.msra.mxu1 %v4076_v47  ;;  %v3474_v47 = vld [vmem:[#allocation11 + $0x160] sm:$0xff] }
 0x282   :  { %1334 = vmatprep.mubr.f32.mxu1 %v4075_v46  ;;  %1440 = vmatprep.subr.mxu0 %v3406_v48 }
 0x283   :  { %1511 = vmatprep.subr.mxu1 %v3409_v49 }
 0x320   :  { %v1024_v50 = vpop.f32.mrf.mxu0  ;;  %v1095_v58 = vpop.f32.mrf.mxu1 }
 0x321   :  { %v1100_v52 = vadd.f32 %v1024_v50, %v4079_v51  ;;  %v1102_v2 = vadd.f32 %v1095_v58, %v4082_v1  ;;  %v3477_v50 = vld [vmem:[#allocation11 + $0x170] sm:$0xff]  ;;  %v3480_v51 = vld [vmem:[#allocation11 + $0x148] sm:$0xff]  ;;  %v3498_v58 = vld [vmem:[#allocation11 + $0x120] sm:$0xff] }
 0x322   :  { %v1026_v54 = vpop.f32.mrf.mxu0  ;;  %v1097_v60 = vpop.f32.mrf.mxu1  ;;  %v3513_v1 = vld [vmem:[#allocation11 + $0x110] sm:$0xff] }
 0x323   :  { %v2450_v55 = vmul.f32 -1.442695, %v1100_v52  ;;  %v1101_v57 = vadd.f32 %v1026_v54, %v4080_v56  ;;  %v1103_v63 = vadd.f32 %v1097_v60, %v4081_v61  ;;  %v3483_v52 = vld [vmem:[#allocation11 + $0x158] sm:$0xff]  ;;  %v3486_v54 = vld [vmem:[#allocation11 + $0x140] sm:$0xff]  ;;  %v3492_v56 = vld [vmem:[#allocation11 + $0x128] sm:$0xff] }
 0x324   :  { %v3504_v60 = vld [vmem:[#allocation11 + $0x108] sm:$0xff]  ;;  %v3507_v61 = vld [vmem:[#allocation11 + $0x118] sm:$0xff] }
 0x325   :  { %2535 = vpow2.f32 %v2450_v55  ;;  %v2451_v59 = vmul.f32 -1.442695, %v1101_v57  ;;  %v2452_v12 = vmul.f32 -1.442695, %v1103_v63  ;;  %v3489_v55 = vld [vmem:[#allocation11 + $0x150] sm:$0xff]  ;;  %v3495_v57 = vld [vmem:[#allocation11 + $0x138] sm:$0xff] }
 0x326   :  { %v3510_v63 = vld [vmem:[#allocation11 + $0x100] sm:$0xff] }
 0x327   :  { %2537 = vpow2.f32 %v2451_v59  ;;  %v3501_v59 = vld [vmem:[#allocation11 + $0x130] sm:$0xff] }
 0x328   :  { %2539 = vtanh.f32 %v1102_v2  ;;  %v3516_v2 = vld [vmem:[#allocation11 + $0xe8] sm:$0xff] }
 0x329   :  { %2541 = vpow2.f32 %v2452_v12  ;;  %v3519_v12 = vld [vmem:[#allocation11 + $0xf8] sm:$0xff] }
 0x332   :  { %v2536_v16 = vpop.eup %2535 }
 0x333   :  { %v1107_v6 = vadd.f32 1.0, %v2536_v16  ;;  %v3522_v16 = vld [vmem:[#allocation11 + $0xe0] sm:$0xff] }
 0x334   :  { %v2538_v13 = vpop.eup %2537 }
 0x335   :  { %2543 = vrcp.f32 %v1107_v6  ;;  %v1113_v17 = vadd.f32 1.0, %v2538_v13  ;;  %v2540_v3 = vpop.eup %2539  ;;  %v3525_v6 = vld [vmem:[#allocation11 + $0xf0] sm:$0xff]  ;;  %v3528_v13 = vld [vmem:[#allocation11 + $0xc8] sm:$0xff] }
 0x336   :  { %v2542_v15 = vpop.eup %2541 }
 0x337   :  { %2545 = vrcp.f32 %v1113_v17  ;;  %v1120_v9 = vadd.f32 1.0, %v2542_v15  ;;  %v3531_v17 = vld [vmem:[#allocation11 + $0xd8] sm:$0xff]  ;;  %v3537_v15 = vld [vmem:[#allocation11 + $0xd0] sm:$0xff] }
 0x339   :  { %2547 = vrcp.f32 %v1120_v9  ;;  %v3549_v9 = vld [vmem:[#allocation11 + $0xb0] sm:$0xff] }
 0x342   :  { %v2544_v11 = vpop.eup %2543 }
 0x343   :  { %v1124_v19 = vmul.f32 %v2544_v11, %v2540_v3  ;;  %v3534_v3 = vld [vmem:[#allocation11 + $0xc0] sm:$0xff]  ;;  %v3540_v11 = vld [vmem:[#allocation11 + $0xa8] sm:$0xff] }
 0x344   :  { %v2546_v10 = vpop.eup %2545 }
 0x345   :  { %v1123_v26 = vmul.f32 %v2546_v10, %v3333_v14  ;;  %v3546_v10 = vld [vmem:[#allocation11 + $0xa0] sm:$0xff] }
 0x346   :  { %v2548_v53 = vpop.eup %2547 }
 0x347   :  { %v3417_v0 = vadd.f32 %v1124_v19, %v1123_v26  ;;  %v3543_v19 = vld [vmem:[#allocation11 + $0xb8] sm:$0xff]  ;;  %v3552_v26 = vld [vmem:[#allocation11 + $0x88] sm:$0xff] }
 0x349   :  { %2549 = vtanh.f32 %v3417_v0 }
 0x356   :  { %v2550_v35 = vpop.eup %2549 }
 0x357   :  { %v1127_v62 = vmul.f32 %v2550_v35, %v2548_v53  ;;  %v3555_v53 = vld [vmem:[#allocation11 + $0x98] sm:$0xff]  ;;  %v3558_v35 = vld [vmem:[#allocation11 + $0x80] sm:$0xff] }
 0x358   :  { %4083 = vst [vmem:[#allocation22_spill] sm:$0xff] %v3558_v35 }
 0x359   :  { %v1129_v5 = vcombine.high %v1127_v62, %v1127_v62  ;;  %v1136_v18 = vrot.slane %v1127_v62, %v3254_v8  ;;  %1264 = vmatmul.mubr.f32.vlgmr.msra.gmra.mxu0 %v1127_v62  ;;  %1335 = vmatmul.mubr.f32.vlgmr.msra.gmra.mxu1 %v1127_v62  ;;  %v3561_v62 = vld [vmem:[#allocation11 + $0x90] sm:$0xff] }
 0x35a   :  { %1441 = vmatpush1.msra.mxu0 %v3421_v7  ;;  %1512 = vmatpush1.msra.mxu1 %v3424_v4  ;;  %4084 = vst [vmem:[#allocation18_spill] sm:$0xff] %v3561_v62 }
 0x35b   :  { %v1143_v14 = vrot.slane %v1129_v5, %v3254_v8  ;;  %v1144_v44 = vcombine.high %v1136_v18, %v1136_v18  ;;  %v1152_v20 = vrot.slane %v1136_v18, %v3254_v8  ;;  %2453 = vst.sshfl [vmem:[#allocation13 + $0x2] sm:$0x1 pattern:$0x73625140] %v1136_v18  ;;  %1442 = vmatprep.subr.mxu0 %v3429_v21  ;;  %v3564_v5 = vld [vmem:[#allocation11 + $0x68] sm:$0xff]  ;;  %v3567_v18 = vld [vmem:[#allocation11 + $0x78] sm:$0xff] }
 0x35c   :  { %1513 = vmatprep.subr.mxu1 %v3432_v22  ;;  %1443 = vmatpush1.msra.mxu0 %v3435_v23  ;;  %4085 = vst [vmem:[#allocation19_spill] sm:$0xff] %v3564_v5  ;;  %4086 = vst [vmem:[#allocation41_spill] sm:$0xff] %v3567_v18 }
 0x35d   :  { %1514 = vmatpush1.msra.mxu1 %v3438_v24  ;;  %v1145_v25 = vcombine.high %v1143_v14, %v1143_v14  ;;  %v1159_v27 = vrot.slane %v1143_v14, %v3254_v8  ;;  %v1166_v28 = vrot.slane %v1144_v44, %v3254_v8  ;;  %v1174_v29 = vcombine.high %v1152_v20, %v1152_v20  ;;  %v3576_v20 = vld [vmem:[#allocation11 + $0x48] sm:$0xff] }
 0x35e   :  { %2454 = vst.sshfl [vmem:[#allocation13 + $0xa] sm:$0x1 pattern:$0x73625140] %v1144_v44  ;;  %1444 = vmatprep.subr.mxu0 %v3443_v30  ;;  %1515 = vmatprep.subr.mxu1 %v3446_v31  ;;  %v3573_v44 = vld [vmem:[#allocation11 + $0x70] sm:$0xff]  ;;  %4089 = vst [vmem:[#allocation42_spill] sm:$0xff] %v3576_v20 }
 0x35f   :  { %2455 = vst.sshfl [vmem:[#allocation13 + $0x22] sm:$0x1 pattern:$0x73625140] %v1143_v14  ;;  %1445 = vmatpush1.msra.mxu0 %v3449_v32  ;;  %v1173_v33 = vrot.slane %v1145_v25, %v3254_v8  ;;  %v1175_v34 = vcombine.high %v1159_v27, %v1159_v27  ;;  %v1176_v36 = vcombine.high %v1166_v28, %v1166_v28  ;;  %1188 = vst [vmem:[#allocation13 + $0x12] sm:$0x1] %v1174_v29 }
 0x360   :  { %2456 = vst.sshfl [vmem:[#allocation13 + $0x2a] sm:$0x1 pattern:$0x73625140] %v1145_v25  ;;  %1516 = vmatpush1.msra.mxu1 %v3453_v37  ;;  %1446 = vmatprep.subr.mxu0 %v3456_v38  ;;  %v3570_v14 = vld [vmem:[#allocation11 + $0x60] sm:$0xff]  ;;  %4088 = vst [vmem:[#allocation44_spill] sm:$0xff] %v3573_v44 }
 0x361   :  { %1517 = vmatprep.subr.mxu1 %v3459_v39  ;;  %1447 = vmatpush1.msra.mxu0 %v3462_v40  ;;  %v1177_v41 = vcombine.high %v1173_v33, %v1173_v33  ;;  %1189 = vst [vmem:[#allocation13 + $0x1a] sm:$0x1] %v1176_v36  ;;  %1192 = vst [vmem:[#allocation13 + $0x32] sm:$0x1] %v1175_v34  ;;  %v3579_v25 = vld [vmem:[#allocation11 + $0x58] sm:$0xff]  ;;  %v3582_v27 = vld [vmem:[#allocation11 + $0x40] sm:$0xff] }
 0x362   :  { %1518 = vmatpush1.msra.mxu1 %v3465_v42  ;;  %1448 = vmatprep.subr.mxu0 %v3468_v43  ;;  %4087 = vst [vmem:[#allocation43_spill] sm:$0xff] %v3570_v14  ;;  %4090 = vst [vmem:[#allocation23_spill] sm:$0xff] %v3579_v25  ;;  %v3585_v28 = vld [vmem:[#allocation11 + $0x50] sm:$0xff]  ;;  %v3588_v29 = vld [vmem:[#allocation11 + $0x28] sm:$0xff] }
 0x363   :  { %1519 = vmatprep.subr.mxu1 %v3471_v45  ;;  %1449 = vmatpush1.msra.mxu0 %v3474_v47  ;;  %1193 = vst [vmem:[#allocation13 + $0x3a] sm:$0x1] %v1177_v41  ;;  %4091 = vst [vmem:[#allocation24_spill] sm:$0xff] %v3582_v27  ;;  %v3591_v33 = vld [vmem:[#allocation11 + $0x38] sm:$0xff]  ;;  %v3594_v34 = vld [vmem:[#allocation11 + $0x20] sm:$0xff] }
 0x364   :  { %1520 = vmatpush1.msra.mxu1 %v3477_v50  ;;  %1450 = vmatprep.subr.mxu0 %v3480_v51  ;;  %4092 = vst [vmem:[#allocation25_spill] sm:$0xff] %v3585_v28  ;;  %4093 = vst [vmem:[#allocation26_spill] sm:$0xff] %v3588_v29  ;;  %v3597_v36 = vld [vmem:[#allocation11 + $0x30] sm:$0xff]  ;;  %v3600_v41 = vld [vmem:[#allocation11 + $0x8] sm:$0xff] }
 0x365   :  { %1521 = vmatprep.subr.mxu1 %v3483_v52  ;;  %1451 = vmatpush1.msra.mxu0 %v3486_v54  ;;  %4094 = vst [vmem:[#allocation27_spill] sm:$0xff] %v3591_v33  ;;  %4095 = vst [vmem:[#allocation28_spill] sm:$0xff] %v3594_v34 }
 0x366   :  { %1522 = vmatpush1.msra.mxu1 %v3489_v55  ;;  %1452 = vmatprep.subr.mxu0 %v3492_v56  ;;  %4096 = vst [vmem:[#allocation29_spill] sm:$0xff] %v3597_v36  ;;  %4097 = vst [vmem:[#allocation30_spill] sm:$0xff] %v3600_v41 }
 0x367   :  { %1523 = vmatprep.subr.mxu1 %v3495_v57  ;;  %1453 = vmatpush1.msra.mxu0 %v3498_v58 }
 0x368   :  { %1524 = vmatpush1.msra.mxu1 %v3501_v59  ;;  %1454 = vmatprep.subr.mxu0 %v3504_v60 }
 0x369   :  { %1525 = vmatprep.subr.mxu1 %v3507_v61  ;;  %1455 = vmatpush1.msra.mxu0 %v3510_v63 }
 0x36a   :  { %1526 = vmatpush1.msra.mxu1 %v3513_v1  ;;  %1456 = vmatprep.subr.mxu0 %v3516_v2 }
 0x36b   :  { %1527 = vmatprep.subr.mxu1 %v3519_v12  ;;  %1457 = vmatpush1.msra.mxu0 %v3522_v16 }
 0x36c   :  { %1528 = vmatpush1.msra.mxu1 %v3525_v6  ;;  %1458 = vmatprep.subr.mxu0 %v3528_v13 }
 0x36d   :  { %1529 = vmatprep.subr.mxu1 %v3531_v17  ;;  %1459 = vmatpush1.msra.mxu0 %v3534_v3 }
 0x36e   :  { %1530 = vmatpush1.msra.mxu1 %v3537_v15  ;;  %1460 = vmatprep.subr.mxu0 %v3540_v11 }
 0x36f   :  { %1531 = vmatprep.subr.mxu1 %v3543_v19  ;;  %1461 = vmatpush1.msra.mxu0 %v3546_v10 }
 0x370   :  { %1532 = vmatpush1.msra.mxu1 %v3549_v9  ;;  %1462 = vmatprep.subr.mxu0 %v3552_v26 }
 0x371   :  { %1533 = vmatprep.subr.mxu1 %v3555_v53  ;;  %1463 = vmatpush1.msra.mxu0 %v3558_v35 }
 0x372   :  { %1534 = vmatpush1.msra.mxu1 %v3561_v62  ;;  %1464 = vmatprep.subr.mxu0 %v3564_v5  ;;  %v4104_v5 = vld [vmem:[#allocation50_spill] sm:$0xff] }
 0x373   :  { %1535 = vmatprep.subr.mxu1 %v3567_v18  ;;  %1465 = vmatpush1.msra.mxu0 %v3570_v14  ;;  %v4103_v18 = vld [vmem:[#allocation52_spill] sm:$0xff] }
 0x374   :  { %1536 = vmatpush1.msra.mxu1 %v3573_v44  ;;  %1466 = vmatprep.subr.mxu0 %v3576_v20 }
 0x375   :  { %1537 = vmatprep.subr.mxu1 %v3579_v25  ;;  %1467 = vmatpush1.msra.mxu0 %v3582_v27  ;;  %v4102_v25 = vld [vmem:[#allocation51_spill] sm:$0xff] }
 0x376   :  { %1538 = vmatpush1.msra.mxu1 %v3585_v28  ;;  %1468 = vmatprep.subr.mxu0 %v3588_v29  ;;  %v3603_v28 = vld [vmem:[#allocation11 + $0x18] sm:$0xff]  ;;  %v3606_v29 = vld [vmem:[#allocation11] sm:$0xff] }
 0x377   :  { %1539 = vmatprep.subr.mxu1 %v3591_v33  ;;  %1469 = vmatpush1.msra.mxu0 %v3594_v34  ;;  %4098 = vst [vmem:[#allocation31_spill] sm:$0xff] %v3603_v28  ;;  %4099 = vst [vmem:[#allocation32_spill] sm:$0xff] %v3606_v29  ;;  %v3610_v33 = vld [vmem:[#allocation11 + $0x10] sm:$0xff] }
 0x378   :  { %1540 = vmatpush1.msra.mxu1 %v3597_v36  ;;  %1470 = vmatprep.subr.mxu0 %v3600_v41  ;;  %4100 = vst [vmem:[#allocation33_spill] sm:$0xff] %v3610_v33  ;;  %v4101_v36 = vld [vmem:[#allocation49_spill] sm:$0xff] }
 0x379   :  { %1541 = vmatprep.subr.mxu1 %v3603_v28  ;;  %1471 = vmatpush1.msra.mxu0 %v3606_v29 }
 0x37a   :  { %1504 = vmatprep.mubr.f32.mxu0 %v4075_v46  ;;  %1542 = vmatpush1.msra.mxu1 %v3610_v33 }
 0x37b   :  { %1575 = vmatprep.mubr.f32.mxu1 %v4075_v46  ;;  %1681 = vmatprep.subr.mxu0 %v3406_v48 }
 0x37c   :  { %1752 = vmatprep.subr.mxu1 %v3409_v49 }
 0x419   :  { %v1265_v41 = vpop.f32.mrf.mxu0  ;;  %v1336_v29 = vpop.f32.mrf.mxu1 }
 0x41a   :  { %v1341_v34 = vadd.f32 %v1265_v41, %v4101_v36  ;;  %v1343_v46 = vadd.f32 %v1336_v29, %v4104_v5 }
 0x41b   :  { %v1267_v28 = vpop.f32.mrf.mxu0  ;;  %v1338_v14 = vpop.f32.mrf.mxu1 }
 0x41c   :  { %v2457_v27 = vmul.f32 -1.442695, %v1341_v34  ;;  %v1342_v20 = vadd.f32 %v1267_v28, %v4102_v25  ;;  %v1344_v33 = vadd.f32 %v1338_v14, %v4103_v18 }
 0x41e   :  { %2551 = vpow2.f32 %v2457_v27  ;;  %v2458_v44 = vmul.f32 -1.442695, %v1342_v20  ;;  %v2459_v62 = vmul.f32 -1.442695, %v1344_v33 }
 0x420   :  { %2553 = vpow2.f32 %v2458_v44 }
 0x421   :  { %2555 = vtanh.f32 %v1343_v46 }
 0x422   :  { %2557 = vpow2.f32 %v2459_v62 }
 0x42b   :  { %v2552_v48 = vpop.eup %2551 }
 0x42c   :  { %v1348_v35 = vadd.f32 1.0, %v2552_v48 }
 0x42d   :  { %v2554_v49 = vpop.eup %2553 }
 0x42e   :  { %2559 = vrcp.f32 %v1348_v35  ;;  %v1354_v36 = vadd.f32 1.0, %v2554_v49  ;;  %v2556_v34 = vpop.eup %2555 }
 0x42f   :  { %v2558_v25 = vpop.eup %2557 }
 0x430   :  { %2561 = vrcp.f32 %v1354_v36  ;;  %v1361_v44 = vadd.f32 1.0, %v2558_v25 }
 0x432   :  { %2563 = vrcp.f32 %v1361_v44  ;;  %v4105_v44 = vld [vmem:[#allocation22_spill] sm:$0xff] }
 0x43b   :  { %v2560_v27 = vpop.eup %2559 }
 0x43c   :  { %v1365_v28 = vmul.f32 %v2560_v27, %v2556_v34 }
 0x43d   :  { %v2562_v20 = vpop.eup %2561 }
 0x43e   :  { %v1364_v41 = vmul.f32 %v2562_v20, %v3417_v0 }
 0x43f   :  { %v2564_v48 = vpop.eup %2563 }
 0x440   :  { %v3621_v18 = vadd.f32 %v1365_v28, %v1364_v41  ;;  %v4106_v41 = vld [vmem:[#allocation18_spill] sm:$0xff] }
 0x442   :  { %2565 = vtanh.f32 %v3621_v18 }
 0x44f   :  { %v2566_v46 = vpop.eup %2565 }
 0x450   :  { %v1368_v5 = vmul.f32 %v2566_v46, %v2564_v48  ;;  %v4107_v48 = vld [vmem:[#allocation19_spill] sm:$0xff]  ;;  %v4108_v46 = vld [vmem:[#allocation41_spill] sm:$0xff] }
 0x452   :  { %v1370_v62 = vcombine.high %v1368_v5, %v1368_v5  ;;  %v1377_v49 = vrot.slane %v1368_v5, %v3254_v8  ;;  %1505 = vmatmul.mubr.f32.vlgmr.msra.gmra.mxu0 %v1368_v5  ;;  %1576 = vmatmul.mubr.f32.vlgmr.msra.gmra.mxu1 %v1368_v5  ;;  %v4109_v5 = vld [vmem:[#allocation43_spill] sm:$0xff] }
 0x453   :  { %1682 = vmatpush1.msra.mxu0 %v3421_v7  ;;  %1753 = vmatpush1.msra.mxu1 %v3424_v4 }
 0x454   :  { %v1384_v35 = vrot.slane %v1370_v62, %v3254_v8  ;;  %v1385_v0 = vcombine.high %v1377_v49, %v1377_v49  ;;  %v1393_v14 = vrot.slane %v1377_v49, %v3254_v8  ;;  %2460 = vst.sshfl [vmem:[#allocation13 + $0x3] sm:$0x1 pattern:$0x73625140] %v1377_v49  ;;  %1683 = vmatprep.subr.mxu0 %v3429_v21  ;;  %v4110_v62 = vld [vmem:[#allocation44_spill] sm:$0xff]  ;;  %v4111_v49 = vld [vmem:[#allocation42_spill] sm:$0xff] }
 0x455   :  { %1754 = vmatprep.subr.mxu1 %v3432_v22  ;;  %1684 = vmatpush1.msra.mxu0 %v3435_v23 }
 0x456   :  { %1755 = vmatpush1.msra.mxu1 %v3438_v24  ;;  %v1386_v29 = vcombine.high %v1384_v35, %v1384_v35  ;;  %v1400_v33 = vrot.slane %v1384_v35, %v3254_v8  ;;  %v1407_v36 = vrot.slane %v1385_v0, %v3254_v8  ;;  %v1415_v34 = vcombine.high %v1393_v14, %v1393_v14  ;;  %v4114_v14 = vld [vmem:[#allocation25_spill] sm:$0xff] }
 0x457   :  { %2461 = vst.sshfl [vmem:[#allocation13 + $0xb] sm:$0x1 pattern:$0x73625140] %v1385_v0  ;;  %1685 = vmatprep.subr.mxu0 %v3443_v30  ;;  %1756 = vmatprep.subr.mxu1 %v3446_v31  ;;  %v4113_v0 = vld [vmem:[#allocation24_spill] sm:$0xff] }
 0x458   :  { %2462 = vst.sshfl [vmem:[#allocation13 + $0x23] sm:$0x1 pattern:$0x73625140] %v1384_v35  ;;  %1686 = vmatpush1.msra.mxu0 %v3449_v32  ;;  %v1414_v25 = vrot.slane %v1386_v29, %v3254_v8  ;;  %v1416_v27 = vcombine.high %v1400_v33, %v1400_v33  ;;  %v1417_v28 = vcombine.high %v1407_v36, %v1407_v36  ;;  %1429 = vst [vmem:[#allocation13 + $0x13] sm:$0x1] %v1415_v34 }
 0x459   :  { %2463 = vst.sshfl [vmem:[#allocation13 + $0x2b] sm:$0x1 pattern:$0x73625140] %v1386_v29  ;;  %1757 = vmatpush1.msra.mxu1 %v3453_v37  ;;  %1687 = vmatprep.subr.mxu0 %v3456_v38  ;;  %v4112_v35 = vld [vmem:[#allocation23_spill] sm:$0xff]  ;;  %v4115_v29 = vld [vmem:[#allocation26_spill] sm:$0xff] }
 0x45a   :  { %1758 = vmatprep.subr.mxu1 %v3459_v39  ;;  %1688 = vmatpush1.msra.mxu0 %v3462_v40  ;;  %v1418_v20 = vcombine.high %v1414_v25, %v1414_v25  ;;  %1430 = vst [vmem:[#allocation13 + $0x1b] sm:$0x1] %v1417_v28  ;;  %1433 = vst [vmem:[#allocation13 + $0x33] sm:$0x1] %v1416_v27  ;;  %v4116_v33 = vld [vmem:[#allocation27_spill] sm:$0xff]  ;;  %v4117_v36 = vld [vmem:[#allocation28_spill] sm:$0xff] }
 0x45b   :  { %1759 = vmatpush1.msra.mxu1 %v3465_v42  ;;  %1689 = vmatprep.subr.mxu0 %v3468_v43  ;;  %v4118_v34 = vld [vmem:[#allocation29_spill] sm:$0xff]  ;;  %v4119_v25 = vld [vmem:[#allocation30_spill] sm:$0xff]  ;;  %v4120_v27 = vld [vmem:[#allocation31_spill] sm:$0xff] }
 0x45c   :  { %1760 = vmatprep.subr.mxu1 %v3471_v45  ;;  %1690 = vmatpush1.msra.mxu0 %v3474_v47  ;;  %1434 = vst [vmem:[#allocation13 + $0x3b] sm:$0x1] %v1418_v20  ;;  %v4121_v28 = vld [vmem:[#allocation32_spill] sm:$0xff]  ;;  %v4122_v20 = vmov 0.0  }
 0x45d   :  { %1761 = vmatpush1.msra.mxu1 %v3477_v50  ;;  %1691 = vmatprep.subr.mxu0 %v3480_v51 }
 0x45e   :  { %1762 = vmatprep.subr.mxu1 %v3483_v52  ;;  %1692 = vmatpush1.msra.mxu0 %v3486_v54 }
 0x45f   :  { %1763 = vmatpush1.msra.mxu1 %v3489_v55  ;;  %1693 = vmatprep.subr.mxu0 %v3492_v56 }
 0x460   :  { %1764 = vmatprep.subr.mxu1 %v3495_v57  ;;  %1694 = vmatpush1.msra.mxu0 %v3498_v58 }
 0x461   :  { %1765 = vmatpush1.msra.mxu1 %v3501_v59  ;;  %1695 = vmatprep.subr.mxu0 %v3504_v60 }
 0x462   :  { %1766 = vmatprep.subr.mxu1 %v3507_v61  ;;  %1696 = vmatpush1.msra.mxu0 %v3510_v63 }
 0x463   :  { %1767 = vmatpush1.msra.mxu1 %v3513_v1  ;;  %1697 = vmatprep.subr.mxu0 %v3516_v2 }
 0x464   :  { %1768 = vmatprep.subr.mxu1 %v3519_v12  ;;  %1698 = vmatpush1.msra.mxu0 %v3522_v16 }
 0x465   :  { %1769 = vmatpush1.msra.mxu1 %v3525_v6  ;;  %1699 = vmatprep.subr.mxu0 %v3528_v13 }
 0x466   :  { %1770 = vmatprep.subr.mxu1 %v3531_v17  ;;  %1700 = vmatpush1.msra.mxu0 %v3534_v3 }
 0x467   :  { %1771 = vmatpush1.msra.mxu1 %v3537_v15  ;;  %1701 = vmatprep.subr.mxu0 %v3540_v11 }
 0x468   :  { %1772 = vmatprep.subr.mxu1 %v3543_v19  ;;  %1702 = vmatpush1.msra.mxu0 %v3546_v10 }
 0x469   :  { %1773 = vmatpush1.msra.mxu1 %v3549_v9  ;;  %1703 = vmatprep.subr.mxu0 %v3552_v26 }
 0x46a   :  { %1774 = vmatprep.subr.mxu1 %v3555_v53  ;;  %1704 = vmatpush1.msra.mxu0 %v4105_v44 }
 0x46b   :  { %1775 = vmatpush1.msra.mxu1 %v4106_v41  ;;  %1705 = vmatprep.subr.mxu0 %v4107_v48  ;;  %v4129_v48 = vld [vmem:[#allocation54_spill] sm:$0xff] }
 0x46c   :  { %1776 = vmatprep.subr.mxu1 %v4108_v46  ;;  %1706 = vmatpush1.msra.mxu0 %v4109_v5  ;;  %v4128_v46 = vld [vmem:[#allocation56_spill] sm:$0xff] }
 0x46d   :  { %1777 = vmatpush1.msra.mxu1 %v4110_v62  ;;  %1707 = vmatprep.subr.mxu0 %v4111_v49 }
 0x46e   :  { %1778 = vmatprep.subr.mxu1 %v4112_v35  ;;  %1708 = vmatpush1.msra.mxu0 %v4113_v0  ;;  %v4123_v35 = vld [vmem:[#allocation33_spill] sm:$0xff] }
 0x46f   :  { %1779 = vmatpush1.msra.mxu1 %v4114_v14  ;;  %1709 = vmatprep.subr.mxu0 %v4115_v29  ;;  %v4124_v14 = vld [vmem:[#allocation20_spill] sm:$0xff]  ;;  %v4125_v29 = vld [vmem:[#allocation21_spill] sm:$0xff] }
 0x470   :  { %1780 = vmatprep.subr.mxu1 %v4116_v33  ;;  %1710 = vmatpush1.msra.mxu0 %v4117_v36  ;;  %v4126_v36 = vld [vmem:[#allocation53_spill] sm:$0xff] }
 0x471   :  { %1781 = vmatpush1.msra.mxu1 %v4118_v34  ;;  %1711 = vmatprep.subr.mxu0 %v4119_v25  ;;  %v4127_v25 = vld [vmem:[#allocation55_spill] sm:$0xff] }
 0x472   :  { %1782 = vmatprep.subr.mxu1 %v4120_v27  ;;  %1712 = vmatpush1.msra.mxu0 %v4121_v28 }
 0x473   :  { %1745 = vmatprep.mubr.f32.mxu0 %v4122_v20  ;;  %1783 = vmatpush1.msra.mxu1 %v4123_v35 }
 0x474   :  { %1816 = vmatprep.mubr.f32.mxu1 %v4122_v20  ;;  %1922 = vmatprep.subr.mxu0 %v4124_v14 }
 0x475   :  { %1993 = vmatprep.subr.mxu1 %v4125_v29 }
 0x512   :  { %v1506_v33 = vpop.f32.mrf.mxu0  ;;  %v1577_v27 = vpop.f32.mrf.mxu1 }
 0x513   :  { %v1582_v0 = vadd.f32 %v1506_v33, %v4126_v36  ;;  %v1584_v20 = vadd.f32 %v1577_v27, %v4129_v48 }
 0x514   :  { %v1508_v34 = vpop.f32.mrf.mxu0  ;;  %v1579_v5 = vpop.f32.mrf.mxu1 }
 0x515   :  { %v2464_v49 = vmul.f32 -1.442695, %v1582_v0  ;;  %v1583_v62 = vadd.f32 %v1508_v34, %v4127_v25  ;;  %v1585_v35 = vadd.f32 %v1579_v5, %v4128_v46 }
 0x517   :  { %2567 = vpow2.f32 %v2464_v49  ;;  %v2465_v28 = vmul.f32 -1.442695, %v1583_v62  ;;  %v2466_v41 = vmul.f32 -1.442695, %v1585_v35 }
 0x519   :  { %2569 = vpow2.f32 %v2465_v28 }
 0x51a   :  { %2571 = vtanh.f32 %v1584_v20 }
 0x51b   :  { %2573 = vpow2.f32 %v2466_v41 }
 0x524   :  { %v2568_v14 = vpop.eup %2567 }
 0x525   :  { %v1589_v44 = vadd.f32 1.0, %v2568_v14 }
 0x526   :  { %v2570_v29 = vpop.eup %2569 }
 0x527   :  { %2575 = vrcp.f32 %v1589_v44  ;;  %v1595_v33 = vadd.f32 1.0, %v2570_v29  ;;  %v2572_v0 = vpop.eup %2571 }
 0x528   :  { %v2574_v36 = vpop.eup %2573 }
 0x529   :  { %2577 = vrcp.f32 %v1595_v33  ;;  %v1602_v25 = vadd.f32 1.0, %v2574_v36 }
 0x52b   :  { %2579 = vrcp.f32 %v1602_v25  ;;  %v4130_v25 = vld [vmem:[#allocation22_spill] sm:$0xff] }
 0x534   :  { %v2576_v49 = vpop.eup %2575 }
 0x535   :  { %v1606_v34 = vmul.f32 %v2576_v49, %v2572_v0 }
 0x536   :  { %v2578_v62 = vpop.eup %2577 }
 0x537   :  { %v1605_v28 = vmul.f32 %v2578_v62, %v3621_v18 }
 0x538   :  { %v2580_v48 = vpop.eup %2579 }
 0x539   :  { %v3701_v46 = vadd.f32 %v1606_v34, %v1605_v28  ;;  %v4131_v28 = vld [vmem:[#allocation18_spill] sm:$0xff] }
 0x53b   :  { %2581 = vtanh.f32 %v3701_v46 }
 0x548   :  { %v2582_v5 = vpop.eup %2581 }
 0x549   :  { %v1609_v35 = vmul.f32 %v2582_v5, %v2580_v48  ;;  %v4132_v48 = vld [vmem:[#allocation19_spill] sm:$0xff]  ;;  %v4133_v5 = vld [vmem:[#allocation41_spill] sm:$0xff] }
 0x54b   :  { %v1611_v41 = vcombine.high %v1609_v35, %v1609_v35  ;;  %v1618_v44 = vrot.slane %v1609_v35, %v3254_v8  ;;  %1746 = vmatmul.mubr.f32.vlgmr.msra.gmra.mxu0 %v1609_v35  ;;  %1817 = vmatmul.mubr.f32.vlgmr.msra.gmra.mxu1 %v1609_v35  ;;  %v4134_v35 = vld [vmem:[#allocation43_spill] sm:$0xff] }
 0x54c   :  { %1923 = vmatpush1.msra.mxu0 %v3421_v7  ;;  %1994 = vmatpush1.msra.mxu1 %v3424_v4 }
 0x54d   :  { %v1625_v14 = vrot.slane %v1611_v41, %v3254_v8  ;;  %v1626_v18 = vcombine.high %v1618_v44, %v1618_v44  ;;  %v1634_v29 = vrot.slane %v1618_v44, %v3254_v8  ;;  %2467 = vst.sshfl [vmem:[#allocation13 + $0x4] sm:$0x1 pattern:$0x73625140] %v1618_v44  ;;  %1924 = vmatprep.subr.mxu0 %v3429_v21  ;;  %v4135_v41 = vld [vmem:[#allocation44_spill] sm:$0xff]  ;;  %v4136_v44 = vld [vmem:[#allocation42_spill] sm:$0xff] }
 0x54e   :  { %1995 = vmatprep.subr.mxu1 %v3432_v22  ;;  %1925 = vmatpush1.msra.mxu0 %v3435_v23 }
 0x54f   :  { %1996 = vmatpush1.msra.mxu1 %v3438_v24  ;;  %v1627_v27 = vcombine.high %v1625_v14, %v1625_v14  ;;  %v1641_v20 = vrot.slane %v1625_v14, %v3254_v8  ;;  %v1648_v33 = vrot.slane %v1626_v18, %v3254_v8  ;;  %v1656_v0 = vcombine.high %v1634_v29, %v1634_v29  ;;  %v4139_v29 = vld [vmem:[#allocation25_spill] sm:$0xff] }
 0x550   :  { %2468 = vst.sshfl [vmem:[#allocation13 + $0xc] sm:$0x1 pattern:$0x73625140] %v1626_v18  ;;  %1926 = vmatprep.subr.mxu0 %v3443_v30  ;;  %1997 = vmatprep.subr.mxu1 %v3446_v31  ;;  %v4138_v18 = vld [vmem:[#allocation24_spill] sm:$0xff] }
 0x551   :  { %2469 = vst.sshfl [vmem:[#allocation13 + $0x24] sm:$0x1 pattern:$0x73625140] %v1625_v14  ;;  %1927 = vmatpush1.msra.mxu0 %v3449_v32  ;;  %v1655_v36 = vrot.slane %v1627_v27, %v3254_v8  ;;  %v1657_v49 = vcombine.high %v1641_v20, %v1641_v20  ;;  %v1658_v34 = vcombine.high %v1648_v33, %v1648_v33  ;;  %1670 = vst [vmem:[#allocation13 + $0x14] sm:$0x1] %v1656_v0 }
 0x552   :  { %2470 = vst.sshfl [vmem:[#allocation13 + $0x2c] sm:$0x1 pattern:$0x73625140] %v1627_v27  ;;  %1998 = vmatpush1.msra.mxu1 %v3453_v37  ;;  %1928 = vmatprep.subr.mxu0 %v3456_v38  ;;  %v4137_v14 = vld [vmem:[#allocation23_spill] sm:$0xff]  ;;  %v4140_v27 = vld [vmem:[#allocation26_spill] sm:$0xff] }
 0x553   :  { %1999 = vmatprep.subr.mxu1 %v3459_v39  ;;  %1929 = vmatpush1.msra.mxu0 %v3462_v40  ;;  %v1659_v62 = vcombine.high %v1655_v36, %v1655_v36  ;;  %1671 = vst [vmem:[#allocation13 + $0x1c] sm:$0x1] %v1658_v34  ;;  %1674 = vst [vmem:[#allocation13 + $0x34] sm:$0x1] %v1657_v49  ;;  %v4141_v20 = vld [vmem:[#allocation27_spill] sm:$0xff]  ;;  %v4142_v33 = vld [vmem:[#allocation28_spill] sm:$0xff] }
 0x554   :  { %2000 = vmatpush1.msra.mxu1 %v3465_v42  ;;  %1930 = vmatprep.subr.mxu0 %v3468_v43  ;;  %v4143_v0 = vld [vmem:[#allocation29_spill] sm:$0xff]  ;;  %v4144_v36 = vld [vmem:[#allocation30_spill] sm:$0xff]  ;;  %v4145_v49 = vld [vmem:[#allocation31_spill] sm:$0xff] }
 0x555   :  { %2001 = vmatprep.subr.mxu1 %v3471_v45  ;;  %1931 = vmatpush1.msra.mxu0 %v3474_v47  ;;  %1675 = vst [vmem:[#allocation13 + $0x3c] sm:$0x1] %v1659_v62  ;;  %v4146_v34 = vld [vmem:[#allocation32_spill] sm:$0xff]  ;;  %v4147_v62 = vmov 0.0  }
 0x556   :  { %2002 = vmatpush1.msra.mxu1 %v3477_v50  ;;  %1932 = vmatprep.subr.mxu0 %v3480_v51 }
 0x557   :  { %2003 = vmatprep.subr.mxu1 %v3483_v52  ;;  %1933 = vmatpush1.msra.mxu0 %v3486_v54 }
 0x558   :  { %2004 = vmatpush1.msra.mxu1 %v3489_v55  ;;  %1934 = vmatprep.subr.mxu0 %v3492_v56 }
 0x559   :  { %2005 = vmatprep.subr.mxu1 %v3495_v57  ;;  %1935 = vmatpush1.msra.mxu0 %v3498_v58 }
 0x55a   :  { %2006 = vmatpush1.msra.mxu1 %v3501_v59  ;;  %1936 = vmatprep.subr.mxu0 %v3504_v60 }
 0x55b   :  { %2007 = vmatprep.subr.mxu1 %v3507_v61  ;;  %1937 = vmatpush1.msra.mxu0 %v3510_v63 }
 0x55c   :  { %2008 = vmatpush1.msra.mxu1 %v3513_v1  ;;  %1938 = vmatprep.subr.mxu0 %v3516_v2 }
 0x55d   :  { %2009 = vmatprep.subr.mxu1 %v3519_v12  ;;  %1939 = vmatpush1.msra.mxu0 %v3522_v16 }
 0x55e   :  { %2010 = vmatpush1.msra.mxu1 %v3525_v6  ;;  %1940 = vmatprep.subr.mxu0 %v3528_v13 }
 0x55f   :  { %2011 = vmatprep.subr.mxu1 %v3531_v17  ;;  %1941 = vmatpush1.msra.mxu0 %v3534_v3 }
 0x560   :  { %2012 = vmatpush1.msra.mxu1 %v3537_v15  ;;  %1942 = vmatprep.subr.mxu0 %v3540_v11 }
 0x561   :  { %2013 = vmatprep.subr.mxu1 %v3543_v19  ;;  %1943 = vmatpush1.msra.mxu0 %v3546_v10 }
 0x562   :  { %2014 = vmatpush1.msra.mxu1 %v3549_v9  ;;  %1944 = vmatprep.subr.mxu0 %v3552_v26 }
 0x563   :  { %2015 = vmatprep.subr.mxu1 %v3555_v53  ;;  %1945 = vmatpush1.msra.mxu0 %v4130_v25 }
 0x564   :  { %2016 = vmatpush1.msra.mxu1 %v4131_v28  ;;  %1946 = vmatprep.subr.mxu0 %v4132_v48  ;;  %v4154_v48 = vld [vmem:[#allocation58_spill] sm:$0xff] }
 0x565   :  { %2017 = vmatprep.subr.mxu1 %v4133_v5  ;;  %1947 = vmatpush1.msra.mxu0 %v4134_v35  ;;  %v4153_v5 = vld [vmem:[#allocation60_spill] sm:$0xff] }
 0x566   :  { %2018 = vmatpush1.msra.mxu1 %v4135_v41  ;;  %1948 = vmatprep.subr.mxu0 %v4136_v44 }
 0x567   :  { %2019 = vmatprep.subr.mxu1 %v4137_v14  ;;  %1949 = vmatpush1.msra.mxu0 %v4138_v18  ;;  %v4148_v14 = vld [vmem:[#allocation33_spill] sm:$0xff] }
 0x568   :  { %2020 = vmatpush1.msra.mxu1 %v4139_v29  ;;  %1950 = vmatprep.subr.mxu0 %v4140_v27  ;;  %v4149_v29 = vld [vmem:[#allocation20_spill] sm:$0xff]  ;;  %v4150_v27 = vld [vmem:[#allocation21_spill] sm:$0xff] }
 0x569   :  { %2021 = vmatprep.subr.mxu1 %v4141_v20  ;;  %1951 = vmatpush1.msra.mxu0 %v4142_v33  ;;  %v4151_v33 = vld [vmem:[#allocation57_spill] sm:$0xff] }
 0x56a   :  { %2022 = vmatpush1.msra.mxu1 %v4143_v0  ;;  %1952 = vmatprep.subr.mxu0 %v4144_v36  ;;  %v4152_v36 = vld [vmem:[#allocation59_spill] sm:$0xff] }
 0x56b   :  { %2023 = vmatprep.subr.mxu1 %v4145_v49  ;;  %1953 = vmatpush1.msra.mxu0 %v4146_v34 }
 0x56c   :  { %1986 = vmatprep.mubr.f32.mxu0 %v4147_v62  ;;  %2024 = vmatpush1.msra.mxu1 %v4148_v14 }
 0x56d   :  { %2057 = vmatprep.mubr.f32.mxu1 %v4147_v62  ;;  %2163 = vmatprep.subr.mxu0 %v4149_v29 }
 0x56e   :  { %2234 = vmatprep.subr.mxu1 %v4150_v27 }
 0x60b   :  { %v1747_v20 = vpop.f32.mrf.mxu0  ;;  %v1818_v49 = vpop.f32.mrf.mxu1 }
 0x60c   :  { %v1823_v18 = vadd.f32 %v1747_v20, %v4151_v33  ;;  %v1825_v62 = vadd.f32 %v1818_v49, %v4154_v48 }
 0x60d   :  { %v1749_v0 = vpop.f32.mrf.mxu0  ;;  %v1820_v35 = vpop.f32.mrf.mxu1 }
 0x60e   :  { %v2471_v44 = vmul.f32 -1.442695, %v1823_v18  ;;  %v1824_v41 = vadd.f32 %v1749_v0, %v4152_v36  ;;  %v1826_v14 = vadd.f32 %v1820_v35, %v4153_v5 }
 0x610   :  { %2583 = vpow2.f32 %v2471_v44  ;;  %v2472_v34 = vmul.f32 -1.442695, %v1824_v41  ;;  %v2473_v28 = vmul.f32 -1.442695, %v1826_v14 }
 0x612   :  { %2585 = vpow2.f32 %v2472_v34 }
 0x613   :  { %2587 = vtanh.f32 %v1825_v62 }
 0x614   :  { %2589 = vpow2.f32 %v2473_v28 }
 0x61d   :  { %v2584_v29 = vpop.eup %2583 }
 0x61e   :  { %v1830_v25 = vadd.f32 1.0, %v2584_v29 }
 0x61f   :  { %v2586_v27 = vpop.eup %2585 }
 0x620   :  { %2591 = vrcp.f32 %v1830_v25  ;;  %v1836_v20 = vadd.f32 1.0, %v2586_v27  ;;  %v2588_v18 = vpop.eup %2587 }
 0x621   :  { %v2590_v33 = vpop.eup %2589 }
 0x622   :  { %2593 = vrcp.f32 %v1836_v20  ;;  %v1843_v36 = vadd.f32 1.0, %v2590_v33 }
 0x624   :  { %2595 = vrcp.f32 %v1843_v36 }
 0x62d   :  { %v2592_v44 = vpop.eup %2591 }
 0x62e   :  { %v1847_v0 = vmul.f32 %v2592_v44, %v2588_v18 }
 0x62f   :  { %v2594_v41 = vpop.eup %2593 }
 0x630   :  { %v1846_v34 = vmul.f32 %v2594_v41, %v3701_v46 }
 0x631   :  { %v2596_v48 = vpop.eup %2595 }
 0x632   :  { %v3781_v5 = vadd.f32 %v1847_v0, %v1846_v34 }
 0x634   :  { %2597 = vtanh.f32 %v3781_v5 }
 0x641   :  { %v2598_v35 = vpop.eup %2597 }
 0x642   :  { %v1850_v14 = vmul.f32 %v2598_v35, %v2596_v48 }
 0x644   :  { %v1852_v28 = vcombine.high %v1850_v14, %v1850_v14  ;;  %v1859_v25 = vrot.slane %v1850_v14, %v3254_v8  ;;  %1987 = vmatmul.mubr.f32.vlgmr.msra.gmra.mxu0 %v1850_v14  ;;  %2058 = vmatmul.mubr.f32.vlgmr.msra.gmra.mxu1 %v1850_v14 }
 0x645   :  { %2164 = vmatpush1.msra.mxu0 %v3421_v7  ;;  %2235 = vmatpush1.msra.mxu1 %v3424_v4 }
 0x646   :  { %v1866_v49 = vrot.slane %v1852_v28, %v3254_v8  ;;  %v1867_v46 = vcombine.high %v1859_v25, %v1859_v25  ;;  %v1875_v62 = vrot.slane %v1859_v25, %v3254_v8  ;;  %2474 = vst.sshfl [vmem:[#allocation13 + $0x5] sm:$0x1 pattern:$0x73625140] %v1859_v25  ;;  %2165 = vmatprep.subr.mxu0 %v3429_v21 }
 0x647   :  { %2236 = vmatprep.subr.mxu1 %v3432_v22  ;;  %2166 = vmatpush1.msra.mxu0 %v3435_v23 }
 0x648   :  { %2237 = vmatpush1.msra.mxu1 %v3438_v24  ;;  %v1868_v29 = vcombine.high %v1866_v49, %v1866_v49  ;;  %v1882_v27 = vrot.slane %v1866_v49, %v3254_v8  ;;  %v1889_v7 = vrot.slane %v1867_v46, %v3254_v8  ;;  %v1897_v4 = vcombine.high %v1875_v62, %v1875_v62 }
 0x649   :  { %2475 = vst.sshfl [vmem:[#allocation13 + $0xd] sm:$0x1 pattern:$0x73625140] %v1867_v46  ;;  %2167 = vmatprep.subr.mxu0 %v3443_v30  ;;  %2238 = vmatprep.subr.mxu1 %v3446_v31  ;;  %v4155_v30 = vld [vmem:[#allocation22_spill] sm:$0xff] }
 0x64a   :  { %2476 = vst.sshfl [vmem:[#allocation13 + $0x25] sm:$0x1 pattern:$0x73625140] %v1866_v49  ;;  %2168 = vmatpush1.msra.mxu0 %v3449_v32  ;;  %v1896_v21 = vrot.slane %v1868_v29, %v3254_v8  ;;  %v1898_v22 = vcombine.high %v1882_v27, %v1882_v27  ;;  %v1899_v23 = vcombine.high %v1889_v7, %v1889_v7  ;;  %1911 = vst [vmem:[#allocation13 + $0x15] sm:$0x1] %v1897_v4 }
 0x64b   :  { %2477 = vst.sshfl [vmem:[#allocation13 + $0x2d] sm:$0x1 pattern:$0x73625140] %v1868_v29  ;;  %2239 = vmatpush1.msra.mxu1 %v3453_v37  ;;  %2169 = vmatprep.subr.mxu0 %v3456_v38  ;;  %v4156_v31 = vld [vmem:[#allocation18_spill] sm:$0xff]  ;;  %v4157_v32 = vld [vmem:[#allocation19_spill] sm:$0xff] }
 0x64c   :  { %2240 = vmatprep.subr.mxu1 %v3459_v39  ;;  %2170 = vmatpush1.msra.mxu0 %v3462_v40  ;;  %v1900_v24 = vcombine.high %v1896_v21, %v1896_v21  ;;  %1912 = vst [vmem:[#allocation13 + $0x1d] sm:$0x1] %v1899_v23  ;;  %1915 = vst [vmem:[#allocation13 + $0x35] sm:$0x1] %v1898_v22  ;;  %v4158_v37 = vld [vmem:[#allocation41_spill] sm:$0xff]  ;;  %v4159_v38 = vld [vmem:[#allocation43_spill] sm:$0xff] }
 0x64d   :  { %2241 = vmatpush1.msra.mxu1 %v3465_v42  ;;  %2171 = vmatprep.subr.mxu0 %v3468_v43  ;;  %v4160_v39 = vld [vmem:[#allocation44_spill] sm:$0xff]  ;;  %v4161_v40 = vld [vmem:[#allocation42_spill] sm:$0xff]  ;;  %v4162_v42 = vld [vmem:[#allocation23_spill] sm:$0xff] }
 0x64e   :  { %2242 = vmatprep.subr.mxu1 %v3471_v45  ;;  %2172 = vmatpush1.msra.mxu0 %v3474_v47  ;;  %1916 = vst [vmem:[#allocation13 + $0x3d] sm:$0x1] %v1900_v24  ;;  %v4163_v43 = vld [vmem:[#allocation24_spill] sm:$0xff]  ;;  %v4164_v45 = vld [vmem:[#allocation25_spill] sm:$0xff]  ;;  %v4165_v47 = vld [vmem:[#allocation26_spill] sm:$0xff] }
 0x64f   :  { %2243 = vmatpush1.msra.mxu1 %v3477_v50  ;;  %2173 = vmatprep.subr.mxu0 %v3480_v51  ;;  %v4166_v50 = vld [vmem:[#allocation27_spill] sm:$0xff]  ;;  %v4167_v51 = vld [vmem:[#allocation28_spill] sm:$0xff] }
 0x650   :  { %2244 = vmatprep.subr.mxu1 %v3483_v52  ;;  %2174 = vmatpush1.msra.mxu0 %v3486_v54  ;;  %v4168_v52 = vld [vmem:[#allocation29_spill] sm:$0xff]  ;;  %v4169_v54 = vld [vmem:[#allocation30_spill] sm:$0xff] }
 0x651   :  { %2245 = vmatpush1.msra.mxu1 %v3489_v55  ;;  %2175 = vmatprep.subr.mxu0 %v3492_v56  ;;  %v4170_v55 = vld [vmem:[#allocation31_spill] sm:$0xff]  ;;  %v4171_v56 = vld [vmem:[#allocation32_spill] sm:$0xff] }
 0x652   :  { %2246 = vmatprep.subr.mxu1 %v3495_v57  ;;  %2176 = vmatpush1.msra.mxu0 %v3498_v58  ;;  %v4172_v57 = vmov 0.0   ;;  %v4173_v58 = vld [vmem:[#allocation33_spill] sm:$0xff] }
 0x653   :  { %2247 = vmatpush1.msra.mxu1 %v3501_v59  ;;  %2177 = vmatprep.subr.mxu0 %v3504_v60  ;;  %v4174_v60 = vld [vmem:[#allocation61_spill] sm:$0xff] }
 0x654   :  { %2248 = vmatprep.subr.mxu1 %v3507_v61  ;;  %2178 = vmatpush1.msra.mxu0 %v3510_v63 }
 0x655   :  { %2249 = vmatpush1.msra.mxu1 %v3513_v1  ;;  %2179 = vmatprep.subr.mxu0 %v3516_v2  ;;  %v4175_v2 = vld [vmem:[#allocation63_spill] sm:$0xff] }
 0x656   :  { %2250 = vmatprep.subr.mxu1 %v3519_v12  ;;  %2180 = vmatpush1.msra.mxu0 %v3522_v16 }
 0x657   :  { %2251 = vmatpush1.msra.mxu1 %v3525_v6  ;;  %2181 = vmatprep.subr.mxu0 %v3528_v13 }
 0x658   :  { %2252 = vmatprep.subr.mxu1 %v3531_v17  ;;  %2182 = vmatpush1.msra.mxu0 %v3534_v3  ;;  %v4176_v17 = vld [vmem:[#allocation64_spill] sm:$0xff] }
 0x659   :  { %2253 = vmatpush1.msra.mxu1 %v3537_v15  ;;  %2183 = vmatprep.subr.mxu0 %v3540_v11  ;;  %v4177_v15 = vld [vmem:[#allocation62_spill] sm:$0xff] }
 0x65a   :  { %2254 = vmatprep.subr.mxu1 %v3543_v19  ;;  %2184 = vmatpush1.msra.mxu0 %v3546_v10 }
 0x65b   :  { %2255 = vmatpush1.msra.mxu1 %v3549_v9  ;;  %2185 = vmatprep.subr.mxu0 %v3552_v26 }
 0x65c   :  { %2256 = vmatprep.subr.mxu1 %v3555_v53  ;;  %2186 = vmatpush1.msra.mxu0 %v4155_v30  ;;  %v4178_v30 = vld [vmem:[#allocation65_spill] sm:$0xff] }
 0x65d   :  { %2257 = vmatpush1.msra.mxu1 %v4156_v31  ;;  %2187 = vmatprep.subr.mxu0 %v4157_v32 }
 0x65e   :  { %2258 = vmatprep.subr.mxu1 %v4158_v37  ;;  %2188 = vmatpush1.msra.mxu0 %v4159_v38  ;;  %v4179_v38 = vld [vmem:[#allocation67_spill] sm:$0xff] }
 0x65f   :  { %2259 = vmatpush1.msra.mxu1 %v4160_v39  ;;  %2189 = vmatprep.subr.mxu0 %v4161_v40 }
 0x660   :  { %2260 = vmatprep.subr.mxu1 %v4162_v42  ;;  %2190 = vmatpush1.msra.mxu0 %v4163_v43 }
 0x661   :  { %2261 = vmatpush1.msra.mxu1 %v4164_v45  ;;  %2191 = vmatprep.subr.mxu0 %v4165_v47  ;;  %v4180_v45 = vld [vmem:[#allocation68_spill] sm:$0xff] }
 0x662   :  { %2262 = vmatprep.subr.mxu1 %v4166_v50  ;;  %2192 = vmatpush1.msra.mxu0 %v4167_v51  ;;  %v4181_v50 = vld [vmem:[#allocation66_spill] sm:$0xff] }
 0x663   :  { %2263 = vmatpush1.msra.mxu1 %v4168_v52  ;;  %2193 = vmatprep.subr.mxu0 %v4169_v54 }
 0x664   :  { %2264 = vmatprep.subr.mxu1 %v4170_v55  ;;  %2194 = vmatpush1.msra.mxu0 %v4171_v56 }
 0x665   :  { %2227 = vmatprep.mubr.f32.mxu0 %v4172_v57  ;;  %2265 = vmatpush1.msra.mxu1 %v4173_v58 }
 0x666   :  { %2298 = vmatprep.mubr.f32.mxu1 %v4172_v57 }
 0x704   :  { %v1988_v59 = vpop.f32.mrf.mxu0  ;;  %v2059_v16 = vpop.f32.mrf.mxu1 }
 0x705   :  { %v2064_v61 = vadd.f32 %v1988_v59, %v4174_v60  ;;  %v2066_v11 = vadd.f32 %v2059_v16, %v4177_v15 }
 0x706   :  { %v1990_v63 = vpop.f32.mrf.mxu0  ;;  %v2061_v13 = vpop.f32.mrf.mxu1 }
 0x707   :  { %v2478_v1 = vmul.f32 -1.442695, %v2064_v61  ;;  %v2065_v12 = vadd.f32 %v1990_v63, %v4175_v2  ;;  %v2067_v3 = vadd.f32 %v2061_v13, %v4176_v17 }
 0x709   :  { %2599 = vpow2.f32 %v2478_v1  ;;  %v2479_v6 = vmul.f32 -1.442695, %v2065_v12  ;;  %v2480_v19 = vmul.f32 -1.442695, %v2067_v3 }
 0x70b   :  { %2601 = vpow2.f32 %v2479_v6 }
 0x70c   :  { %2603 = vtanh.f32 %v2066_v11 }
 0x70d   :  { %2605 = vpow2.f32 %v2480_v19 }
 0x716   :  { %v2600_v10 = vpop.eup %2599 }
 0x717   :  { %v2071_v9 = vadd.f32 1.0, %v2600_v10 }
 0x718   :  { %v2602_v26 = vpop.eup %2601 }
 0x719   :  { %2607 = vrcp.f32 %v2071_v9  ;;  %v2077_v53 = vadd.f32 1.0, %v2602_v26  ;;  %v2604_v20 = vpop.eup %2603 }
 0x71a   :  { %v2606_v18 = vpop.eup %2605 }
 0x71b   :  { %2609 = vrcp.f32 %v2077_v53  ;;  %v2084_v41 = vadd.f32 1.0, %v2606_v18 }
 0x71d   :  { %2611 = vrcp.f32 %v2084_v41 }
 0x726   :  { %v2608_v33 = vpop.eup %2607 }
 0x727   :  { %v2088_v44 = vmul.f32 %v2608_v33, %v2604_v20 }
 0x728   :  { %v2610_v0 = vpop.eup %2609 }
 0x729   :  { %v2087_v36 = vmul.f32 %v2610_v0, %v3781_v5 }
 0x72a   :  { %v2612_v48 = vpop.eup %2611 }
 0x72b   :  { %v2089_v34 = vadd.f32 %v2088_v44, %v2087_v36 }
 0x72d   :  { %2613 = vtanh.f32 %v2089_v34 }
 0x73a   :  { %v2614_v35 = vpop.eup %2613 }
 0x73b   :  { %v2091_v14 = vmul.f32 %v2614_v35, %v2612_v48 }
 0x73d   :  { %v2093_v28 = vcombine.high %v2091_v14, %v2091_v14  ;;  %v2100_v25 = vrot.slane %v2091_v14, %v3254_v8  ;;  %2228 = vmatmul.mubr.f32.vlgmr.msra.gmra.mxu0 %v2091_v14  ;;  %2299 = vmatmul.mubr.f32.vlgmr.msra.gmra.mxu1 %v2091_v14 }
 0x73f   :  { %v2107_v49 = vrot.slane %v2093_v28, %v3254_v8  ;;  %v2108_v46 = vcombine.high %v2100_v25, %v2100_v25  ;;  %v2116_v62 = vrot.slane %v2100_v25, %v3254_v8  ;;  %2481 = vst.sshfl [vmem:[#allocation13 + $0x6] sm:$0x1 pattern:$0x73625140] %v2100_v25 }
 0x741   :  { %v2109_v29 = vcombine.high %v2107_v49, %v2107_v49  ;;  %v2123_v5 = vrot.slane %v2107_v49, %v3254_v8  ;;  %v2130_v27 = vrot.slane %v2108_v46, %v3254_v8  ;;  %v2138_v7 = vcombine.high %v2116_v62, %v2116_v62  ;;  %2482 = vst.sshfl [vmem:[#allocation13 + $0xe] sm:$0x1 pattern:$0x73625140] %v2108_v46 }
 0x742   :  { %2483 = vst.sshfl [vmem:[#allocation13 + $0x26] sm:$0x1 pattern:$0x73625140] %v2107_v49 }
 0x743   :  { %v2137_v4 = vrot.slane %v2109_v29, %v3254_v8  ;;  %v2139_v21 = vcombine.high %v2123_v5, %v2123_v5  ;;  %v2140_v22 = vcombine.high %v2130_v27, %v2130_v27  ;;  %2152 = vst [vmem:[#allocation13 + $0x16] sm:$0x1] %v2138_v7  ;;  %2484 = vst.sshfl [vmem:[#allocation13 + $0x2e] sm:$0x1 pattern:$0x73625140] %v2109_v29 }
 0x745   :  { %v2141_v23 = vcombine.high %v2137_v4, %v2137_v4  ;;  %2153 = vst [vmem:[#allocation13 + $0x1e] sm:$0x1] %v2140_v22  ;;  %2156 = vst [vmem:[#allocation13 + $0x36] sm:$0x1] %v2139_v21 }
 0x747   :  { %2157 = vst [vmem:[#allocation13 + $0x3e] sm:$0x1] %v2141_v23 }
 0x7fd   :  { %v2229_v24 = vpop.f32.mrf.mxu0  ;;  %v2300_v40 = vpop.f32.mrf.mxu1 }
 0x7fe   :  { %v2305_v31 = vadd.f32 %v2229_v24, %v4178_v30  ;;  %v2307_v51 = vadd.f32 %v2300_v40, %v4181_v50 }
 0x7ff   :  { %v2231_v32 = vpop.f32.mrf.mxu0  ;;  %v2302_v43 = vpop.f32.mrf.mxu1 }
 0x800   :  { %v2485_v37 = vmul.f32 -1.442695, %v2305_v31  ;;  %v2306_v39 = vadd.f32 %v2231_v32, %v4179_v38  ;;  %v2308_v47 = vadd.f32 %v2302_v43, %v4180_v45 }
 0x802   :  { %2615 = vpow2.f32 %v2485_v37  ;;  %v2486_v42 = vmul.f32 -1.442695, %v2306_v39  ;;  %v2487_v52 = vmul.f32 -1.442695, %v2308_v47 }
 0x804   :  { %2617 = vpow2.f32 %v2486_v42 }
 0x805   :  { %2619 = vtanh.f32 %v2307_v51 }
 0x806   :  { %2621 = vpow2.f32 %v2487_v52 }
 0x80f   :  { %v2616_v54 = vpop.eup %2615 }
 0x810   :  { %v2312_v55 = vadd.f32 1.0, %v2616_v54 }
 0x811   :  { %v2618_v56 = vpop.eup %2617 }
 0x812   :  { %2623 = vrcp.f32 %v2312_v55  ;;  %v2318_v57 = vadd.f32 1.0, %v2618_v56  ;;  %v2620_v58 = vpop.eup %2619 }
 0x813   :  { %v2622_v59 = vpop.eup %2621 }
 0x814   :  { %2625 = vrcp.f32 %v2318_v57  ;;  %v2325_v1 = vadd.f32 1.0, %v2622_v59 }
 0x816   :  { %2627 = vrcp.f32 %v2325_v1 }
 0x81f   :  { %v2624_v60 = vpop.eup %2623 }
 0x820   :  { %v2329_v61 = vmul.f32 %v2624_v60, %v2620_v58 }
 0x821   :  { %v2626_v63 = vpop.eup %2625 }
 0x822   :  { %v2328_v2 = vmul.f32 %v2626_v63, %v2089_v34 }
 0x823   :  { %v2628_v16 = vpop.eup %2627 }
 0x824   :  { %v2330_v12 = vadd.f32 %v2329_v61, %v2328_v2 }
 0x826   :  { %2629 = vtanh.f32 %v2330_v12 }
 0x833   :  { %v2630_v6 = vpop.eup %2629 }
 0x834   :  { %v2332_v13 = vmul.f32 %v2630_v6, %v2628_v16 }
 0x836   :  { %v2334_v17 = vcombine.high %v2332_v13, %v2332_v13  ;;  %v2341_v3 = vrot.slane %v2332_v13, %v3254_v8 }
 0x838   :  { %v2348_v15 = vrot.slane %v2334_v17, %v3254_v8  ;;  %v2349_v11 = vcombine.high %v2341_v3, %v2341_v3  ;;  %v2357_v19 = vrot.slane %v2341_v3, %v3254_v8  ;;  %2488 = vst.sshfl [vmem:[#allocation13 + $0x7] sm:$0x1 pattern:$0x73625140] %v2341_v3 }
 0x83a   :  { %v2350_v10 = vcombine.high %v2348_v15, %v2348_v15  ;;  %v2364_v9 = vrot.slane %v2348_v15, %v3254_v8  ;;  %v2371_v26 = vrot.slane %v2349_v11, %v3254_v8  ;;  %v2379_v53 = vcombine.high %v2357_v19, %v2357_v19  ;;  %2489 = vst.sshfl [vmem:[#allocation13 + $0xf] sm:$0x1 pattern:$0x73625140] %v2349_v11 }
 0x83b   :  { %2490 = vst.sshfl [vmem:[#allocation13 + $0x27] sm:$0x1 pattern:$0x73625140] %v2348_v15 }
 0x83c   :  { %v2378_v20 = vrot.slane %v2350_v10, %v3254_v8  ;;  %v2380_v18 = vcombine.high %v2364_v9, %v2364_v9  ;;  %v2381_v33 = vcombine.high %v2371_v26, %v2371_v26  ;;  %2393 = vst [vmem:[#allocation13 + $0x17] sm:$0x1] %v2379_v53  ;;  %2491 = vst.sshfl [vmem:[#allocation13 + $0x2f] sm:$0x1 pattern:$0x73625140] %v2350_v10 }
 0x83e   :  { %v2382_v44 = vcombine.high %v2378_v20, %v2378_v20  ;;  %2394 = vst [vmem:[#allocation13 + $0x1f] sm:$0x1] %v2381_v33  ;;  %2397 = vst [vmem:[#allocation13 + $0x37] sm:$0x1] %v2380_v18 }
 0x840   :  { %2398 = vst [vmem:[#allocation13 + $0x3f] sm:$0x1] %v2382_v44 }
 0x841   :  { %2786 = shalt.err (!%p2783_p10)
}
 0x842   :  { %2412 = dma.vmem_to_hbm [thread:$0]  %s2407_s3, 1024, %s3885_s4, [#allocation7], %s2807_s25, %s2807_s25, %s2808_s26  }
 0x843   :  { %2801 = dma.done.wait [#allocation7], 1024  }
 0x844   :  { %2802 = vsyncadd [#allocation7], 4294966272 }
 0x845   :  { %2416 = vsyncpa [#allocation6], 1 }
 0x846   :  { %2417 = vsyncpa [#allocation9], 1 }
 0x847   :  { %2418 = vsyncpa [#allocation12], 1 }
 0x848   :  { %2419 = vsyncpa [#allocation7], 1 }

// kernel: tpu_custom_call.1
= control target key start
LH: loop header
LB: loop body
LE: loop exit
PB: predicated region body
PF: predicated region fallthrough
CT: control target
= control target key end

     0   :  { %9 = vsyncpa [#allocation6], 0  ;;  %s3881_s0 = inlined_call_operand.hbm [shape: f32[8,8,32], index: 0, kind: input, shape index: {}]   ;;  %s3882_s1 = inlined_call_operand.hbm [shape: f32[32,512], index: 1, kind: input, shape index: {}]   ;;  %s3883_s2 = inlined_call_operand.hbm [shape: f32[1,512], index: 2, kind: input, shape index: {}]   ;;  %s3884_s3 = inlined_call_operand.hbm [shape: f32[128,512], index: 3, kind: input, shape index: {}]   ;;  %s3885_s4 = inlined_call_operand.hbm [shape: f32[8,8,128], index: 4, kind: output, shape index: {}]  }
   0x1   :  { %10 = vsyncpa [#allocation9], 0 }
   0x2   :  { %11 = vsyncpa [#allocation12], 0 }
   0x3   :  { %12 = vsyncpa [#allocation7], 0  ;;  %s2803_s15 = smov [#allocation8]  }
   0x4   :  { %s30_s16 = sshll.u32 %s2803_s15, 4  ;;  %s31_s16 = int_to_ptr.vmem [resolvable:$true] %s30_s16 }
   0x5   :  { %s2703_s17 = scalar_lea.vmem %s31_s16, 2048  ;;  %p2708_p1 = scmp.lt.s32.totalorder %s31_s16, %s31_s16 }
   0x6   :  { %p2704_p0 = scmp.ne.s32.totalorder %s31_s16, %s2703_s17  ;;  %p2709_p2 = scmp.lt.s32.totalorder %s2703_s17, %s2703_s17 }
   0x8   :  { %p2710_p3 = por %p2709_p2, %p2708_p1 }
   0xa   :  { %p2711_p4 = pnand %p2710_p3, %p2704_p0 }
   0xc   :  { %2714 = shalt.err (!%p2711_p4)
}
   0xd   :  { %s2804_s18 = smov 512   ;;  %s2805_s19 = smov 32  }
   0xe   :  { %36 = dma.hbm_to_vmem [thread:$0]  %s3882_s1, 2048, %s31_s16, [#allocation9], %s2804_s18, %s2804_s18, %s2805_s19  }
   0xf   :  { %s2806_s22 = smov [#allocation5]  }
  0x10   :  { %s18_s23 = sshll.u32 %s2806_s22, 4  ;;  %s19_s23 = int_to_ptr.vmem [resolvable:$true] %s18_s23 }
  0x11   :  { %s2723_s24 = scalar_lea.vmem %s19_s23, 1024  ;;  %p2728_p6 = scmp.lt.s32.totalorder %s19_s23, %s19_s23 }
  0x12   :  { %p2724_p5 = scmp.ne.s32.totalorder %s19_s23, %s2723_s24  ;;  %p2729_p7 = scmp.lt.s32.totalorder %s2723_s24, %s2723_s24 }
  0x14   :  { %p2730_p8 = por %p2729_p7, %p2728_p6 }
  0x16   :  { %p2731_p9 = pnand %p2730_p8, %p2724_p5 }
  0x18   :  { %2734 = shalt.err (!%p2731_p9)
}
  0x19   :  { %s2807_s25 = smov 128   ;;  %s2808_s26 = smov 8  }
  0x1a   :  { %24 = dma.hbm_to_vmem [thread:$0]  %s3881_s0, 1024, %s19_s23, [#allocation6], %s2807_s25, %s2807_s25, %s2808_s26  }
  0x1b   :  { %s2809_s1 = smov [#allocation10]   ;;  %s2810_s30 = smov [#allocation11]  }
  0x1c   :  { %s43_s29 = sshll.u32 %s2809_s1, 4  ;;  %s52_s5 = sshll.u32 %s2810_s30, 4  ;;  %s44_s29 = int_to_ptr.vmem [resolvable:$true] %s43_s29  ;;  %s53_s5 = int_to_ptr.vmem [resolvable:$true] %s52_s5 }
  0x1d   :  { %s2743_s6 = scalar_lea.vmem %s44_s29, 64  ;;  %p2748_p11 = scmp.lt.s32.totalorder %s44_s29, %s44_s29 }
  0x1e   :  { %p2744_p10 = scmp.ne.s32.totalorder %s44_s29, %s2743_s6  ;;  %p2749_p12 = scmp.lt.s32.totalorder %s2743_s6, %s2743_s6 }
  0x20   :  { %p2750_p13 = por %p2749_p12, %p2748_p11 }
  0x22   :  { %p2751_p0 = pnand %p2750_p13, %p2744_p10 }
  0x24   :  { %2754 = shalt.err (!%p2751_p0)
}
  0x25   :  { %46 = dma.hbm_to_vmem [thread:$0]  %s3883_s2, 64, %s44_s29, [#allocation9]  }
  0x26   :  { %s2763_s9 = scalar_lea.vmem %s53_s5, 8192  ;;  %p2768_p2 = scmp.lt.s32.totalorder %s53_s5, %s53_s5 }
  0x27   :  { %p2764_p1 = scmp.ne.s32.totalorder %s53_s5, %s2763_s9  ;;  %p2769_p3 = scmp.lt.s32.totalorder %s2763_s9, %s2763_s9 }
  0x29   :  { %p2770_p4 = por %p2769_p3, %p2768_p2 }
  0x2b   :  { %p2771_p5 = pnand %p2770_p4, %p2764_p1 }
  0x2d   :  { %2774 = shalt.err (!%p2771_p5)
}
  0x2e   :  { %58 = dma.hbm_to_vmem [thread:$0]  %s3884_s3, 8192, %s53_s5, [#allocation12], %s2804_s18, %s2804_s18, %s2805_s19  }
  0x2f   :  { %2795 = dma.done.wait [#allocation6], 1024  }
  0x30   :  { %2796 = vsyncadd [#allocation6], 4294966272 }
  0x31   :  { %2797 = dma.done.wait [#allocation9], 2112  }
  0x32   :  { %2798 = vsyncadd [#allocation9], 4294965184 }
  0x33   :  { %2799 = dma.done.wait [#allocation12], 8192  }
  0x34   :  { %2800 = vsyncadd [#allocation12], 4294959104  ;;  %v3886_v0 = vmov 0.0   ;;  %v98_v1 = vld [vmem:[#allocation8 + $0x68] sm:$0xff]  ;;  %v100_v2 = vld [vmem:[#allocation8 + $0x78] sm:$0xff]  ;;  %vm123_vm0 = vcmask 261120  }
  0x35   :  { %212 = vmatprep.mubr.f32.mxu0 %v3886_v0  ;;  %325 = vmatprep.mubr.f32.mxu1 %v3886_v0  ;;  %v97_v3 = vld [vmem:[#allocation8 + $0x60] sm:$0xff]  ;;  %v99_v4 = vld [vmem:[#allocation8 + $0x70] sm:$0xff]  ;;  %v94_v5 = vld [vmem:[#allocation8 + $0x48] sm:$0xff]  ;;  %s2813_s2 = smov [#allocation13]  }
  0x36   :  { %172 = vmatprep.subr.mxu0 %v98_v1  ;;  %285 = vmatprep.subr.mxu1 %v100_v2  ;;  %v96_v6 = vld [vmem:[#allocation8 + $0x58] sm:$0xff]  ;;  %v93_v7 = vld [vmem:[#allocation8 + $0x40] sm:$0xff]  ;;  %v95_v8 = vld [vmem:[#allocation8 + $0x50] sm:$0xff]  ;;  %s2406_s3 = sshll.u32 %s2813_s2, 4  ;;  %s2407_s3 = int_to_ptr.vmem [resolvable:$true] %s2406_s3 }
  0x37   :  { %173 = vmatpush1.msra.mxu0 %v97_v3  ;;  %286 = vmatpush1.msra.mxu1 %v99_v4  ;;  %v90_v9 = vld [vmem:[#allocation8 + $0x28] sm:$0xff]  ;;  %v92_v10 = vld [vmem:[#allocation8 + $0x38] sm:$0xff]  ;;  %v89_v11 = vld [vmem:[#allocation8 + $0x20] sm:$0xff]  ;;  %s2775_s11 = scalar_lea.vmem %s2407_s3, 1024  ;;  %p2780_p7 = scmp.lt.s32.totalorder %s2407_s3, %s2407_s3 }
  0x38   :  { %174 = vmatprep.subr.mxu0 %v94_v5  ;;  %287 = vmatprep.subr.mxu1 %v96_v6  ;;  %v91_v12 = vld [vmem:[#allocation8 + $0x30] sm:$0xff]  ;;  %v86_v13 = vld [vmem:[#allocation8 + $0x8] sm:$0xff]  ;;  %v88_v14 = vld [vmem:[#allocation8 + $0x18] sm:$0xff]  ;;  %p2776_p6 = scmp.ne.s32.totalorder %s2407_s3, %s2775_s11  ;;  %p2781_p8 = scmp.lt.s32.totalorder %s2775_s11, %s2775_s11 }
  0x39   :  { %175 = vmatpush1.msra.mxu0 %v93_v7  ;;  %288 = vmatpush1.msra.mxu1 %v95_v8  ;;  %v85_v15 = vld [vmem:[#allocation8] sm:$0xff]  ;;  %v87_v16 = vld [vmem:[#allocation8 + $0x10] sm:$0xff]  ;;  %v78_v26 = vld [vmem:[#allocation5 + $0x8] sm:$0xff] }
  0x3a   :  { %176 = vmatprep.subr.mxu0 %v90_v9  ;;  %289 = vmatprep.subr.mxu1 %v92_v10  ;;  %v77_v17 = vld [vmem:[#allocation5] sm:$0xff]  ;;  %v2862_v18 = vld [vmem:[#allocation11 + $0x1e8] sm:$0xff]  ;;  %v2868_v21 = vld [vmem:[#allocation11 + $0x1f0] sm:$0xff]  ;;  %p2782_p9 = por %p2781_p8, %p2780_p7 }
  0x3b   :  { %177 = vmatpush1.msra.mxu0 %v89_v11  ;;  %290 = vmatpush1.msra.mxu1 %v91_v12  ;;  %3977 = vst [vmem:[#allocation18_spill] sm:$0xff] %v2862_v18  ;;  %v2864_v19 = vld [vmem:[#allocation11 + $0x1f8] sm:$0xff]  ;;  %v2866_v20 = vld [vmem:[#allocation11 + $0x1e0] sm:$0xff]  ;;  %v2872_v22 = vld [vmem:[#allocation11 + $0x1c8] sm:$0xff] }
  0x3c   :  { %178 = vmatprep.subr.mxu0 %v86_v13  ;;  %291 = vmatprep.subr.mxu1 %v88_v14  ;;  %3978 = vst [vmem:[#allocation19_spill] sm:$0xff] %v2864_v19  ;;  %v2874_v23 = vld [vmem:[#allocation11 + $0x1d8] sm:$0xff]  ;;  %v2880_v24 = vld [vmem:[#allocation11 + $0x1c0] sm:$0xff]  ;;  %v2882_v25 = vld [vmem:[#allocation11 + $0x1d0] sm:$0xff]  ;;  %p2783_p10 = pnand %p2782_p9, %p2776_p6 }
  0x3d   :  { %179 = vmatpush1.msra.mxu0 %v85_v15  ;;  %292 = vmatpush1.msra.mxu1 %v87_v16  ;;  %v2888_v27 = vld [vmem:[#allocation11 + $0x1a8] sm:$0xff]  ;;  %v2890_v28 = vld [vmem:[#allocation11 + $0x1b8] sm:$0xff]  ;;  %v2894_v29 = vld [vmem:[#allocation11 + $0x1a0] sm:$0xff] }
  0x3e   :  { %2420 = vmatmul.mubr.msk.f32.vlgmr.msra.gmra.mxu0 %vm123_vm0, %v77_v17  ;;  %2428 = vmatmul.mubr.msk.f32.vlgmr.msra.gmra.mxu1 %vm123_vm0, %v77_v17  ;;  %v2896_v30 = vld [vmem:[#allocation11 + $0x1b0] sm:$0xff]  ;;  %v2900_v31 = vld [vmem:[#allocation11 + $0x188] sm:$0xff]  ;;  %v2902_v32 = vld [vmem:[#allocation11 + $0x198] sm:$0xff] }
  0x3f   :  { %476 = vmatprep.subr.mxu0 %v2862_v18  ;;  %547 = vmatprep.subr.mxu1 %v2864_v19  ;;  %v2908_v33 = vld [vmem:[#allocation11 + $0x180] sm:$0xff]  ;;  %v2910_v34 = vld [vmem:[#allocation11 + $0x190] sm:$0xff]  ;;  %v2916_v36 = vld [vmem:[#allocation11 + $0x168] sm:$0xff] }
  0x40   :  { %477 = vmatpush1.msra.mxu0 %v2866_v20  ;;  %548 = vmatpush1.msra.mxu1 %v2868_v21  ;;  %v79_v35 = vld [vmem:[#allocation5 + $0x10] sm:$0xff]  ;;  %v2918_v37 = vld [vmem:[#allocation11 + $0x178] sm:$0xff]  ;;  %v2922_v38 = vld [vmem:[#allocation11 + $0x160] sm:$0xff] }
  0x41   :  { %478 = vmatprep.subr.mxu0 %v2872_v22  ;;  %549 = vmatprep.subr.mxu1 %v2874_v23  ;;  %v2924_v39 = vld [vmem:[#allocation11 + $0x170] sm:$0xff]  ;;  %v2928_v40 = vld [vmem:[#allocation11 + $0x148] sm:$0xff]  ;;  %v2930_v41 = vld [vmem:[#allocation11 + $0x158] sm:$0xff] }
  0x42   :  { %218 = vmatprep.mubr.f32.mxu0 %v3886_v0  ;;  %331 = vmatprep.mubr.f32.mxu1 %v3886_v0  ;;  %v2936_v42 = vld [vmem:[#allocation11 + $0x140] sm:$0xff]  ;;  %v2938_v43 = vld [vmem:[#allocation11 + $0x150] sm:$0xff]  ;;  %v2944_v45 = vld [vmem:[#allocation11 + $0x128] sm:$0xff] }
  0x43   :  { %479 = vmatpush1.msra.mxu0 %v2880_v24  ;;  %550 = vmatpush1.msra.mxu1 %v2882_v25  ;;  %v80_v44 = vld [vmem:[#allocation5 + $0x18] sm:$0xff]  ;;  %v2950_v47 = vld [vmem:[#allocation11 + $0x120] sm:$0xff]  ;;  %v2956_v49 = vld [vmem:[#allocation11 + $0x108] sm:$0xff] }
  0x44   :  { %2421 = vmatmul.mubr.msk.f32.gmra.mxu0 %vm123_vm0, %v78_v26  ;;  %2429 = vmatmul.mubr.msk.f32.gmra.mxu1 %vm123_vm0, %v78_v26  ;;  %v2946_v46 = vld [vmem:[#allocation11 + $0x138] sm:$0xff]  ;;  %v2952_v48 = vld [vmem:[#allocation11 + $0x130] sm:$0xff]  ;;  %v2964_v51 = vld [vmem:[#allocation11 + $0x100] sm:$0xff] }
  0x45   :  { %480 = vmatprep.subr.mxu0 %v2888_v27  ;;  %551 = vmatprep.subr.mxu1 %v2890_v28  ;;  %v2958_v50 = vld [vmem:[#allocation11 + $0x118] sm:$0xff]  ;;  %v2966_v52 = vld [vmem:[#allocation11 + $0x110] sm:$0xff]  ;;  %v2972_v54 = vld [vmem:[#allocation11 + $0xe8] sm:$0xff] }
  0x46   :  { %481 = vmatpush1.msra.mxu0 %v2894_v29  ;;  %552 = vmatpush1.msra.mxu1 %v2896_v30  ;;  %v81_v53 = vld [vmem:[#allocation5 + $0x20] sm:$0xff]  ;;  %v2980_v57 = vld [vmem:[#allocation11 + $0xf0] sm:$0xff]  ;;  %v2984_v58 = vld [vmem:[#allocation11 + $0xc8] sm:$0xff] }
  0x47   :  { %482 = vmatprep.subr.mxu0 %v2900_v31  ;;  %553 = vmatprep.subr.mxu1 %v2902_v32  ;;  %v2974_v55 = vld [vmem:[#allocation11 + $0xf8] sm:$0xff]  ;;  %v2978_v56 = vld [vmem:[#allocation11 + $0xe0] sm:$0xff]  ;;  %v2994_v61 = vld [vmem:[#allocation11 + $0xd0] sm:$0xff] }
  0x48   :  { %224 = vmatprep.mubr.f32.mxu0 %v3886_v0  ;;  %337 = vmatprep.mubr.f32.mxu1 %v3886_v0  ;;  %v2986_v59 = vld [vmem:[#allocation11 + $0xd8] sm:$0xff]  ;;  %v2992_v60 = vld [vmem:[#allocation11 + $0xc0] sm:$0xff]  ;;  %v3000_v63 = vld [vmem:[#allocation11 + $0xa8] sm:$0xff] }
  0x49   :  { %483 = vmatpush1.msra.mxu0 %v2908_v33  ;;  %554 = vmatpush1.msra.mxu1 %v2910_v34  ;;  %v82_v62 = vld [vmem:[#allocation5 + $0x28] sm:$0xff]  ;;  %v3002_v1 = vld [vmem:[#allocation11 + $0xb8] sm:$0xff]  ;;  %v3008_v3 = vld [vmem:[#allocation11 + $0xb0] sm:$0xff] }
  0x4a   :  { %2422 = vmatmul.mubr.msk.f32.gmra.mxu0 %vm123_vm0, %v79_v35  ;;  %2430 = vmatmul.mubr.msk.f32.gmra.mxu1 %vm123_vm0, %v79_v35  ;;  %v3006_v2 = vld [vmem:[#allocation11 + $0xa0] sm:$0xff]  ;;  %3979 = vst [vmem:[#allocation20_spill] sm:$0xff] %v3008_v3  ;;  %v3012_v4 = vld [vmem:[#allocation11 + $0x88] sm:$0xff]  ;;  %v3014_v5 = vld [vmem:[#allocation11 + $0x98] sm:$0xff] }
  0x4b   :  { %484 = vmatprep.subr.mxu0 %v2916_v36  ;;  %555 = vmatprep.subr.mxu1 %v2918_v37  ;;  %3980 = vst [vmem:[#allocation21_spill] sm:$0xff] %v3012_v4  ;;  %3981 = vst [vmem:[#allocation22_spill] sm:$0xff] %v3014_v5  ;;  %v3020_v6 = vld [vmem:[#allocation11 + $0x80] sm:$0xff]  ;;  %v3022_v7 = vld [vmem:[#allocation11 + $0x90] sm:$0xff] }
  0x4c   :  { %485 = vmatpush1.msra.mxu0 %v2922_v38  ;;  %556 = vmatpush1.msra.mxu1 %v2924_v39  ;;  %3982 = vst [vmem:[#allocation23_spill] sm:$0xff] %v3020_v6  ;;  %3983 = vst [vmem:[#allocation24_spill] sm:$0xff] %v3022_v7  ;;  %v83_v8 = vld [vmem:[#allocation5 + $0x30] sm:$0xff]  ;;  %v3030_v10 = vld [vmem:[#allocation11 + $0x78] sm:$0xff] }
  0x4d   :  { %486 = vmatprep.subr.mxu0 %v2928_v40  ;;  %557 = vmatprep.subr.mxu1 %v2930_v41  ;;  %v3028_v9 = vld [vmem:[#allocation11 + $0x68] sm:$0xff]  ;;  %3985 = vst [vmem:[#allocation26_spill] sm:$0xff] %v3030_v10  ;;  %v3034_v11 = vld [vmem:[#allocation11 + $0x60] sm:$0xff]  ;;  %v3036_v12 = vld [vmem:[#allocation11 + $0x70] sm:$0xff] }
  0x4e   :  { %230 = vmatprep.mubr.f32.mxu0 %v3886_v0  ;;  %343 = vmatprep.mubr.f32.mxu1 %v3886_v0  ;;  %3984 = vst [vmem:[#allocation25_spill] sm:$0xff] %v3028_v9  ;;  %3986 = vst [vmem:[#allocation27_spill] sm:$0xff] %v3034_v11  ;;  %v3040_v13 = vld [vmem:[#allocation11 + $0x48] sm:$0xff]  ;;  %v3042_v14 = vld [vmem:[#allocation11 + $0x58] sm:$0xff] }
  0x4f   :  { %487 = vmatpush1.msra.mxu0 %v2936_v42  ;;  %558 = vmatpush1.msra.mxu1 %v2938_v43  ;;  %3987 = vst [vmem:[#allocation28_spill] sm:$0xff] %v3036_v12  ;;  %3988 = vst [vmem:[#allocation29_spill] sm:$0xff] %v3040_v13  ;;  %v3048_v15 = vld [vmem:[#allocation11 + $0x40] sm:$0xff]  ;;  %v3050_v16 = vld [vmem:[#allocation11 + $0x50] sm:$0xff] }
  0x50   :  { %2423 = vmatmul.mubr.msk.f32.gmra.mxu0 %vm123_vm0, %v80_v44  ;;  %2431 = vmatmul.mubr.msk.f32.gmra.mxu1 %vm123_vm0, %v80_v44  ;;  %3989 = vst [vmem:[#allocation30_spill] sm:$0xff] %v3042_v14  ;;  %3990 = vst [vmem:[#allocation31_spill] sm:$0xff] %v3048_v15  ;;  %v84_v17 = vld [vmem:[#allocation5 + $0x38] sm:$0xff]  ;;  %v3056_v26 = vld [vmem:[#allocation11 + $0x28] sm:$0xff] }
  0x51   :  { %488 = vmatprep.subr.mxu0 %v2944_v45  ;;  %559 = vmatprep.subr.mxu1 %v2946_v46  ;;  %3991 = vst [vmem:[#allocation32_spill] sm:$0xff] %v3050_v16  ;;  %3992 = vst [vmem:[#allocation33_spill] sm:$0xff] %v3056_v26  ;;  %v3058_v35 = vld [vmem:[#allocation11 + $0x38] sm:$0xff]  ;;  %v3062_v44 = vld [vmem:[#allocation11 + $0x20] sm:$0xff] }
  0x52   :  { %489 = vmatpush1.msra.mxu0 %v2950_v47  ;;  %560 = vmatpush1.msra.mxu1 %v2952_v48  ;;  %3993 = vst [vmem:[#allocation34_spill] sm:$0xff] %v3058_v35  ;;  %3994 = vst [vmem:[#allocation35_spill] sm:$0xff] %v3062_v44 }
  0x53   :  { %490 = vmatprep.subr.mxu0 %v2956_v49  ;;  %561 = vmatprep.subr.mxu1 %v2958_v50 }
  0x54   :  { %236 = vmatprep.mubr.f32.mxu0 %v3886_v0  ;;  %349 = vmatprep.mubr.f32.mxu1 %v3886_v0 }
  0x55   :  { %491 = vmatpush1.msra.mxu0 %v2964_v51  ;;  %562 = vmatpush1.msra.mxu1 %v2966_v52 }
  0x56   :  { %2424 = vmatmul.mubr.msk.f32.gmra.mxu0 %vm123_vm0, %v81_v53  ;;  %2432 = vmatmul.mubr.msk.f32.gmra.mxu1 %vm123_vm0, %v81_v53  ;;  %v3064_v53 = vld [vmem:[#allocation11 + $0x30] sm:$0xff] }
  0x57   :  { %492 = vmatprep.subr.mxu0 %v2972_v54  ;;  %563 = vmatprep.subr.mxu1 %v2974_v55  ;;  %3995 = vst [vmem:[#allocation36_spill] sm:$0xff] %v3064_v53 }
  0x58   :  { %493 = vmatpush1.msra.mxu0 %v2978_v56  ;;  %564 = vmatpush1.msra.mxu1 %v2980_v57 }
  0x59   :  { %494 = vmatprep.subr.mxu0 %v2984_v58  ;;  %565 = vmatprep.subr.mxu1 %v2986_v59 }
  0x5a   :  { %242 = vmatprep.mubr.f32.mxu0 %v3886_v0  ;;  %355 = vmatprep.mubr.f32.mxu1 %v3886_v0 }
  0x5b   :  { %495 = vmatpush1.msra.mxu0 %v2992_v60  ;;  %566 = vmatpush1.msra.mxu1 %v2994_v61 }
  0x5c   :  { %2425 = vmatmul.mubr.msk.f32.gmra.mxu0 %vm123_vm0, %v82_v62  ;;  %2433 = vmatmul.mubr.msk.f32.gmra.mxu1 %vm123_vm0, %v82_v62  ;;  %v3068_v62 = vld [vmem:[#allocation11 + $0x8] sm:$0xff] }
  0x5d   :  { %496 = vmatprep.subr.mxu0 %v3000_v63  ;;  %567 = vmatprep.subr.mxu1 %v3002_v1  ;;  %3996 = vst [vmem:[#allocation37_spill] sm:$0xff] %v3068_v62 }
  0x5e   :  { %497 = vmatpush1.msra.mxu0 %v3006_v2  ;;  %568 = vmatpush1.msra.mxu1 %v3008_v3 }
  0x5f   :  { %498 = vmatprep.subr.mxu0 %v3012_v4  ;;  %569 = vmatprep.subr.mxu1 %v3014_v5 }
  0x60   :  { %248 = vmatprep.mubr.f32.mxu0 %v3886_v0  ;;  %361 = vmatprep.mubr.f32.mxu1 %v3886_v0 }
  0x61   :  { %499 = vmatpush1.msra.mxu0 %v3020_v6  ;;  %570 = vmatpush1.msra.mxu1 %v3022_v7 }
  0x62   :  { %2426 = vmatmul.mubr.msk.f32.gmra.mxu0 %vm123_vm0, %v83_v8  ;;  %2434 = vmatmul.mubr.msk.f32.gmra.mxu1 %vm123_vm0, %v83_v8  ;;  %v3070_v8 = vld [vmem:[#allocation11 + $0x18] sm:$0xff] }
  0x63   :  { %500 = vmatprep.subr.mxu0 %v3028_v9  ;;  %571 = vmatprep.subr.mxu1 %v3030_v10  ;;  %3997 = vst [vmem:[#allocation38_spill] sm:$0xff] %v3070_v8 }
  0x64   :  { %501 = vmatpush1.msra.mxu0 %v3034_v11  ;;  %572 = vmatpush1.msra.mxu1 %v3036_v12 }
  0x65   :  { %502 = vmatprep.subr.mxu0 %v3040_v13  ;;  %573 = vmatprep.subr.mxu1 %v3042_v14 }
  0x66   :  { %254 = vmatprep.mubr.f32.mxu0 %v3886_v0  ;;  %367 = vmatprep.mubr.f32.mxu1 %v3886_v0  ;;  %v3074_v0 = vld [vmem:[#allocation11] sm:$0xff] }
  0x67   :  { %503 = vmatpush1.msra.mxu0 %v3048_v15  ;;  %574 = vmatpush1.msra.mxu1 %v3050_v16  ;;  %3998 = vst [vmem:[#allocation39_spill] sm:$0xff] %v3074_v0  ;;  %v3078_v16 = vld [vmem:[#allocation11 + $0x10] sm:$0xff] }
  0x68   :  { %2427 = vmatmul.mubr.msk.f32.gmra.mxu0 %vm123_vm0, %v84_v17  ;;  %2435 = vmatmul.mubr.msk.f32.gmra.mxu1 %vm123_vm0, %v84_v17  ;;  %3999 = vst [vmem:[#allocation40_spill] sm:$0xff] %v3078_v16  ;;  %v4000_v17 = vmov 0.0  }
  0x69   :  { %504 = vmatprep.subr.mxu0 %v3056_v26  ;;  %575 = vmatprep.subr.mxu1 %v3058_v35 }
  0x6a   :  { %505 = vmatpush1.msra.mxu0 %v3062_v44  ;;  %576 = vmatpush1.msra.mxu1 %v3064_v53 }
  0x6b   :  { %506 = vmatprep.subr.mxu0 %v3068_v62  ;;  %577 = vmatprep.subr.mxu1 %v3070_v8 }
  0x6c   :  { %507 = vmatpush1.msra.mxu0 %v3074_v0  ;;  %540 = vmatprep.mubr.f32.mxu0 %v4000_v17 }
  0x6d   :  { %578 = vmatpush1.msra.mxu1 %v3078_v16  ;;  %611 = vmatprep.mubr.f32.mxu1 %v4000_v17 }
  0x6e   :  { %541 = vmatmul.mubr.f32.vlgmr.msra.gmra.mxu0 %v4000_v17  ;;  %612 = vmatmul.mubr.f32.vlgmr.msra.gmra.mxu1 %v4000_v17 }
  0x6f   :  { %717 = vmatprep.subr.mxu0 %v2862_v18  ;;  %788 = vmatprep.subr.mxu1 %v2864_v19 }
  0x70   :  { %718 = vmatpush1.msra.mxu0 %v2866_v20  ;;  %789 = vmatpush1.msra.mxu1 %v2868_v21 }
  0x71   :  { %719 = vmatprep.subr.mxu0 %v2872_v22  ;;  %790 = vmatprep.subr.mxu1 %v2874_v23 }
  0x72   :  { %720 = vmatpush1.msra.mxu0 %v2880_v24  ;;  %791 = vmatpush1.msra.mxu1 %v2882_v25 }
  0x73   :  { %721 = vmatprep.subr.mxu0 %v2888_v27  ;;  %792 = vmatprep.subr.mxu1 %v2890_v28 }
  0x74   :  { %722 = vmatpush1.msra.mxu0 %v2894_v29  ;;  %793 = vmatpush1.msra.mxu1 %v2896_v30 }
  0x75   :  { %723 = vmatprep.subr.mxu0 %v2900_v31  ;;  %794 = vmatprep.subr.mxu1 %v2902_v32 }
  0x76   :  { %724 = vmatpush1.msra.mxu0 %v2908_v33  ;;  %795 = vmatpush1.msra.mxu1 %v2910_v34 }
  0x77   :  { %725 = vmatprep.subr.mxu0 %v2916_v36  ;;  %796 = vmatprep.subr.mxu1 %v2918_v37 }
  0x78   :  { %726 = vmatpush1.msra.mxu0 %v2922_v38  ;;  %797 = vmatpush1.msra.mxu1 %v2924_v39 }
  0x79   :  { %727 = vmatprep.subr.mxu0 %v2928_v40  ;;  %798 = vmatprep.subr.mxu1 %v2930_v41 }
  0x7a   :  { %728 = vmatpush1.msra.mxu0 %v2936_v42  ;;  %799 = vmatpush1.msra.mxu1 %v2938_v43 }
  0x7b   :  { %729 = vmatprep.subr.mxu0 %v2944_v45  ;;  %800 = vmatprep.subr.mxu1 %v2946_v46 }
  0x7c   :  { %730 = vmatpush1.msra.mxu0 %v2950_v47  ;;  %801 = vmatpush1.msra.mxu1 %v2952_v48 }
  0x7d   :  { %731 = vmatprep.subr.mxu0 %v2956_v49  ;;  %802 = vmatprep.subr.mxu1 %v2958_v50 }
  0x7e   :  { %732 = vmatpush1.msra.mxu0 %v2964_v51  ;;  %803 = vmatpush1.msra.mxu1 %v2966_v52 }
  0x7f   :  { %733 = vmatprep.subr.mxu0 %v2972_v54  ;;  %804 = vmatprep.subr.mxu1 %v2974_v55 }
  0x80   :  { %734 = vmatpush1.msra.mxu0 %v2978_v56  ;;  %805 = vmatpush1.msra.mxu1 %v2980_v57 }
  0x81   :  { %735 = vmatprep.subr.mxu0 %v2984_v58  ;;  %806 = vmatprep.subr.mxu1 %v2986_v59 }
  0x82   :  { %736 = vmatpush1.msra.mxu0 %v2992_v60  ;;  %807 = vmatpush1.msra.mxu1 %v2994_v61 }
  0x83   :  { %737 = vmatprep.subr.mxu0 %v3000_v63  ;;  %808 = vmatprep.subr.mxu1 %v3002_v1 }
  0x84   :  { %738 = vmatpush1.msra.mxu0 %v3006_v2  ;;  %809 = vmatpush1.msra.mxu1 %v3008_v3 }
  0x85   :  { %739 = vmatprep.subr.mxu0 %v3012_v4  ;;  %810 = vmatprep.subr.mxu1 %v3014_v5  ;;  %v4001_v4 = vld [vmem:[#allocation32_spill] sm:$0xff] }
  0x86   :  { %740 = vmatpush1.msra.mxu0 %v3020_v6  ;;  %811 = vmatpush1.msra.mxu1 %v3022_v7 }
  0x87   :  { %741 = vmatprep.subr.mxu0 %v3028_v9  ;;  %812 = vmatprep.subr.mxu1 %v3030_v10 }
  0x88   :  { %742 = vmatpush1.msra.mxu0 %v3034_v11  ;;  %813 = vmatpush1.msra.mxu1 %v3036_v12 }
  0x89   :  { %743 = vmatprep.subr.mxu0 %v3040_v13  ;;  %814 = vmatprep.subr.mxu1 %v3042_v14 }
  0x8a   :  { %744 = vmatpush1.msra.mxu0 %v3048_v15  ;;  %815 = vmatpush1.msra.mxu1 %v4001_v4 }
  0x8b   :  { %745 = vmatprep.subr.mxu0 %v3056_v26  ;;  %816 = vmatprep.subr.mxu1 %v3058_v35  ;;  %v103_v35 = vlaneseq  ;;  %v101_v26 = vld [vmem:[#allocation10] sm:$0xf] }
  0x8c   :  { %746 = vmatpush1.msra.mxu0 %v3062_v44  ;;  %817 = vmatpush1.msra.mxu1 %v3064_v53 }
  0x8d   :  { %747 = vmatprep.subr.mxu0 %v3068_v62  ;;  %818 = vmatprep.subr.mxu1 %v3070_v8  ;;  %v3156_v44 = vshrl.u32 %v103_v35, 7 }
  0x8e   :  { %748 = vmatpush1.msra.mxu0 %v3074_v0  ;;  %781 = vmatprep.mubr.f32.mxu0 %v4000_v17 }
  0x8f   :  { %819 = vmatpush1.msra.mxu1 %v3078_v16  ;;  %852 = vmatprep.mubr.f32.mxu1 %v4000_v17  ;;  %v105_v8 = vsub.s32 0, %v3156_v44  ;;  %v113_v0 = vsub.s32 2, %v3156_v44 }
  0x90   :  { %958 = vmatprep.subr.mxu0 %v2862_v18  ;;  %1029 = vmatprep.subr.mxu1 %v2864_v19  ;;  %v109_v18 = vsub.s32 1, %v3156_v44  ;;  %v117_v19 = vsub.s32 3, %v3156_v44 }
  0x91   :  { %v106_v17 = vrot.slane %v101_v26, %v105_v8  ;;  %v3170_v35 = vrot.slane %v101_v26, %v113_v0 }
  0x92   :  { %v110_v13 = vrot.slane %v101_v26, %v109_v18  ;;  %v3172_v12 = vrot.slane %v101_v26, %v117_v19 }
  0xfe   :  { %v3158_v53 = vpop.f32.mrf.mxu0  ;;  %v3160_v62 = vpop.f32.mrf.mxu1 }
 0x100   :  { %v3164_v4 = vpop.f32.mrf.mxu0  ;;  %v3166_v16 = vpop.f32.mrf.mxu1 }
 0x104   :  { %v220_v15 = vpop.f32.mrf.mxu0  ;;  %v333_v14 = vpop.f32.mrf.mxu1 }
 0x105   :  { %v3174_v11 = vadd.f32 %v220_v15, %v106_v17  ;;  %v3177_v10 = vadd.f32 %v333_v14, %v3170_v35 }
 0x106   :  { %v222_v9 = vpop.f32.mrf.mxu0  ;;  %v335_v7 = vpop.f32.mrf.mxu1 }
 0x107   :  { %4002 = vst [vmem:[#allocation41_spill] sm:$0xff] %v3174_v11  ;;  %4003 = vst [vmem:[#allocation42_spill] sm:$0xff] %v3177_v10  ;;  %v3179_v6 = vadd.f32 %v222_v9, %v110_v13  ;;  %v3182_v5 = vadd.f32 %v335_v7, %v3172_v12 }
 0x109   :  { %4004 = vst [vmem:[#allocation43_spill] sm:$0xff] %v3179_v6  ;;  %4005 = vst [vmem:[#allocation44_spill] sm:$0xff] %v3182_v5 }
 0x10a   :  { %v226_v8 = vpop.f32.mrf.mxu0  ;;  %v339_v0 = vpop.f32.mrf.mxu1 }
 0x10b   :  { %v3184_v3 = vadd.f32 %v226_v8, %v106_v17  ;;  %v3187_v18 = vadd.f32 %v339_v0, %v3170_v35 }
 0x10c   :  { %v228_v19 = vpop.f32.mrf.mxu0  ;;  %v341_v15 = vpop.f32.mrf.mxu1 }
 0x10d   :  { %4006 = vst [vmem:[#allocation45_spill] sm:$0xff] %v3184_v3  ;;  %4007 = vst [vmem:[#allocation46_spill] sm:$0xff] %v3187_v18  ;;  %v3189_v26 = vadd.f32 %v228_v19, %v110_v13  ;;  %v3192_v14 = vadd.f32 %v341_v15, %v3172_v12 }
 0x10f   :  { %4008 = vst [vmem:[#allocation47_spill] sm:$0xff] %v3189_v26  ;;  %4009 = vst [vmem:[#allocation48_spill] sm:$0xff] %v3192_v14 }
 0x110   :  { %v232_v10 = vpop.f32.mrf.mxu0  ;;  %v345_v9 = vpop.f32.mrf.mxu1 }
 0x111   :  { %v3194_v6 = vadd.f32 %v232_v10, %v106_v17  ;;  %v3197_v7 = vadd.f32 %v345_v9, %v3170_v35 }
 0x112   :  { %v234_v5 = vpop.f32.mrf.mxu0  ;;  %v347_v8 = vpop.f32.mrf.mxu1 }
 0x113   :  { %4010 = vst [vmem:[#allocation49_spill] sm:$0xff] %v3194_v6  ;;  %4011 = vst [vmem:[#allocation50_spill] sm:$0xff] %v3197_v7  ;;  %v3199_v3 = vadd.f32 %v234_v5, %v110_v13  ;;  %v3202_v0 = vadd.f32 %v347_v8, %v3172_v12 }
 0x115   :  { %4012 = vst [vmem:[#allocation51_spill] sm:$0xff] %v3199_v3  ;;  %4013 = vst [vmem:[#allocation52_spill] sm:$0xff] %v3202_v0 }
 0x116   :  { %v238_v18 = vpop.f32.mrf.mxu0  ;;  %v351_v19 = vpop.f32.mrf.mxu1 }
 0x117   :  { %v3204_v26 = vadd.f32 %v238_v18, %v106_v17  ;;  %v3207_v15 = vadd.f32 %v351_v19, %v3170_v35 }
 0x118   :  { %v240_v14 = vpop.f32.mrf.mxu0  ;;  %v353_v10 = vpop.f32.mrf.mxu1 }
 0x119   :  { %4014 = vst [vmem:[#allocation53_spill] sm:$0xff] %v3204_v26  ;;  %4015 = vst [vmem:[#allocation54_spill] sm:$0xff] %v3207_v15  ;;  %v3209_v6 = vadd.f32 %v240_v14, %v110_v13  ;;  %v3212_v9 = vadd.f32 %v353_v10, %v3172_v12 }
 0x11b   :  { %4016 = vst [vmem:[#allocation55_spill] sm:$0xff] %v3209_v6  ;;  %4017 = vst [vmem:[#allocation56_spill] sm:$0xff] %v3212_v9 }
 0x11c   :  { %v244_v7 = vpop.f32.mrf.mxu0  ;;  %v357_v5 = vpop.f32.mrf.mxu1 }
 0x11d   :  { %v3214_v3 = vadd.f32 %v244_v7, %v106_v17  ;;  %v3217_v8 = vadd.f32 %v357_v5, %v3170_v35 }
 0x11e   :  { %v246_v0 = vpop.f32.mrf.mxu0  ;;  %v359_v18 = vpop.f32.mrf.mxu1 }
 0x11f   :  { %4018 = vst [vmem:[#allocation57_spill] sm:$0xff] %v3214_v3  ;;  %4019 = vst [vmem:[#allocation58_spill] sm:$0xff] %v3217_v8  ;;  %v3219_v26 = vadd.f32 %v246_v0, %v110_v13  ;;  %v3222_v19 = vadd.f32 %v359_v18, %v3172_v12 }
 0x121   :  { %4020 = vst [vmem:[#allocation59_spill] sm:$0xff] %v3219_v26  ;;  %4021 = vst [vmem:[#allocation60_spill] sm:$0xff] %v3222_v19 }
 0x122   :  { %v250_v15 = vpop.f32.mrf.mxu0  ;;  %v363_v14 = vpop.f32.mrf.mxu1 }
 0x123   :  { %v3224_v6 = vadd.f32 %v250_v15, %v106_v17  ;;  %v3227_v10 = vadd.f32 %v363_v14, %v3170_v35 }
 0x124   :  { %v252_v9 = vpop.f32.mrf.mxu0  ;;  %v365_v7 = vpop.f32.mrf.mxu1 }
 0x125   :  { %4022 = vst [vmem:[#allocation61_spill] sm:$0xff] %v3224_v6  ;;  %4023 = vst [vmem:[#allocation62_spill] sm:$0xff] %v3227_v10  ;;  %v3229_v3 = vadd.f32 %v252_v9, %v110_v13  ;;  %v3232_v5 = vadd.f32 %v365_v7, %v3172_v12  ;;  %v215_v9 = vadd.f32 %v3158_v53, %v106_v17 }
 0x126   :  { %v217_v7 = vadd.f32 %v3164_v4, %v110_v13 }
 0x127   :  { %4024 = vst [vmem:[#allocation63_spill] sm:$0xff] %v3229_v3  ;;  %4025 = vst [vmem:[#allocation64_spill] sm:$0xff] %v3232_v5 }
 0x128   :  { %v256_v8 = vpop.f32.mrf.mxu0  ;;  %v369_v0 = vpop.f32.mrf.mxu1 }
 0x129   :  { %v3234_v26 = vadd.f32 %v256_v8, %v106_v17  ;;  %v3237_v18 = vadd.f32 %v369_v0, %v3170_v35 }
 0x12a   :  { %v258_v19 = vpop.f32.mrf.mxu0  ;;  %v371_v15 = vpop.f32.mrf.mxu1 }
 0x12b   :  { %4026 = vst [vmem:[#allocation65_spill] sm:$0xff] %v3234_v26  ;;  %4027 = vst [vmem:[#allocation66_spill] sm:$0xff] %v3237_v18  ;;  %v3239_v6 = vadd.f32 %v258_v19, %v110_v13  ;;  %v3242_v14 = vadd.f32 %v371_v15, %v3172_v12  ;;  %v330_v19 = vadd.f32 %v3166_v16, %v3172_v12 }
 0x12c   :  { %v328_v15 = vadd.f32 %v3160_v62, %v3170_v35 }
 0x12d   :  { %4028 = vst [vmem:[#allocation67_spill] sm:$0xff] %v3239_v6  ;;  %4029 = vst [vmem:[#allocation68_spill] sm:$0xff] %v3242_v14 }
 0x12e   :  { %v542_v10 = vpop.f32.mrf.mxu0  ;;  %v613_v26 = vpop.f32.mrf.mxu1 }
 0x12f   :  { %v618_v5 = vadd.f32 %v542_v10, %v215_v9  ;;  %v620_v14 = vadd.f32 %v613_v26, %v328_v15 }
 0x130   :  { %v544_v3 = vpop.f32.mrf.mxu0  ;;  %v615_v18 = vpop.f32.mrf.mxu1 }
 0x131   :  { %v2436_v11 = vmul.f32 -1.442695, %v618_v5  ;;  %v619_v8 = vadd.f32 %v544_v3, %v217_v7  ;;  %v621_v6 = vadd.f32 %v615_v18, %v330_v19 }
 0x133   :  { %2503 = vpow2.f32 %v2436_v11  ;;  %v2437_v0 = vmul.f32 -1.442695, %v619_v8  ;;  %v2438_v53 = vmul.f32 -1.442695, %v621_v6  ;;  %v2812_v6 = vmov 1966171168  }
 0x134   :  { %v649_v62 = vunpack.c.l.s4 %v2812_v6  ;;  %v4032_v6 = vld [vmem:[#allocation22_spill] sm:$0xff] }
 0x135   :  { %2505 = vpow2.f32 %v2437_v0 }
 0x136   :  { %2507 = vpow2.f32 %v2438_v53  ;;  %v650_v35 = vunpack.c.0.s8 %v649_v62  ;;  %v4033_v62 = vld [vmem:[#allocation23_spill] sm:$0xff] }
 0x138   :  { %v3254_v8 = vsub.s32 %v650_v35, %v3156_v44  ;;  %v4034_v35 = vld [vmem:[#allocation24_spill] sm:$0xff] }
 0x140   :  { %v2504_v17 = vpop.eup %2503 }
 0x141   :  { %v625_v4 = vadd.f32 1.0, %v2504_v17 }
 0x142   :  { %v2506_v13 = vpop.eup %2505 }
 0x143   :  { %2509 = vrcp.f32 %v625_v4  ;;  %v631_v3 = vadd.f32 1.0, %v2506_v13  ;;  %v2508_v11 = vpop.eup %2507 }
 0x144   :  { %2511 = vtanh.f32 %v620_v14  ;;  %v638_v7 = vadd.f32 1.0, %v2508_v11 }
 0x145   :  { %2513 = vrcp.f32 %v631_v3 }
 0x146   :  { %2515 = vrcp.f32 %v638_v7 }
 0x150   :  { %v2510_v10 = vpop.eup %2509 }
 0x151   :  { %v2512_v5 = vpop.eup %2511 }
 0x152   :  { %v2514_v9 = vpop.eup %2513  ;;  %v642_v16 = vmul.f32 %v2512_v5, %v2510_v10 }
 0x153   :  { %v641_v12 = vmul.f32 0.0, %v2514_v9  ;;  %v2516_v26 = vpop.eup %2515 }
 0x155   :  { %v3250_v18 = vadd.f32 %v642_v16, %v641_v12  ;;  %v4030_v12 = vld [vmem:[#allocation20_spill] sm:$0xff]  ;;  %v4031_v16 = vld [vmem:[#allocation21_spill] sm:$0xff] }
 0x157   :  { %2517 = vtanh.f32 %v3250_v18 }
 0x164   :  { %v2518_v14 = vpop.eup %2517 }
 0x165   :  { %v645_v0 = vmul.f32 %v2518_v14, %v2516_v26  ;;  %v4035_v26 = vld [vmem:[#allocation25_spill] sm:$0xff]  ;;  %v4036_v14 = vld [vmem:[#allocation26_spill] sm:$0xff] }
 0x167   :  { %v647_v19 = vcombine.high %v645_v0, %v645_v0  ;;  %v654_v15 = vrot.slane %v645_v0, %v3254_v8  ;;  %782 = vmatmul.mubr.f32.vlgmr.msra.gmra.mxu0 %v645_v0  ;;  %853 = vmatmul.mubr.f32.vlgmr.msra.gmra.mxu1 %v645_v0  ;;  %v4037_v0 = vld [vmem:[#allocation27_spill] sm:$0xff] }
 0x168   :  { %959 = vmatpush1.msra.mxu0 %v2866_v20  ;;  %1030 = vmatpush1.msra.mxu1 %v2868_v21 }
 0x169   :  { %v661_v53 = vrot.slane %v647_v19, %v3254_v8  ;;  %v662_v17 = vcombine.high %v654_v15, %v654_v15  ;;  %v670_v4 = vrot.slane %v654_v15, %v3254_v8  ;;  %2439 = vst.sshfl [vmem:[#allocation13] sm:$0x1 pattern:$0x73625140] %v654_v15  ;;  %960 = vmatprep.subr.mxu0 %v2872_v22  ;;  %v4038_v19 = vld [vmem:[#allocation28_spill] sm:$0xff]  ;;  %v4039_v15 = vld [vmem:[#allocation29_spill] sm:$0xff] }
 0x16a   :  { %1031 = vmatprep.subr.mxu1 %v2874_v23  ;;  %961 = vmatpush1.msra.mxu0 %v2880_v24 }
 0x16b   :  { %1032 = vmatpush1.msra.mxu1 %v2882_v25  ;;  %v663_v44 = vcombine.high %v661_v53, %v661_v53  ;;  %v677_v13 = vrot.slane %v661_v53, %v3254_v8  ;;  %v684_v3 = vrot.slane %v662_v17, %v3254_v8  ;;  %v692_v11 = vcombine.high %v670_v4, %v670_v4  ;;  %v4042_v4 = vld [vmem:[#allocation32_spill] sm:$0xff] }
 0x16c   :  { %2440 = vst.sshfl [vmem:[#allocation13 + $0x8] sm:$0x1 pattern:$0x73625140] %v662_v17  ;;  %962 = vmatprep.subr.mxu0 %v2888_v27  ;;  %1033 = vmatprep.subr.mxu1 %v2890_v28  ;;  %v4041_v17 = vld [vmem:[#allocation31_spill] sm:$0xff] }
 0x16d   :  { %2441 = vst.sshfl [vmem:[#allocation13 + $0x20] sm:$0x1 pattern:$0x73625140] %v661_v53  ;;  %963 = vmatpush1.msra.mxu0 %v2894_v29  ;;  %v691_v10 = vrot.slane %v663_v44, %v3254_v8  ;;  %v693_v5 = vcombine.high %v677_v13, %v677_v13  ;;  %v694_v9 = vcombine.high %v684_v3, %v684_v3  ;;  %706 = vst [vmem:[#allocation13 + $0x10] sm:$0x1] %v692_v11 }
 0x16e   :  { %2442 = vst.sshfl [vmem:[#allocation13 + $0x28] sm:$0x1 pattern:$0x73625140] %v663_v44  ;;  %1034 = vmatpush1.msra.mxu1 %v2896_v30  ;;  %964 = vmatprep.subr.mxu0 %v2900_v31  ;;  %v4040_v53 = vld [vmem:[#allocation30_spill] sm:$0xff]  ;;  %v4043_v44 = vld [vmem:[#allocation33_spill] sm:$0xff] }
 0x16f   :  { %1035 = vmatprep.subr.mxu1 %v2902_v32  ;;  %965 = vmatpush1.msra.mxu0 %v2908_v33  ;;  %v695_v7 = vcombine.high %v691_v10, %v691_v10  ;;  %707 = vst [vmem:[#allocation13 + $0x18] sm:$0x1] %v694_v9  ;;  %710 = vst [vmem:[#allocation13 + $0x30] sm:$0x1] %v693_v5  ;;  %v4044_v13 = vld [vmem:[#allocation34_spill] sm:$0xff]  ;;  %v4045_v3 = vld [vmem:[#allocation35_spill] sm:$0xff] }
 0x170   :  { %1036 = vmatpush1.msra.mxu1 %v2910_v34  ;;  %966 = vmatprep.subr.mxu0 %v2916_v36  ;;  %v4046_v11 = vld [vmem:[#allocation36_spill] sm:$0xff]  ;;  %v4047_v10 = vld [vmem:[#allocation37_spill] sm:$0xff]  ;;  %v4048_v5 = vld [vmem:[#allocation38_spill] sm:$0xff] }
 0x171   :  { %1037 = vmatprep.subr.mxu1 %v2918_v37  ;;  %967 = vmatpush1.msra.mxu0 %v2922_v38  ;;  %711 = vst [vmem:[#allocation13 + $0x38] sm:$0x1] %v695_v7  ;;  %v4049_v9 = vld [vmem:[#allocation39_spill] sm:$0xff]  ;;  %v4050_v7 = vmov 0.0  }
 0x172   :  { %1038 = vmatpush1.msra.mxu1 %v2924_v39  ;;  %968 = vmatprep.subr.mxu0 %v2928_v40 }
 0x173   :  { %1039 = vmatprep.subr.mxu1 %v2930_v41  ;;  %969 = vmatpush1.msra.mxu0 %v2936_v42 }
 0x174   :  { %1040 = vmatpush1.msra.mxu1 %v2938_v43  ;;  %970 = vmatprep.subr.mxu0 %v2944_v45 }
 0x175   :  { %1041 = vmatprep.subr.mxu1 %v2946_v46  ;;  %971 = vmatpush1.msra.mxu0 %v2950_v47 }
 0x176   :  { %1042 = vmatpush1.msra.mxu1 %v2952_v48  ;;  %972 = vmatprep.subr.mxu0 %v2956_v49 }
 0x177   :  { %1043 = vmatprep.subr.mxu1 %v2958_v50  ;;  %973 = vmatpush1.msra.mxu0 %v2964_v51 }
 0x178   :  { %1044 = vmatpush1.msra.mxu1 %v2966_v52  ;;  %974 = vmatprep.subr.mxu0 %v2972_v54 }
 0x179   :  { %1045 = vmatprep.subr.mxu1 %v2974_v55  ;;  %975 = vmatpush1.msra.mxu0 %v2978_v56 }
 0x17a   :  { %1046 = vmatpush1.msra.mxu1 %v2980_v57  ;;  %976 = vmatprep.subr.mxu0 %v2984_v58 }
 0x17b   :  { %1047 = vmatprep.subr.mxu1 %v2986_v59  ;;  %977 = vmatpush1.msra.mxu0 %v2992_v60 }
 0x17c   :  { %1048 = vmatpush1.msra.mxu1 %v2994_v61  ;;  %978 = vmatprep.subr.mxu0 %v3000_v63 }
 0x17d   :  { %1049 = vmatprep.subr.mxu1 %v3002_v1  ;;  %979 = vmatpush1.msra.mxu0 %v3006_v2 }
 0x17e   :  { %1050 = vmatpush1.msra.mxu1 %v4030_v12  ;;  %980 = vmatprep.subr.mxu0 %v4031_v16 }
 0x17f   :  { %1051 = vmatprep.subr.mxu1 %v4032_v6  ;;  %981 = vmatpush1.msra.mxu0 %v4033_v62 }
 0x180   :  { %1052 = vmatpush1.msra.mxu1 %v4034_v35  ;;  %982 = vmatprep.subr.mxu0 %v4035_v26  ;;  %v4057_v26 = vld [vmem:[#allocation42_spill] sm:$0xff] }
 0x181   :  { %1053 = vmatprep.subr.mxu1 %v4036_v14  ;;  %983 = vmatpush1.msra.mxu0 %v4037_v0  ;;  %v4056_v14 = vld [vmem:[#allocation44_spill] sm:$0xff] }
 0x182   :  { %1054 = vmatpush1.msra.mxu1 %v4038_v19  ;;  %984 = vmatprep.subr.mxu0 %v4039_v15 }
 0x183   :  { %1055 = vmatprep.subr.mxu1 %v4040_v53  ;;  %985 = vmatpush1.msra.mxu0 %v4041_v17  ;;  %v4051_v53 = vld [vmem:[#allocation40_spill] sm:$0xff] }
 0x184   :  { %1056 = vmatpush1.msra.mxu1 %v4042_v4  ;;  %986 = vmatprep.subr.mxu0 %v4043_v44  ;;  %v4052_v4 = vld [vmem:[#allocation18_spill] sm:$0xff]  ;;  %v4053_v44 = vld [vmem:[#allocation19_spill] sm:$0xff] }
 0x185   :  { %1057 = vmatprep.subr.mxu1 %v4044_v13  ;;  %987 = vmatpush1.msra.mxu0 %v4045_v3  ;;  %v4054_v3 = vld [vmem:[#allocation41_spill] sm:$0xff] }
 0x186   :  { %1058 = vmatpush1.msra.mxu1 %v4046_v11  ;;  %988 = vmatprep.subr.mxu0 %v4047_v10  ;;  %v4055_v10 = vld [vmem:[#allocation43_spill] sm:$0xff] }
 0x187   :  { %1059 = vmatprep.subr.mxu1 %v4048_v5  ;;  %989 = vmatpush1.msra.mxu0 %v4049_v9 }
 0x188   :  { %1022 = vmatprep.mubr.f32.mxu0 %v4050_v7  ;;  %1060 = vmatpush1.msra.mxu1 %v4051_v53 }
 0x189   :  { %1093 = vmatprep.mubr.f32.mxu1 %v4050_v7  ;;  %1199 = vmatprep.subr.mxu0 %v4052_v4 }
 0x18a   :  { %1270 = vmatprep.subr.mxu1 %v4053_v44 }
 0x227   :  { %v783_v13 = vpop.f32.mrf.mxu0  ;;  %v854_v5 = vpop.f32.mrf.mxu1 }
 0x228   :  { %v859_v17 = vadd.f32 %v783_v13, %v4054_v3  ;;  %v861_v7 = vadd.f32 %v854_v5, %v4057_v26 }
 0x229   :  { %v785_v11 = vpop.f32.mrf.mxu0  ;;  %v856_v0 = vpop.f32.mrf.mxu1 }
 0x22a   :  { %v2443_v15 = vmul.f32 -1.442695, %v859_v17  ;;  %v860_v19 = vadd.f32 %v785_v11, %v4055_v10  ;;  %v862_v53 = vadd.f32 %v856_v0, %v4056_v14 }
 0x22c   :  { %2519 = vpow2.f32 %v2443_v15  ;;  %v2444_v9 = vmul.f32 -1.442695, %v860_v19  ;;  %v2445_v35 = vmul.f32 -1.442695, %v862_v53 }
 0x22e   :  { %2521 = vpow2.f32 %v2444_v9 }
 0x22f   :  { %2523 = vtanh.f32 %v861_v7 }
 0x230   :  { %2525 = vpow2.f32 %v2445_v35 }
 0x239   :  { %v2520_v4 = vpop.eup %2519 }
 0x23a   :  { %v866_v62 = vadd.f32 1.0, %v2520_v4 }
 0x23b   :  { %v2522_v44 = vpop.eup %2521 }
 0x23c   :  { %2527 = vrcp.f32 %v866_v62  ;;  %v872_v13 = vadd.f32 1.0, %v2522_v44  ;;  %v2524_v17 = vpop.eup %2523 }
 0x23d   :  { %v2526_v3 = vpop.eup %2525 }
 0x23e   :  { %2529 = vrcp.f32 %v872_v13  ;;  %v879_v10 = vadd.f32 1.0, %v2526_v3 }
 0x240   :  { %2531 = vrcp.f32 %v879_v10 }
 0x249   :  { %v2528_v15 = vpop.eup %2527 }
 0x24a   :  { %v883_v11 = vmul.f32 %v2528_v15, %v2524_v17 }
 0x24b   :  { %v2530_v19 = vpop.eup %2529 }
 0x24c   :  { %v882_v9 = vmul.f32 %v2530_v19, %v3250_v18 }
 0x24d   :  { %v2532_v26 = vpop.eup %2531 }
 0x24e   :  { %v3333_v14 = vadd.f32 %v883_v11, %v882_v9 }
 0x250   :  { %2533 = vtanh.f32 %v3333_v14 }
 0x25d   :  { %v2534_v0 = vpop.eup %2533 }
 0x25e   :  { %v886_v53 = vmul.f32 %v2534_v0, %v2532_v26 }
 0x260   :  { %v888_v35 = vcombine.high %v886_v53, %v886_v53  ;;  %v895_v62 = vrot.slane %v886_v53, %v3254_v8  ;;  %1023 = vmatmul.mubr.f32.vlgmr.msra.gmra.mxu0 %v886_v53  ;;  %1094 = vmatmul.mubr.f32.vlgmr.msra.gmra.mxu1 %v886_v53 }
 0x261   :  { %1200 = vmatpush1.msra.mxu0 %v2866_v20  ;;  %1271 = vmatpush1.msra.mxu1 %v2868_v21 }
 0x262   :  { %v902_v5 = vrot.slane %v888_v35, %v3254_v8  ;;  %v903_v18 = vcombine.high %v895_v62, %v895_v62  ;;  %v911_v7 = vrot.slane %v895_v62, %v3254_v8  ;;  %2446 = vst.sshfl [vmem:[#allocation13 + $0x1] sm:$0x1 pattern:$0x73625140] %v895_v62  ;;  %1201 = vmatprep.subr.mxu0 %v2872_v22 }
 0x263   :  { %1272 = vmatprep.subr.mxu1 %v2874_v23  ;;  %1202 = vmatpush1.msra.mxu0 %v2880_v24 }
 0x264   :  { %1273 = vmatpush1.msra.mxu1 %v2882_v25  ;;  %v904_v4 = vcombine.high %v902_v5, %v902_v5  ;;  %v918_v44 = vrot.slane %v902_v5, %v3254_v8  ;;  %v925_v20 = vrot.slane %v903_v18, %v3254_v8  ;;  %v933_v21 = vcombine.high %v911_v7, %v911_v7  ;;  %v3421_v7 = vld [vmem:[#allocation11 + $0x1e0] sm:$0xff] }
 0x265   :  { %2447 = vst.sshfl [vmem:[#allocation13 + $0x9] sm:$0x1 pattern:$0x73625140] %v903_v18  ;;  %1203 = vmatprep.subr.mxu0 %v2888_v27  ;;  %1274 = vmatprep.subr.mxu1 %v2890_v28  ;;  %v4058_v27 = vld [vmem:[#allocation23_spill] sm:$0xff]  ;;  %v4059_v28 = vld [vmem:[#allocation24_spill] sm:$0xff] }
 0x266   :  { %2448 = vst.sshfl [vmem:[#allocation13 + $0x21] sm:$0x1 pattern:$0x73625140] %v902_v5  ;;  %1204 = vmatpush1.msra.mxu0 %v2894_v29  ;;  %v932_v22 = vrot.slane %v904_v4, %v3254_v8  ;;  %v934_v23 = vcombine.high %v918_v44, %v918_v44  ;;  %v935_v24 = vcombine.high %v925_v20, %v925_v20  ;;  %947 = vst [vmem:[#allocation13 + $0x11] sm:$0x1] %v933_v21 }
 0x267   :  { %2449 = vst.sshfl [vmem:[#allocation13 + $0x29] sm:$0x1 pattern:$0x73625140] %v904_v4  ;;  %1275 = vmatpush1.msra.mxu1 %v2896_v30  ;;  %1205 = vmatprep.subr.mxu0 %v2900_v31  ;;  %v4060_v29 = vld [vmem:[#allocation25_spill] sm:$0xff]  ;;  %v4061_v30 = vld [vmem:[#allocation26_spill] sm:$0xff] }
 0x268   :  { %1276 = vmatprep.subr.mxu1 %v2902_v32  ;;  %1206 = vmatpush1.msra.mxu0 %v2908_v33  ;;  %v936_v25 = vcombine.high %v932_v22, %v932_v22  ;;  %948 = vst [vmem:[#allocation13 + $0x19] sm:$0x1] %v935_v24  ;;  %951 = vst [vmem:[#allocation13 + $0x31] sm:$0x1] %v934_v23  ;;  %v4062_v31 = vld [vmem:[#allocation27_spill] sm:$0xff]  ;;  %v4063_v32 = vld [vmem:[#allocation28_spill] sm:$0xff] }
 0x269   :  { %1277 = vmatpush1.msra.mxu1 %v2910_v34  ;;  %1207 = vmatprep.subr.mxu0 %v2916_v36  ;;  %v4064_v33 = vld [vmem:[#allocation29_spill] sm:$0xff]  ;;  %v4065_v34 = vld [vmem:[#allocation30_spill] sm:$0xff]  ;;  %v4066_v36 = vld [vmem:[#allocation31_spill] sm:$0xff] }
 0x26a   :  { %1278 = vmatprep.subr.mxu1 %v2918_v37  ;;  %1208 = vmatpush1.msra.mxu0 %v2922_v38  ;;  %952 = vst [vmem:[#allocation13 + $0x39] sm:$0x1] %v936_v25  ;;  %v4067_v37 = vld [vmem:[#allocation32_spill] sm:$0xff]  ;;  %v4068_v38 = vld [vmem:[#allocation33_spill] sm:$0xff]  ;;  %v3429_v21 = vld [vmem:[#allocation11 + $0x1c8] sm:$0xff] }
 0x26b   :  { %1279 = vmatpush1.msra.mxu1 %v2924_v39  ;;  %1209 = vmatprep.subr.mxu0 %v2928_v40  ;;  %v4069_v39 = vld [vmem:[#allocation34_spill] sm:$0xff]  ;;  %v4070_v40 = vld [vmem:[#allocation35_spill] sm:$0xff]  ;;  %v3424_v4 = vld [vmem:[#allocation11 + $0x1f0] sm:$0xff] }
 0x26c   :  { %1280 = vmatprep.subr.mxu1 %v2930_v41  ;;  %1210 = vmatpush1.msra.mxu0 %v2936_v42  ;;  %v4071_v41 = vld [vmem:[#allocation36_spill] sm:$0xff]  ;;  %v4072_v42 = vld [vmem:[#allocation37_spill] sm:$0xff]  ;;  %v3435_v23 = vld [vmem:[#allocation11 + $0x1c0] sm:$0xff] }
 0x26d   :  { %1281 = vmatpush1.msra.mxu1 %v2938_v43  ;;  %1211 = vmatprep.subr.mxu0 %v2944_v45  ;;  %v4073_v43 = vld [vmem:[#allocation38_spill] sm:$0xff]  ;;  %v4074_v45 = vld [vmem:[#allocation39_spill] sm:$0xff]  ;;  %v3432_v22 = vld [vmem:[#allocation11 + $0x1d8] sm:$0xff] }
 0x26e   :  { %1282 = vmatprep.subr.mxu1 %v2946_v46  ;;  %1212 = vmatpush1.msra.mxu0 %v2950_v47  ;;  %v4075_v46 = vmov 0.0   ;;  %v4076_v47 = vld [vmem:[#allocation40_spill] sm:$0xff] }
 0x26f   :  { %1283 = vmatpush1.msra.mxu1 %v2952_v48  ;;  %1213 = vmatprep.subr.mxu0 %v2956_v49  ;;  %v3406_v48 = vld [vmem:[#allocation11 + $0x1e8] sm:$0xff]  ;;  %v3409_v49 = vld [vmem:[#allocation11 + $0x1f8] sm:$0xff]  ;;  %v3438_v24 = vld [vmem:[#allocation11 + $0x1d0] sm:$0xff] }
 0x270   :  { %1284 = vmatprep.subr.mxu1 %v2958_v50  ;;  %1214 = vmatpush1.msra.mxu0 %v2964_v51  ;;  %4077 = vst [vmem:[#allocation20_spill] sm:$0xff] %v3406_v48  ;;  %4078 = vst [vmem:[#allocation21_spill] sm:$0xff] %v3409_v49  ;;  %v4079_v51 = vld [vmem:[#allocation45_spill] sm:$0xff] }
 0x271   :  { %1285 = vmatpush1.msra.mxu1 %v2966_v52  ;;  %1215 = vmatprep.subr.mxu0 %v2972_v54 }
 0x272   :  { %1286 = vmatprep.subr.mxu1 %v2974_v55  ;;  %1216 = vmatpush1.msra.mxu0 %v2978_v56  ;;  %v4080_v56 = vld [vmem:[#allocation47_spill] sm:$0xff] }
 0x273   :  { %1287 = vmatpush1.msra.mxu1 %v2980_v57  ;;  %1217 = vmatprep.subr.mxu0 %v2984_v58 }
 0x274   :  { %1288 = vmatprep.subr.mxu1 %v2986_v59  ;;  %1218 = vmatpush1.msra.mxu0 %v2992_v60 }
 0x275   :  { %1289 = vmatpush1.msra.mxu1 %v2994_v61  ;;  %1219 = vmatprep.subr.mxu0 %v3000_v63  ;;  %v4081_v61 = vld [vmem:[#allocation48_spill] sm:$0xff] }
 0x276   :  { %1290 = vmatprep.subr.mxu1 %v3002_v1  ;;  %1220 = vmatpush1.msra.mxu0 %v3006_v2  ;;  %v4082_v1 = vld [vmem:[#allocation46_spill] sm:$0xff] }
 0x277   :  { %1291 = vmatpush1.msra.mxu1 %v4030_v12  ;;  %1221 = vmatprep.subr.mxu0 %v4031_v16 }
 0x278   :  { %1292 = vmatprep.subr.mxu1 %v4032_v6  ;;  %1222 = vmatpush1.msra.mxu0 %v4058_v27 }
 0x279   :  { %1293 = vmatpush1.msra.mxu1 %v4059_v28  ;;  %1223 = vmatprep.subr.mxu0 %v4060_v29 }
 0x27a   :  { %1294 = vmatprep.subr.mxu1 %v4061_v30  ;;  %1224 = vmatpush1.msra.mxu0 %v4062_v31  ;;  %v3443_v30 = vld [vmem:[#allocation11 + $0x1a8] sm:$0xff]  ;;  %v3446_v31 = vld [vmem:[#allocation11 + $0x1b8] sm:$0xff] }
 0x27b   :  { %1295 = vmatpush1.msra.mxu1 %v4063_v32  ;;  %1225 = vmatprep.subr.mxu0 %v4064_v33  ;;  %v3449_v32 = vld [vmem:[#allocation11 + $0x1a0] sm:$0xff] }
 0x27c   :  { %1296 = vmatprep.subr.mxu1 %v4065_v34  ;;  %1226 = vmatpush1.msra.mxu0 %v4066_v36 }
 0x27d   :  { %1297 = vmatpush1.msra.mxu1 %v4067_v37  ;;  %1227 = vmatprep.subr.mxu0 %v4068_v38  ;;  %v3453_v37 = vld [vmem:[#allocation11 + $0x1b0] sm:$0xff]  ;;  %v3456_v38 = vld [vmem:[#allocation11 + $0x188] sm:$0xff] }
 0x27e   :  { %1298 = vmatprep.subr.mxu1 %v4069_v39  ;;  %1228 = vmatpush1.msra.mxu0 %v4070_v40  ;;  %v3459_v39 = vld [vmem:[#allocation11 + $0x198] sm:$0xff]  ;;  %v3462_v40 = vld [vmem:[#allocation11 + $0x180] sm:$0xff] }
 0x27f   :  { %1299 = vmatpush1.msra.mxu1 %v4071_v41  ;;  %1229 = vmatprep.subr.mxu0 %v4072_v42  ;;  %v3465_v42 = vld [vmem:[#allocation11 + $0x190] sm:$0xff] }
 0x280   :  { %1300 = vmatprep.subr.mxu1 %v4073_v43  ;;  %1230 = vmatpush1.msra.mxu0 %v4074_v45  ;;  %v3468_v43 = vld [vmem:[#allocation11 + $0x168] sm:$0xff]  ;;  %v3471_v45 = vld [vmem:[#allocation11 + $0x178] sm:$0xff] }
 0x281   :  { %1263 = vmatprep.mubr.f32.mxu0 %v4075_v46  ;;  %1301 = vmatpush1.msra.mxu1 %v4076_v47  ;;  %v3474_v47 = vld [vmem:[#allocation11 + $0x160] sm:$0xff] }
 0x282   :  { %1334 = vmatprep.mubr.f32.mxu1 %v4075_v46  ;;  %1440 = vmatprep.subr.mxu0 %v3406_v48 }
 0x283   :  { %1511 = vmatprep.subr.mxu1 %v3409_v49 }
 0x320   :  { %v1024_v50 = vpop.f32.mrf.mxu0  ;;  %v1095_v58 = vpop.f32.mrf.mxu1 }
 0x321   :  { %v1100_v52 = vadd.f32 %v1024_v50, %v4079_v51  ;;  %v1102_v2 = vadd.f32 %v1095_v58, %v4082_v1  ;;  %v3477_v50 = vld [vmem:[#allocation11 + $0x170] sm:$0xff]  ;;  %v3480_v51 = vld [vmem:[#allocation11 + $0x148] sm:$0xff]  ;;  %v3498_v58 = vld [vmem:[#allocation11 + $0x120] sm:$0xff] }
 0x322   :  { %v1026_v54 = vpop.f32.mrf.mxu0  ;;  %v1097_v60 = vpop.f32.mrf.mxu1  ;;  %v3513_v1 = vld [vmem:[#allocation11 + $0x110] sm:$0xff] }
 0x323   :  { %v2450_v55 = vmul.f32 -1.442695, %v1100_v52  ;;  %v1101_v57 = vadd.f32 %v1026_v54, %v4080_v56  ;;  %v1103_v63 = vadd.f32 %v1097_v60, %v4081_v61  ;;  %v3483_v52 = vld [vmem:[#allocation11 + $0x158] sm:$0xff]  ;;  %v3486_v54 = vld [vmem:[#allocation11 + $0x140] sm:$0xff]  ;;  %v3492_v56 = vld [vmem:[#allocation11 + $0x128] sm:$0xff] }
 0x324   :  { %v3504_v60 = vld [vmem:[#allocation11 + $0x108] sm:$0xff]  ;;  %v3507_v61 = vld [vmem:[#allocation11 + $0x118] sm:$0xff] }
 0x325   :  { %2535 = vpow2.f32 %v2450_v55  ;;  %v2451_v59 = vmul.f32 -1.442695, %v1101_v57  ;;  %v2452_v12 = vmul.f32 -1.442695, %v1103_v63  ;;  %v3489_v55 = vld [vmem:[#allocation11 + $0x150] sm:$0xff]  ;;  %v3495_v57 = vld [vmem:[#allocation11 + $0x138] sm:$0xff] }
 0x326   :  { %v3510_v63 = vld [vmem:[#allocation11 + $0x100] sm:$0xff] }
 0x327   :  { %2537 = vpow2.f32 %v2451_v59  ;;  %v3501_v59 = vld [vmem:[#allocation11 + $0x130] sm:$0xff] }
 0x328   :  { %2539 = vtanh.f32 %v1102_v2  ;;  %v3516_v2 = vld [vmem:[#allocation11 + $0xe8] sm:$0xff] }
 0x329   :  { %2541 = vpow2.f32 %v2452_v12  ;;  %v3519_v12 = vld [vmem:[#allocation11 + $0xf8] sm:$0xff] }
 0x332   :  { %v2536_v16 = vpop.eup %2535 }
 0x333   :  { %v1107_v6 = vadd.f32 1.0, %v2536_v16  ;;  %v3522_v16 = vld [vmem:[#allocation11 + $0xe0] sm:$0xff] }
 0x334   :  { %v2538_v13 = vpop.eup %2537 }
 0x335   :  { %2543 = vrcp.f32 %v1107_v6  ;;  %v1113_v17 = vadd.f32 1.0, %v2538_v13  ;;  %v2540_v3 = vpop.eup %2539  ;;  %v3525_v6 = vld [vmem:[#allocation11 + $0xf0] sm:$0xff]  ;;  %v3528_v13 = vld [vmem:[#allocation11 + $0xc8] sm:$0xff] }
 0x336   :  { %v2542_v15 = vpop.eup %2541 }
 0x337   :  { %2545 = vrcp.f32 %v1113_v17  ;;  %v1120_v9 = vadd.f32 1.0, %v2542_v15  ;;  %v3531_v17 = vld [vmem:[#allocation11 + $0xd8] sm:$0xff]  ;;  %v3537_v15 = vld [vmem:[#allocation11 + $0xd0] sm:$0xff] }
 0x339   :  { %2547 = vrcp.f32 %v1120_v9  ;;  %v3549_v9 = vld [vmem:[#allocation11 + $0xb0] sm:$0xff] }
 0x342   :  { %v2544_v11 = vpop.eup %2543 }
 0x343   :  { %v1124_v19 = vmul.f32 %v2544_v11, %v2540_v3  ;;  %v3534_v3 = vld [vmem:[#allocation11 + $0xc0] sm:$0xff]  ;;  %v3540_v11 = vld [vmem:[#allocation11 + $0xa8] sm:$0xff] }
 0x344   :  { %v2546_v10 = vpop.eup %2545 }
 0x345   :  { %v1123_v26 = vmul.f32 %v2546_v10, %v3333_v14  ;;  %v3546_v10 = vld [vmem:[#allocation11 + $0xa0] sm:$0xff] }
 0x346   :  { %v2548_v53 = vpop.eup %2547 }
 0x347   :  { %v3417_v0 = vadd.f32 %v1124_v19, %v1123_v26  ;;  %v3543_v19 = vld [vmem:[#allocation11 + $0xb8] sm:$0xff]  ;;  %v3552_v26 = vld [vmem:[#allocation11 + $0x88] sm:$0xff] }
 0x349   :  { %2549 = vtanh.f32 %v3417_v0 }
 0x356   :  { %v2550_v35 = vpop.eup %2549 }
 0x357   :  { %v1127_v62 = vmul.f32 %v2550_v35, %v2548_v53  ;;  %v3555_v53 = vld [vmem:[#allocation11 + $0x98] sm:$0xff]  ;;  %v3558_v35 = vld [vmem:[#allocation11 + $0x80] sm:$0xff] }
 0x358   :  { %4083 = vst [vmem:[#allocation22_spill] sm:$0xff] %v3558_v35 }
 0x359   :  { %v1129_v5 = vcombine.high %v1127_v62, %v1127_v62  ;;  %v1136_v18 = vrot.slane %v1127_v62, %v3254_v8  ;;  %1264 = vmatmul.mubr.f32.vlgmr.msra.gmra.mxu0 %v1127_v62  ;;  %1335 = vmatmul.mubr.f32.vlgmr.msra.gmra.mxu1 %v1127_v62  ;;  %v3561_v62 = vld [vmem:[#allocation11 + $0x90] sm:$0xff] }
 0x35a   :  { %1441 = vmatpush1.msra.mxu0 %v3421_v7  ;;  %1512 = vmatpush1.msra.mxu1 %v3424_v4  ;;  %4084 = vst [vmem:[#allocation18_spill] sm:$0xff] %v3561_v62 }
 0x35b   :  { %v1143_v14 = vrot.slane %v1129_v5, %v3254_v8  ;;  %v1144_v44 = vcombine.high %v1136_v18, %v1136_v18  ;;  %v1152_v20 = vrot.slane %v1136_v18, %v3254_v8  ;;  %2453 = vst.sshfl [vmem:[#allocation13 + $0x2] sm:$0x1 pattern:$0x73625140] %v1136_v18  ;;  %1442 = vmatprep.subr.mxu0 %v3429_v21  ;;  %v3564_v5 = vld [vmem:[#allocation11 + $0x68] sm:$0xff]  ;;  %v3567_v18 = vld [vmem:[#allocation11 + $0x78] sm:$0xff] }
 0x35c   :  { %1513 = vmatprep.subr.mxu1 %v3432_v22  ;;  %1443 = vmatpush1.msra.mxu0 %v3435_v23  ;;  %4085 = vst [vmem:[#allocation19_spill] sm:$0xff] %v3564_v5  ;;  %4086 = vst [vmem:[#allocation41_spill] sm:$0xff] %v3567_v18 }
 0x35d   :  { %1514 = vmatpush1.msra.mxu1 %v3438_v24  ;;  %v1145_v25 = vcombine.high %v1143_v14, %v1143_v14  ;;  %v1159_v27 = vrot.slane %v1143_v14, %v3254_v8  ;;  %v1166_v28 = vrot.slane %v1144_v44, %v3254_v8  ;;  %v1174_v29 = vcombine.high %v1152_v20, %v1152_v20  ;;  %v3576_v20 = vld [vmem:[#allocation11 + $0x48] sm:$0xff] }
 0x35e   :  { %2454 = vst.sshfl [vmem:[#allocation13 + $0xa] sm:$0x1 pattern:$0x73625140] %v1144_v44  ;;  %1444 = vmatprep.subr.mxu0 %v3443_v30  ;;  %1515 = vmatprep.subr.mxu1 %v3446_v31  ;;  %v3573_v44 = vld [vmem:[#allocation11 + $0x70] sm:$0xff]  ;;  %4089 = vst [vmem:[#allocation42_spill] sm:$0xff] %v3576_v20 }
 0x35f   :  { %2455 = vst.sshfl [vmem:[#allocation13 + $0x22] sm:$0x1 pattern:$0x73625140] %v1143_v14  ;;  %1445 = vmatpush1.msra.mxu0 %v3449_v32  ;;  %v1173_v33 = vrot.slane %v1145_v25, %v3254_v8  ;;  %v1175_v34 = vcombine.high %v1159_v27, %v1159_v27  ;;  %v1176_v36 = vcombine.high %v1166_v28, %v1166_v28  ;;  %1188 = vst [vmem:[#allocation13 + $0x12] sm:$0x1] %v1174_v29 }
 0x360   :  { %2456 = vst.sshfl [vmem:[#allocation13 + $0x2a] sm:$0x1 pattern:$0x73625140] %v1145_v25  ;;  %1516 = vmatpush1.msra.mxu1 %v3453_v37  ;;  %1446 = vmatprep.subr.mxu0 %v3456_v38  ;;  %v3570_v14 = vld [vmem:[#allocation11 + $0x60] sm:$0xff]  ;;  %4088 = vst [vmem:[#allocation44_spill] sm:$0xff] %v3573_v44 }
 0x361   :  { %1517 = vmatprep.subr.mxu1 %v3459_v39  ;;  %1447 = vmatpush1.msra.mxu0 %v3462_v40  ;;  %v1177_v41 = vcombine.high %v1173_v33, %v1173_v33  ;;  %1189 = vst [vmem:[#allocation13 + $0x1a] sm:$0x1] %v1176_v36  ;;  %1192 = vst [vmem:[#allocation13 + $0x32] sm:$0x1] %v1175_v34  ;;  %v3579_v25 = vld [vmem:[#allocation11 + $0x58] sm:$0xff]  ;;  %v3582_v27 = vld [vmem:[#allocation11 + $0x40] sm:$0xff] }
 0x362   :  { %1518 = vmatpush1.msra.mxu1 %v3465_v42  ;;  %1448 = vmatprep.subr.mxu0 %v3468_v43  ;;  %4087 = vst [vmem:[#allocation43_spill] sm:$0xff] %v3570_v14  ;;  %4090 = vst [vmem:[#allocation23_spill] sm:$0xff] %v3579_v25  ;;  %v3585_v28 = vld [vmem:[#allocation11 + $0x50] sm:$0xff]  ;;  %v3588_v29 = vld [vmem:[#allocation11 + $0x28] sm:$0xff] }
 0x363   :  { %1519 = vmatprep.subr.mxu1 %v3471_v45  ;;  %1449 = vmatpush1.msra.mxu0 %v3474_v47  ;;  %1193 = vst [vmem:[#allocation13 + $0x3a] sm:$0x1] %v1177_v41  ;;  %4091 = vst [vmem:[#allocation24_spill] sm:$0xff] %v3582_v27  ;;  %v3591_v33 = vld [vmem:[#allocation11 + $0x38] sm:$0xff]  ;;  %v3594_v34 = vld [vmem:[#allocation11 + $0x20] sm:$0xff] }
 0x364   :  { %1520 = vmatpush1.msra.mxu1 %v3477_v50  ;;  %1450 = vmatprep.subr.mxu0 %v3480_v51  ;;  %4092 = vst [vmem:[#allocation25_spill] sm:$0xff] %v3585_v28  ;;  %4093 = vst [vmem:[#allocation26_spill] sm:$0xff] %v3588_v29  ;;  %v3597_v36 = vld [vmem:[#allocation11 + $0x30] sm:$0xff]  ;;  %v3600_v41 = vld [vmem:[#allocation11 + $0x8] sm:$0xff] }
 0x365   :  { %1521 = vmatprep.subr.mxu1 %v3483_v52  ;;  %1451 = vmatpush1.msra.mxu0 %v3486_v54  ;;  %4094 = vst [vmem:[#allocation27_spill] sm:$0xff] %v3591_v33  ;;  %4095 = vst [vmem:[#allocation28_spill] sm:$0xff] %v3594_v34 }
 0x366   :  { %1522 = vmatpush1.msra.mxu1 %v3489_v55  ;;  %1452 = vmatprep.subr.mxu0 %v3492_v56  ;;  %4096 = vst [vmem:[#allocation29_spill] sm:$0xff] %v3597_v36  ;;  %4097 = vst [vmem:[#allocation30_spill] sm:$0xff] %v3600_v41 }
 0x367   :  { %1523 = vmatprep.subr.mxu1 %v3495_v57  ;;  %1453 = vmatpush1.msra.mxu0 %v3498_v58 }
 0x368   :  { %1524 = vmatpush1.msra.mxu1 %v3501_v59  ;;  %1454 = vmatprep.subr.mxu0 %v3504_v60 }
 0x369   :  { %1525 = vmatprep.subr.mxu1 %v3507_v61  ;;  %1455 = vmatpush1.msra.mxu0 %v3510_v63 }
 0x36a   :  { %1526 = vmatpush1.msra.mxu1 %v3513_v1  ;;  %1456 = vmatprep.subr.mxu0 %v3516_v2 }
 0x36b   :  { %1527 = vmatprep.subr.mxu1 %v3519_v12  ;;  %1457 = vmatpush1.msra.mxu0 %v3522_v16 }
 0x36c   :  { %1528 = vmatpush1.msra.mxu1 %v3525_v6  ;;  %1458 = vmatprep.subr.mxu0 %v3528_v13 }
 0x36d   :  { %1529 = vmatprep.subr.mxu1 %v3531_v17  ;;  %1459 = vmatpush1.msra.mxu0 %v3534_v3 }
 0x36e   :  { %1530 = vmatpush1.msra.mxu1 %v3537_v15  ;;  %1460 = vmatprep.subr.mxu0 %v3540_v11 }
 0x36f   :  { %1531 = vmatprep.subr.mxu1 %v3543_v19  ;;  %1461 = vmatpush1.msra.mxu0 %v3546_v10 }
 0x370   :  { %1532 = vmatpush1.msra.mxu1 %v3549_v9  ;;  %1462 = vmatprep.subr.mxu0 %v3552_v26 }
 0x371   :  { %1533 = vmatprep.subr.mxu1 %v3555_v53  ;;  %1463 = vmatpush1.msra.mxu0 %v3558_v35 }
 0x372   :  { %1534 = vmatpush1.msra.mxu1 %v3561_v62  ;;  %1464 = vmatprep.subr.mxu0 %v3564_v5  ;;  %v4104_v5 = vld [vmem:[#allocation50_spill] sm:$0xff] }
 0x373   :  { %1535 = vmatprep.subr.mxu1 %v3567_v18  ;;  %1465 = vmatpush1.msra.mxu0 %v3570_v14  ;;  %v4103_v18 = vld [vmem:[#allocation52_spill] sm:$0xff] }
 0x374   :  { %1536 = vmatpush1.msra.mxu1 %v3573_v44  ;;  %1466 = vmatprep.subr.mxu0 %v3576_v20 }
 0x375   :  { %1537 = vmatprep.subr.mxu1 %v3579_v25  ;;  %1467 = vmatpush1.msra.mxu0 %v3582_v27  ;;  %v4102_v25 = vld [vmem:[#allocation51_spill] sm:$0xff] }
 0x376   :  { %1538 = vmatpush1.msra.mxu1 %v3585_v28  ;;  %1468 = vmatprep.subr.mxu0 %v3588_v29  ;;  %v3603_v28 = vld [vmem:[#allocation11 + $0x18] sm:$0xff]  ;;  %v3606_v29 = vld [vmem:[#allocation11] sm:$0xff] }
 0x377   :  { %1539 = vmatprep.subr.mxu1 %v3591_v33  ;;  %1469 = vmatpush1.msra.mxu0 %v3594_v34  ;;  %4098 = vst [vmem:[#allocation31_spill] sm:$0xff] %v3603_v28  ;;  %4099 = vst [vmem:[#allocation32_spill] sm:$0xff] %v3606_v29  ;;  %v3610_v33 = vld [vmem:[#allocation11 + $0x10] sm:$0xff] }
 0x378   :  { %1540 = vmatpush1.msra.mxu1 %v3597_v36  ;;  %1470 = vmatprep.subr.mxu0 %v3600_v41  ;;  %4100 = vst [vmem:[#allocation33_spill] sm:$0xff] %v3610_v33  ;;  %v4101_v36 = vld [vmem:[#allocation49_spill] sm:$0xff] }
 0x379   :  { %1541 = vmatprep.subr.mxu1 %v3603_v28  ;;  %1471 = vmatpush1.msra.mxu0 %v3606_v29 }
 0x37a   :  { %1504 = vmatprep.mubr.f32.mxu0 %v4075_v46  ;;  %1542 = vmatpush1.msra.mxu1 %v3610_v33 }
 0x37b   :  { %1575 = vmatprep.mubr.f32.mxu1 %v4075_v46  ;;  %1681 = vmatprep.subr.mxu0 %v3406_v48 }
 0x37c   :  { %1752 = vmatprep.subr.mxu1 %v3409_v49 }
 0x419   :  { %v1265_v41 = vpop.f32.mrf.mxu0  ;;  %v1336_v29 = vpop.f32.mrf.mxu1 }
 0x41a   :  { %v1341_v34 = vadd.f32 %v1265_v41, %v4101_v36  ;;  %v1343_v46 = vadd.f32 %v1336_v29, %v4104_v5 }
 0x41b   :  { %v1267_v28 = vpop.f32.mrf.mxu0  ;;  %v1338_v14 = vpop.f32.mrf.mxu1 }
 0x41c   :  { %v2457_v27 = vmul.f32 -1.442695, %v1341_v34  ;;  %v1342_v20 = vadd.f32 %v1267_v28, %v4102_v25  ;;  %v1344_v33 = vadd.f32 %v1338_v14, %v4103_v18 }
 0x41e   :  { %2551 = vpow2.f32 %v2457_v27  ;;  %v2458_v44 = vmul.f32 -1.442695, %v1342_v20  ;;  %v2459_v62 = vmul.f32 -1.442695, %v1344_v33 }
 0x420   :  { %2553 = vpow2.f32 %v2458_v44 }
 0x421   :  { %2555 = vtanh.f32 %v1343_v46 }
 0x422   :  { %2557 = vpow2.f32 %v2459_v62 }
 0x42b   :  { %v2552_v48 = vpop.eup %2551 }
 0x42c   :  { %v1348_v35 = vadd.f32 1.0, %v2552_v48 }
 0x42d   :  { %v2554_v49 = vpop.eup %2553 }
 0x42e   :  { %2559 = vrcp.f32 %v1348_v35  ;;  %v1354_v36 = vadd.f32 1.0, %v2554_v49  ;;  %v2556_v34 = vpop.eup %2555 }
 0x42f   :  { %v2558_v25 = vpop.eup %2557 }
 0x430   :  { %2561 = vrcp.f32 %v1354_v36  ;;  %v1361_v44 = vadd.f32 1.0, %v2558_v25 }
 0x432   :  { %2563 = vrcp.f32 %v1361_v44  ;;  %v4105_v44 = vld [vmem:[#allocation22_spill] sm:$0xff] }
 0x43b   :  { %v2560_v27 = vpop.eup %2559 }
 0x43c   :  { %v1365_v28 = vmul.f32 %v2560_v27, %v2556_v34 }
 0x43d   :  { %v2562_v20 = vpop.eup %2561 }
 0x43e   :  { %v1364_v41 = vmul.f32 %v2562_v20, %v3417_v0 }
 0x43f   :  { %v2564_v48 = vpop.eup %2563 }
 0x440   :  { %v3621_v18 = vadd.f32 %v1365_v28, %v1364_v41  ;;  %v4106_v41 = vld [vmem:[#allocation18_spill] sm:$0xff] }
 0x442   :  { %2565 = vtanh.f32 %v3621_v18 }
 0x44f   :  { %v2566_v46 = vpop.eup %2565 }
 0x450   :  { %v1368_v5 = vmul.f32 %v2566_v46, %v2564_v48  ;;  %v4107_v48 = vld [vmem:[#allocation19_spill] sm:$0xff]  ;;  %v4108_v46 = vld [vmem:[#allocation41_spill] sm:$0xff] }
 0x452   :  { %v1370_v62 = vcombine.high %v1368_v5, %v1368_v5  ;;  %v1377_v49 = vrot.slane %v1368_v5, %v3254_v8  ;;  %1505 = vmatmul.mubr.f32.vlgmr.msra.gmra.mxu0 %v1368_v5  ;;  %1576 = vmatmul.mubr.f32.vlgmr.msra.gmra.mxu1 %v1368_v5  ;;  %v4109_v5 = vld [vmem:[#allocation43_spill] sm:$0xff] }
 0x453   :  { %1682 = vmatpush1.msra.mxu0 %v3421_v7  ;;  %1753 = vmatpush1.msra.mxu1 %v3424_v4 }
 0x454   :  { %v1384_v35 = vrot.slane %v1370_v62, %v3254_v8  ;;  %v1385_v0 = vcombine.high %v1377_v49, %v1377_v49  ;;  %v1393_v14 = vrot.slane %v1377_v49, %v3254_v8  ;;  %2460 = vst.sshfl [vmem:[#allocation13 + $0x3] sm:$0x1 pattern:$0x73625140] %v1377_v49  ;;  %1683 = vmatprep.subr.mxu0 %v3429_v21  ;;  %v4110_v62 = vld [vmem:[#allocation44_spill] sm:$0xff]  ;;  %v4111_v49 = vld [vmem:[#allocation42_spill] sm:$0xff] }
 0x455   :  { %1754 = vmatprep.subr.mxu1 %v3432_v22  ;;  %1684 = vmatpush1.msra.mxu0 %v3435_v23 }
 0x456   :  { %1755 = vmatpush1.msra.mxu1 %v3438_v24  ;;  %v1386_v29 = vcombine.high %v1384_v35, %v1384_v35  ;;  %v1400_v33 = vrot.slane %v1384_v35, %v3254_v8  ;;  %v1407_v36 = vrot.slane %v1385_v0, %v3254_v8  ;;  %v1415_v34 = vcombine.high %v1393_v14, %v1393_v14  ;;  %v4114_v14 = vld [vmem:[#allocation25_spill] sm:$0xff] }
 0x457   :  { %2461 = vst.sshfl [vmem:[#allocation13 + $0xb] sm:$0x1 pattern:$0x73625140] %v1385_v0  ;;  %1685 = vmatprep.subr.mxu0 %v3443_v30  ;;  %1756 = vmatprep.subr.mxu1 %v3446_v31  ;;  %v4113_v0 = vld [vmem:[#allocation24_spill] sm:$0xff] }
 0x458   :  { %2462 = vst.sshfl [vmem:[#allocation13 + $0x23] sm:$0x1 pattern:$0x73625140] %v1384_v35  ;;  %1686 = vmatpush1.msra.mxu0 %v3449_v32  ;;  %v1414_v25 = vrot.slane %v1386_v29, %v3254_v8  ;;  %v1416_v27 = vcombine.high %v1400_v33, %v1400_v33  ;;  %v1417_v28 = vcombine.high %v1407_v36, %v1407_v36  ;;  %1429 = vst [vmem:[#allocation13 + $0x13] sm:$0x1] %v1415_v34 }
 0x459   :  { %2463 = vst.sshfl [vmem:[#allocation13 + $0x2b] sm:$0x1 pattern:$0x73625140] %v1386_v29  ;;  %1757 = vmatpush1.msra.mxu1 %v3453_v37  ;;  %1687 = vmatprep.subr.mxu0 %v3456_v38  ;;  %v4112_v35 = vld [vmem:[#allocation23_spill] sm:$0xff]  ;;  %v4115_v29 = vld [vmem:[#allocation26_spill] sm:$0xff] }
 0x45a   :  { %1758 = vmatprep.subr.mxu1 %v3459_v39  ;;  %1688 = vmatpush1.msra.mxu0 %v3462_v40  ;;  %v1418_v20 = vcombine.high %v1414_v25, %v1414_v25  ;;  %1430 = vst [vmem:[#allocation13 + $0x1b] sm:$0x1] %v1417_v28  ;;  %1433 = vst [vmem:[#allocation13 + $0x33] sm:$0x1] %v1416_v27  ;;  %v4116_v33 = vld [vmem:[#allocation27_spill] sm:$0xff]  ;;  %v4117_v36 = vld [vmem:[#allocation28_spill] sm:$0xff] }
 0x45b   :  { %1759 = vmatpush1.msra.mxu1 %v3465_v42  ;;  %1689 = vmatprep.subr.mxu0 %v3468_v43  ;;  %v4118_v34 = vld [vmem:[#allocation29_spill] sm:$0xff]  ;;  %v4119_v25 = vld [vmem:[#allocation30_spill] sm:$0xff]  ;;  %v4120_v27 = vld [vmem:[#allocation31_spill] sm:$0xff] }
 0x45c   :  { %1760 = vmatprep.subr.mxu1 %v3471_v45  ;;  %1690 = vmatpush1.msra.mxu0 %v3474_v47  ;;  %1434 = vst [vmem:[#allocation13 + $0x3b] sm:$0x1] %v1418_v20  ;;  %v4121_v28 = vld [vmem:[#allocation32_spill] sm:$0xff]  ;;  %v4122_v20 = vmov 0.0  }
 0x45d   :  { %1761 = vmatpush1.msra.mxu1 %v3477_v50  ;;  %1691 = vmatprep.subr.mxu0 %v3480_v51 }
 0x45e   :  { %1762 = vmatprep.subr.mxu1 %v3483_v52  ;;  %1692 = vmatpush1.msra.mxu0 %v3486_v54 }
 0x45f   :  { %1763 = vmatpush1.msra.mxu1 %v3489_v55  ;;  %1693 = vmatprep.subr.mxu0 %v3492_v56 }
 0x460   :  { %1764 = vmatprep.subr.mxu1 %v3495_v57  ;;  %1694 = vmatpush1.msra.mxu0 %v3498_v58 }
 0x461   :  { %1765 = vmatpush1.msra.mxu1 %v3501_v59  ;;  %1695 = vmatprep.subr.mxu0 %v3504_v60 }
 0x462   :  { %1766 = vmatprep.subr.mxu1 %v3507_v61  ;;  %1696 = vmatpush1.msra.mxu0 %v3510_v63 }
 0x463   :  { %1767 = vmatpush1.msra.mxu1 %v3513_v1  ;;  %1697 = vmatprep.subr.mxu0 %v3516_v2 }
 0x464   :  { %1768 = vmatprep.subr.mxu1 %v3519_v12  ;;  %1698 = vmatpush1.msra.mxu0 %v3522_v16 }
 0x465   :  { %1769 = vmatpush1.msra.mxu1 %v3525_v6  ;;  %1699 = vmatprep.subr.mxu0 %v3528_v13 }
 0x466   :  { %1770 = vmatprep.subr.mxu1 %v3531_v17  ;;  %1700 = vmatpush1.msra.mxu0 %v3534_v3 }
 0x467   :  { %1771 = vmatpush1.msra.mxu1 %v3537_v15  ;;  %1701 = vmatprep.subr.mxu0 %v3540_v11 }
 0x468   :  { %1772 = vmatprep.subr.mxu1 %v3543_v19  ;;  %1702 = vmatpush1.msra.mxu0 %v3546_v10 }
 0x469   :  { %1773 = vmatpush1.msra.mxu1 %v3549_v9  ;;  %1703 = vmatprep.subr.mxu0 %v3552_v26 }
 0x46a   :  { %1774 = vmatprep.subr.mxu1 %v3555_v53  ;;  %1704 = vmatpush1.msra.mxu0 %v4105_v44 }
 0x46b   :  { %1775 = vmatpush1.msra.mxu1 %v4106_v41  ;;  %1705 = vmatprep.subr.mxu0 %v4107_v48  ;;  %v4129_v48 = vld [vmem:[#allocation54_spill] sm:$0xff] }
 0x46c   :  { %1776 = vmatprep.subr.mxu1 %v4108_v46  ;;  %1706 = vmatpush1.msra.mxu0 %v4109_v5  ;;  %v4128_v46 = vld [vmem:[#allocation56_spill] sm:$0xff] }
 0x46d   :  { %1777 = vmatpush1.msra.mxu1 %v4110_v62  ;;  %1707 = vmatprep.subr.mxu0 %v4111_v49 }
 0x46e   :  { %1778 = vmatprep.subr.mxu1 %v4112_v35  ;;  %1708 = vmatpush1.msra.mxu0 %v4113_v0  ;;  %v4123_v35 = vld [vmem:[#allocation33_spill] sm:$0xff] }
 0x46f   :  { %1779 = vmatpush1.msra.mxu1 %v4114_v14  ;;  %1709 = vmatprep.subr.mxu0 %v4115_v29  ;;  %v4124_v14 = vld [vmem:[#allocation20_spill] sm:$0xff]  ;;  %v4125_v29 = vld [vmem:[#allocation21_spill] sm:$0xff] }
 0x470   :  { %1780 = vmatprep.subr.mxu1 %v4116_v33  ;;  %1710 = vmatpush1.msra.mxu0 %v4117_v36  ;;  %v4126_v36 = vld [vmem:[#allocation53_spill] sm:$0xff] }
 0x471   :  { %1781 = vmatpush1.msra.mxu1 %v4118_v34  ;;  %1711 = vmatprep.subr.mxu0 %v4119_v25  ;;  %v4127_v25 = vld [vmem:[#allocation55_spill] sm:$0xff] }
 0x472   :  { %1782 = vmatprep.subr.mxu1 %v4120_v27  ;;  %1712 = vmatpush1.msra.mxu0 %v4121_v28 }
 0x473   :  { %1745 = vmatprep.mubr.f32.mxu0 %v4122_v20  ;;  %1783 = vmatpush1.msra.mxu1 %v4123_v35 }
 0x474   :  { %1816 = vmatprep.mubr.f32.mxu1 %v4122_v20  ;;  %1922 = vmatprep.subr.mxu0 %v4124_v14 }
 0x475   :  { %1993 = vmatprep.subr.mxu1 %v4125_v29 }
 0x512   :  { %v1506_v33 = vpop.f32.mrf.mxu0  ;;  %v1577_v27 = vpop.f32.mrf.mxu1 }
 0x513   :  { %v1582_v0 = vadd.f32 %v1506_v33, %v4126_v36  ;;  %v1584_v20 = vadd.f32 %v1577_v27, %v4129_v48 }
 0x514   :  { %v1508_v34 = vpop.f32.mrf.mxu0  ;;  %v1579_v5 = vpop.f32.mrf.mxu1 }
 0x515   :  { %v2464_v49 = vmul.f32 -1.442695, %v1582_v0  ;;  %v1583_v62 = vadd.f32 %v1508_v34, %v4127_v25  ;;  %v1585_v35 = vadd.f32 %v1579_v5, %v4128_v46 }
 0x517   :  { %2567 = vpow2.f32 %v2464_v49  ;;  %v2465_v28 = vmul.f32 -1.442695, %v1583_v62  ;;  %v2466_v41 = vmul.f32 -1.442695, %v1585_v35 }
 0x519   :  { %2569 = vpow2.f32 %v2465_v28 }
 0x51a   :  { %2571 = vtanh.f32 %v1584_v20 }
 0x51b   :  { %2573 = vpow2.f32 %v2466_v41 }
 0x524   :  { %v2568_v14 = vpop.eup %2567 }
 0x525   :  { %v1589_v44 = vadd.f32 1.0, %v2568_v14 }
 0x526   :  { %v2570_v29 = vpop.eup %2569 }
 0x527   :  { %2575 = vrcp.f32 %v1589_v44  ;;  %v1595_v33 = vadd.f32 1.0, %v2570_v29  ;;  %v2572_v0 = vpop.eup %2571 }
 0x528   :  { %v2574_v36 = vpop.eup %2573 }
 0x529   :  { %2577 = vrcp.f32 %v1595_v33  ;;  %v1602_v25 = vadd.f32 1.0, %v2574_v36 }
 0x52b   :  { %2579 = vrcp.f32 %v1602_v25  ;;  %v4130_v25 = vld [vmem:[#allocation22_spill] sm:$0xff] }
 0x534   :  { %v2576_v49 = vpop.eup %2575 }
 0x535   :  { %v1606_v34 = vmul.f32 %v2576_v49, %v2572_v0 }
 0x536   :  { %v2578_v62 = vpop.eup %2577 }
 0x537   :  { %v1605_v28 = vmul.f32 %v2578_v62, %v3621_v18 }
 0x538   :  { %v2580_v48 = vpop.eup %2579 }
 0x539   :  { %v3701_v46 = vadd.f32 %v1606_v34, %v1605_v28  ;;  %v4131_v28 = vld [vmem:[#allocation18_spill] sm:$0xff] }
 0x53b   :  { %2581 = vtanh.f32 %v3701_v46 }
 0x548   :  { %v2582_v5 = vpop.eup %2581 }
 0x549   :  { %v1609_v35 = vmul.f32 %v2582_v5, %v2580_v48  ;;  %v4132_v48 = vld [vmem:[#allocation19_spill] sm:$0xff]  ;;  %v4133_v5 = vld [vmem:[#allocation41_spill] sm:$0xff] }
 0x54b   :  { %v1611_v41 = vcombine.high %v1609_v35, %v1609_v35  ;;  %v1618_v44 = vrot.slane %v1609_v35, %v3254_v8  ;;  %1746 = vmatmul.mubr.f32.vlgmr.msra.gmra.mxu0 %v1609_v35  ;;  %1817 = vmatmul.mubr.f32.vlgmr.msra.gmra.mxu1 %v1609_v35  ;;  %v4134_v35 = vld [vmem:[#allocation43_spill] sm:$0xff] }
 0x54c   :  { %1923 = vmatpush1.msra.mxu0 %v3421_v7  ;;  %1994 = vmatpush1.msra.mxu1 %v3424_v4 }
 0x54d   :  { %v1625_v14 = vrot.slane %v1611_v41, %v3254_v8  ;;  %v1626_v18 = vcombine.high %v1618_v44, %v1618_v44  ;;  %v1634_v29 = vrot.slane %v1618_v44, %v3254_v8  ;;  %2467 = vst.sshfl [vmem:[#allocation13 + $0x4] sm:$0x1 pattern:$0x73625140] %v1618_v44  ;;  %1924 = vmatprep.subr.mxu0 %v3429_v21  ;;  %v4135_v41 = vld [vmem:[#allocation44_spill] sm:$0xff]  ;;  %v4136_v44 = vld [vmem:[#allocation42_spill] sm:$0xff] }
 0x54e   :  { %1995 = vmatprep.subr.mxu1 %v3432_v22  ;;  %1925 = vmatpush1.msra.mxu0 %v3435_v23 }
 0x54f   :  { %1996 = vmatpush1.msra.mxu1 %v3438_v24  ;;  %v1627_v27 = vcombine.high %v1625_v14, %v1625_v14  ;;  %v1641_v20 = vrot.slane %v1625_v14, %v3254_v8  ;;  %v1648_v33 = vrot.slane %v1626_v18, %v3254_v8  ;;  %v1656_v0 = vcombine.high %v1634_v29, %v1634_v29  ;;  %v4139_v29 = vld [vmem:[#allocation25_spill] sm:$0xff] }
 0x550   :  { %2468 = vst.sshfl [vmem:[#allocation13 + $0xc] sm:$0x1 pattern:$0x73625140] %v1626_v18  ;;  %1926 = vmatprep.subr.mxu0 %v3443_v30  ;;  %1997 = vmatprep.subr.mxu1 %v3446_v31  ;;  %v4138_v18 = vld [vmem:[#allocation24_spill] sm:$0xff] }
 0x551   :  { %2469 = vst.sshfl [vmem:[#allocation13 + $0x24] sm:$0x1 pattern:$0x73625140] %v1625_v14  ;;  %1927 = vmatpush1.msra.mxu0 %v3449_v32  ;;  %v1655_v36 = vrot.slane %v1627_v27, %v3254_v8  ;;  %v1657_v49 = vcombine.high %v1641_v20, %v1641_v20  ;;  %v1658_v34 = vcombine.high %v1648_v33, %v1648_v33  ;;  %1670 = vst [vmem:[#allocation13 + $0x14] sm:$0x1] %v1656_v0 }
 0x552   :  { %2470 = vst.sshfl [vmem:[#allocation13 + $0x2c] sm:$0x1 pattern:$0x73625140] %v1627_v27  ;;  %1998 = vmatpush1.msra.mxu1 %v3453_v37  ;;  %1928 = vmatprep.subr.mxu0 %v3456_v38  ;;  %v4137_v14 = vld [vmem:[#allocation23_spill] sm:$0xff]  ;;  %v4140_v27 = vld [vmem:[#allocation26_spill] sm:$0xff] }
 0x553   :  { %1999 = vmatprep.subr.mxu1 %v3459_v39  ;;  %1929 = vmatpush1.msra.mxu0 %v3462_v40  ;;  %v1659_v62 = vcombine.high %v1655_v36, %v1655_v36  ;;  %1671 = vst [vmem:[#allocation13 + $0x1c] sm:$0x1] %v1658_v34  ;;  %1674 = vst [vmem:[#allocation13 + $0x34] sm:$0x1] %v1657_v49  ;;  %v4141_v20 = vld [vmem:[#allocation27_spill] sm:$0xff]  ;;  %v4142_v33 = vld [vmem:[#allocation28_spill] sm:$0xff] }
 0x554   :  { %2000 = vmatpush1.msra.mxu1 %v3465_v42  ;;  %1930 = vmatprep.subr.mxu0 %v3468_v43  ;;  %v4143_v0 = vld [vmem:[#allocation29_spill] sm:$0xff]  ;;  %v4144_v36 = vld [vmem:[#allocation30_spill] sm:$0xff]  ;;  %v4145_v49 = vld [vmem:[#allocation31_spill] sm:$0xff] }
 0x555   :  { %2001 = vmatprep.subr.mxu1 %v3471_v45  ;;  %1931 = vmatpush1.msra.mxu0 %v3474_v47  ;;  %1675 = vst [vmem:[#allocation13 + $0x3c] sm:$0x1] %v1659_v62  ;;  %v4146_v34 = vld [vmem:[#allocation32_spill] sm:$0xff]  ;;  %v4147_v62 = vmov 0.0  }
 0x556   :  { %2002 = vmatpush1.msra.mxu1 %v3477_v50  ;;  %1932 = vmatprep.subr.mxu0 %v3480_v51 }
 0x557   :  { %2003 = vmatprep.subr.mxu1 %v3483_v52  ;;  %1933 = vmatpush1.msra.mxu0 %v3486_v54 }
 0x558   :  { %2004 = vmatpush1.msra.mxu1 %v3489_v55  ;;  %1934 = vmatprep.subr.mxu0 %v3492_v56 }
 0x559   :  { %2005 = vmatprep.subr.mxu1 %v3495_v57  ;;  %1935 = vmatpush1.msra.mxu0 %v3498_v58 }
 0x55a   :  { %2006 = vmatpush1.msra.mxu1 %v3501_v59  ;;  %1936 = vmatprep.subr.mxu0 %v3504_v60 }
 0x55b   :  { %2007 = vmatprep.subr.mxu1 %v3507_v61  ;;  %1937 = vmatpush1.msra.mxu0 %v3510_v63 }
 0x55c   :  { %2008 = vmatpush1.msra.mxu1 %v3513_v1  ;;  %1938 = vmatprep.subr.mxu0 %v3516_v2 }
 0x55d   :  { %2009 = vmatprep.subr.mxu1 %v3519_v12  ;;  %1939 = vmatpush1.msra.mxu0 %v3522_v16 }
 0x55e   :  { %2010 = vmatpush1.msra.mxu1 %v3525_v6  ;;  %1940 = vmatprep.subr.mxu0 %v3528_v13 }
 0x55f   :  { %2011 = vmatprep.subr.mxu1 %v3531_v17  ;;  %1941 = vmatpush1.msra.mxu0 %v3534_v3 }
 0x560   :  { %2012 = vmatpush1.msra.mxu1 %v3537_v15  ;;  %1942 = vmatprep.subr.mxu0 %v3540_v11 }
 0x561   :  { %2013 = vmatprep.subr.mxu1 %v3543_v19  ;;  %1943 = vmatpush1.msra.mxu0 %v3546_v10 }
 0x562   :  { %2014 = vmatpush1.msra.mxu1 %v3549_v9  ;;  %1944 = vmatprep.subr.mxu0 %v3552_v26 }
 0x563   :  { %2015 = vmatprep.subr.mxu1 %v3555_v53  ;;  %1945 = vmatpush1.msra.mxu0 %v4130_v25 }
 0x564   :  { %2016 = vmatpush1.msra.mxu1 %v4131_v28  ;;  %1946 = vmatprep.subr.mxu0 %v4132_v48  ;;  %v4154_v48 = vld [vmem:[#allocation58_spill] sm:$0xff] }
 0x565   :  { %2017 = vmatprep.subr.mxu1 %v4133_v5  ;;  %1947 = vmatpush1.msra.mxu0 %v4134_v35  ;;  %v4153_v5 = vld [vmem:[#allocation60_spill] sm:$0xff] }
 0x566   :  { %2018 = vmatpush1.msra.mxu1 %v4135_v41  ;;  %1948 = vmatprep.subr.mxu0 %v4136_v44 }
 0x567   :  { %2019 = vmatprep.subr.mxu1 %v4137_v14  ;;  %1949 = vmatpush1.msra.mxu0 %v4138_v18  ;;  %v4148_v14 = vld [vmem:[#allocation33_spill] sm:$0xff] }
 0x568   :  { %2020 = vmatpush1.msra.mxu1 %v4139_v29  ;;  %1950 = vmatprep.subr.mxu0 %v4140_v27  ;;  %v4149_v29 = vld [vmem:[#allocation20_spill] sm:$0xff]  ;;  %v4150_v27 = vld [vmem:[#allocation21_spill] sm:$0xff] }
 0x569   :  { %2021 = vmatprep.subr.mxu1 %v4141_v20  ;;  %1951 = vmatpush1.msra.mxu0 %v4142_v33  ;;  %v4151_v33 = vld [vmem:[#allocation57_spill] sm:$0xff] }
 0x56a   :  { %2022 = vmatpush1.msra.mxu1 %v4143_v0  ;;  %1952 = vmatprep.subr.mxu0 %v4144_v36  ;;  %v4152_v36 = vld [vmem:[#allocation59_spill] sm:$0xff] }
 0x56b   :  { %2023 = vmatprep.subr.mxu1 %v4145_v49  ;;  %1953 = vmatpush1.msra.mxu0 %v4146_v34 }
 0x56c   :  { %1986 = vmatprep.mubr.f32.mxu0 %v4147_v62  ;;  %2024 = vmatpush1.msra.mxu1 %v4148_v14 }
 0x56d   :  { %2057 = vmatprep.mubr.f32.mxu1 %v4147_v62  ;;  %2163 = vmatprep.subr.mxu0 %v4149_v29 }
 0x56e   :  { %2234 = vmatprep.subr.mxu1 %v4150_v27 }
 0x60b   :  { %v1747_v20 = vpop.f32.mrf.mxu0  ;;  %v1818_v49 = vpop.f32.mrf.mxu1 }
 0x60c   :  { %v1823_v18 = vadd.f32 %v1747_v20, %v4151_v33  ;;  %v1825_v62 = vadd.f32 %v1818_v49, %v4154_v48 }
 0x60d   :  { %v1749_v0 = vpop.f32.mrf.mxu0  ;;  %v1820_v35 = vpop.f32.mrf.mxu1 }
 0x60e   :  { %v2471_v44 = vmul.f32 -1.442695, %v1823_v18  ;;  %v1824_v41 = vadd.f32 %v1749_v0, %v4152_v36  ;;  %v1826_v14 = vadd.f32 %v1820_v35, %v4153_v5 }
 0x610   :  { %2583 = vpow2.f32 %v2471_v44  ;;  %v2472_v34 = vmul.f32 -1.442695, %v1824_v41  ;;  %v2473_v28 = vmul.f32 -1.442695, %v1826_v14 }
 0x612   :  { %2585 = vpow2.f32 %v2472_v34 }
 0x613   :  { %2587 = vtanh.f32 %v1825_v62 }
 0x614   :  { %2589 = vpow2.f32 %v2473_v28 }
 0x61d   :  { %v2584_v29 = vpop.eup %2583 }
 0x61e   :  { %v1830_v25 = vadd.f32 1.0, %v2584_v29 }
 0x61f   :  { %v2586_v27 = vpop.eup %2585 }
 0x620   :  { %2591 = vrcp.f32 %v1830_v25  ;;  %v1836_v20 = vadd.f32 1.0, %v2586_v27  ;;  %v2588_v18 = vpop.eup %2587 }
 0x621   :  { %v2590_v33 = vpop.eup %2589 }
 0x622   :  { %2593 = vrcp.f32 %v1836_v20  ;;  %v1843_v36 = vadd.f32 1.0, %v2590_v33 }
 0x624   :  { %2595 = vrcp.f32 %v1843_v36 }
 0x62d   :  { %v2592_v44 = vpop.eup %2591 }
 0x62e   :  { %v1847_v0 = vmul.f32 %v2592_v44, %v2588_v18 }
 0x62f   :  { %v2594_v41 = vpop.eup %2593 }
 0x630   :  { %v1846_v34 = vmul.f32 %v2594_v41, %v3701_v46 }
 0x631   :  { %v2596_v48 = vpop.eup %2595 }
 0x632   :  { %v3781_v5 = vadd.f32 %v1847_v0, %v1846_v34 }
 0x634   :  { %2597 = vtanh.f32 %v3781_v5 }
 0x641   :  { %v2598_v35 = vpop.eup %2597 }
 0x642   :  { %v1850_v14 = vmul.f32 %v2598_v35, %v2596_v48 }
 0x644   :  { %v1852_v28 = vcombine.high %v1850_v14, %v1850_v14  ;;  %v1859_v25 = vrot.slane %v1850_v14, %v3254_v8  ;;  %1987 = vmatmul.mubr.f32.vlgmr.msra.gmra.mxu0 %v1850_v14  ;;  %2058 = vmatmul.mubr.f32.vlgmr.msra.gmra.mxu1 %v1850_v14 }
 0x645   :  { %2164 = vmatpush1.msra.mxu0 %v3421_v7  ;;  %2235 = vmatpush1.msra.mxu1 %v3424_v4 }
 0x646   :  { %v1866_v49 = vrot.slane %v1852_v28, %v3254_v8  ;;  %v1867_v46 = vcombine.high %v1859_v25, %v1859_v25  ;;  %v1875_v62 = vrot.slane %v1859_v25, %v3254_v8  ;;  %2474 = vst.sshfl [vmem:[#allocation13 + $0x5] sm:$0x1 pattern:$0x73625140] %v1859_v25  ;;  %2165 = vmatprep.subr.mxu0 %v3429_v21 }
 0x647   :  { %2236 = vmatprep.subr.mxu1 %v3432_v22  ;;  %2166 = vmatpush1.msra.mxu0 %v3435_v23 }
 0x648   :  { %2237 = vmatpush1.msra.mxu1 %v3438_v24  ;;  %v1868_v29 = vcombine.high %v1866_v49, %v1866_v49  ;;  %v1882_v27 = vrot.slane %v1866_v49, %v3254_v8  ;;  %v1889_v7 = vrot.slane %v1867_v46, %v3254_v8  ;;  %v1897_v4 = vcombine.high %v1875_v62, %v1875_v62 }
 0x649   :  { %2475 = vst.sshfl [vmem:[#allocation13 + $0xd] sm:$0x1 pattern:$0x73625140] %v1867_v46  ;;  %2167 = vmatprep.subr.mxu0 %v3443_v30  ;;  %2238 = vmatprep.subr.mxu1 %v3446_v31  ;;  %v4155_v30 = vld [vmem:[#allocation22_spill] sm:$0xff] }
 0x64a   :  { %2476 = vst.sshfl [vmem:[#allocation13 + $0x25] sm:$0x1 pattern:$0x73625140] %v1866_v49  ;;  %2168 = vmatpush1.msra.mxu0 %v3449_v32  ;;  %v1896_v21 = vrot.slane %v1868_v29, %v3254_v8  ;;  %v1898_v22 = vcombine.high %v1882_v27, %v1882_v27  ;;  %v1899_v23 = vcombine.high %v1889_v7, %v1889_v7  ;;  %1911 = vst [vmem:[#allocation13 + $0x15] sm:$0x1] %v1897_v4 }
 0x64b   :  { %2477 = vst.sshfl [vmem:[#allocation13 + $0x2d] sm:$0x1 pattern:$0x73625140] %v1868_v29  ;;  %2239 = vmatpush1.msra.mxu1 %v3453_v37  ;;  %2169 = vmatprep.subr.mxu0 %v3456_v38  ;;  %v4156_v31 = vld [vmem:[#allocation18_spill] sm:$0xff]  ;;  %v4157_v32 = vld [vmem:[#allocation19_spill] sm:$0xff] }
 0x64c   :  { %2240 = vmatprep.subr.mxu1 %v3459_v39  ;;  %2170 = vmatpush1.msra.mxu0 %v3462_v40  ;;  %v1900_v24 = vcombine.high %v1896_v21, %v1896_v21  ;;  %1912 = vst [vmem:[#allocation13 + $0x1d] sm:$0x1] %v1899_v23  ;;  %1915 = vst [vmem:[#allocation13 + $0x35] sm:$0x1] %v1898_v22  ;;  %v4158_v37 = vld [vmem:[#allocation41_spill] sm:$0xff]  ;;  %v4159_v38 = vld [vmem:[#allocation43_spill] sm:$0xff] }
 0x64d   :  { %2241 = vmatpush1.msra.mxu1 %v3465_v42  ;;  %2171 = vmatprep.subr.mxu0 %v3468_v43  ;;  %v4160_v39 = vld [vmem:[#allocation44_spill] sm:$0xff]  ;;  %v4161_v40 = vld [vmem:[#allocation42_spill] sm:$0xff]  ;;  %v4162_v42 = vld [vmem:[#allocation23_spill] sm:$0xff] }
 0x64e   :  { %2242 = vmatprep.subr.mxu1 %v3471_v45  ;;  %2172 = vmatpush1.msra.mxu0 %v3474_v47  ;;  %1916 = vst [vmem:[#allocation13 + $0x3d] sm:$0x1] %v1900_v24  ;;  %v4163_v43 = vld [vmem:[#allocation24_spill] sm:$0xff]  ;;  %v4164_v45 = vld [vmem:[#allocation25_spill] sm:$0xff]  ;;  %v4165_v47 = vld [vmem:[#allocation26_spill] sm:$0xff] }
 0x64f   :  { %2243 = vmatpush1.msra.mxu1 %v3477_v50  ;;  %2173 = vmatprep.subr.mxu0 %v3480_v51  ;;  %v4166_v50 = vld [vmem:[#allocation27_spill] sm:$0xff]  ;;  %v4167_v51 = vld [vmem:[#allocation28_spill] sm:$0xff] }
 0x650   :  { %2244 = vmatprep.subr.mxu1 %v3483_v52  ;;  %2174 = vmatpush1.msra.mxu0 %v3486_v54  ;;  %v4168_v52 = vld [vmem:[#allocation29_spill] sm:$0xff]  ;;  %v4169_v54 = vld [vmem:[#allocation30_spill] sm:$0xff] }
 0x651   :  { %2245 = vmatpush1.msra.mxu1 %v3489_v55  ;;  %2175 = vmatprep.subr.mxu0 %v3492_v56  ;;  %v4170_v55 = vld [vmem:[#allocation31_spill] sm:$0xff]  ;;  %v4171_v56 = vld [vmem:[#allocation32_spill] sm:$0xff] }
 0x652   :  { %2246 = vmatprep.subr.mxu1 %v3495_v57  ;;  %2176 = vmatpush1.msra.mxu0 %v3498_v58  ;;  %v4172_v57 = vmov 0.0   ;;  %v4173_v58 = vld [vmem:[#allocation33_spill] sm:$0xff] }
 0x653   :  { %2247 = vmatpush1.msra.mxu1 %v3501_v59  ;;  %2177 = vmatprep.subr.mxu0 %v3504_v60  ;;  %v4174_v60 = vld [vmem:[#allocation61_spill] sm:$0xff] }
 0x654   :  { %2248 = vmatprep.subr.mxu1 %v3507_v61  ;;  %2178 = vmatpush1.msra.mxu0 %v3510_v63 }
 0x655   :  { %2249 = vmatpush1.msra.mxu1 %v3513_v1  ;;  %2179 = vmatprep.subr.mxu0 %v3516_v2  ;;  %v4175_v2 = vld [vmem:[#allocation63_spill] sm:$0xff] }
 0x656   :  { %2250 = vmatprep.subr.mxu1 %v3519_v12  ;;  %2180 = vmatpush1.msra.mxu0 %v3522_v16 }
 0x657   :  { %2251 = vmatpush1.msra.mxu1 %v3525_v6  ;;  %2181 = vmatprep.subr.mxu0 %v3528_v13 }
 0x658   :  { %2252 = vmatprep.subr.mxu1 %v3531_v17  ;;  %2182 = vmatpush1.msra.mxu0 %v3534_v3  ;;  %v4176_v17 = vld [vmem:[#allocation64_spill] sm:$0xff] }
 0x659   :  { %2253 = vmatpush1.msra.mxu1 %v3537_v15  ;;  %2183 = vmatprep.subr.mxu0 %v3540_v11  ;;  %v4177_v15 = vld [vmem:[#allocation62_spill] sm:$0xff] }
 0x65a   :  { %2254 = vmatprep.subr.mxu1 %v3543_v19  ;;  %2184 = vmatpush1.msra.mxu0 %v3546_v10 }
 0x65b   :  { %2255 = vmatpush1.msra.mxu1 %v3549_v9  ;;  %2185 = vmatprep.subr.mxu0 %v3552_v26 }
 0x65c   :  { %2256 = vmatprep.subr.mxu1 %v3555_v53  ;;  %2186 = vmatpush1.msra.mxu0 %v4155_v30  ;;  %v4178_v30 = vld [vmem:[#allocation65_spill] sm:$0xff] }
 0x65d   :  { %2257 = vmatpush1.msra.mxu1 %v4156_v31  ;;  %2187 = vmatprep.subr.mxu0 %v4157_v32 }
 0x65e   :  { %2258 = vmatprep.subr.mxu1 %v4158_v37  ;;  %2188 = vmatpush1.msra.mxu0 %v4159_v38  ;;  %v4179_v38 = vld [vmem:[#allocation67_spill] sm:$0xff] }
 0x65f   :  { %2259 = vmatpush1.msra.mxu1 %v4160_v39  ;;  %2189 = vmatprep.subr.mxu0 %v4161_v40 }
 0x660   :  { %2260 = vmatprep.subr.mxu1 %v4162_v42  ;;  %2190 = vmatpush1.msra.mxu0 %v4163_v43 }
 0x661   :  { %2261 = vmatpush1.msra.mxu1 %v4164_v45  ;;  %2191 = vmatprep.subr.mxu0 %v4165_v47  ;;  %v4180_v45 = vld [vmem:[#allocation68_spill] sm:$0xff] }
 0x662   :  { %2262 = vmatprep.subr.mxu1 %v4166_v50  ;;  %2192 = vmatpush1.msra.mxu0 %v4167_v51  ;;  %v4181_v50 = vld [vmem:[#allocation66_spill] sm:$0xff] }
 0x663   :  { %2263 = vmatpush1.msra.mxu1 %v4168_v52  ;;  %2193 = vmatprep.subr.mxu0 %v4169_v54 }
 0x664   :  { %2264 = vmatprep.subr.mxu1 %v4170_v55  ;;  %2194 = vmatpush1.msra.mxu0 %v4171_v56 }
 0x665   :  { %2227 = vmatprep.mubr.f32.mxu0 %v4172_v57  ;;  %2265 = vmatpush1.msra.mxu1 %v4173_v58 }
 0x666   :  { %2298 = vmatprep.mubr.f32.mxu1 %v4172_v57 }
 0x704   :  { %v1988_v59 = vpop.f32.mrf.mxu0  ;;  %v2059_v16 = vpop.f32.mrf.mxu1 }
 0x705   :  { %v2064_v61 = vadd.f32 %v1988_v59, %v4174_v60  ;;  %v2066_v11 = vadd.f32 %v2059_v16, %v4177_v15 }
 0x706   :  { %v1990_v63 = vpop.f32.mrf.mxu0  ;;  %v2061_v13 = vpop.f32.mrf.mxu1 }
 0x707   :  { %v2478_v1 = vmul.f32 -1.442695, %v2064_v61  ;;  %v2065_v12 = vadd.f32 %v1990_v63, %v4175_v2  ;;  %v2067_v3 = vadd.f32 %v2061_v13, %v4176_v17 }
 0x709   :  { %2599 = vpow2.f32 %v2478_v1  ;;  %v2479_v6 = vmul.f32 -1.442695, %v2065_v12  ;;  %v2480_v19 = vmul.f32 -1.442695, %v2067_v3 }
 0x70b   :  { %2601 = vpow2.f32 %v2479_v6 }
 0x70c   :  { %2603 = vtanh.f32 %v2066_v11 }
 0x70d   :  { %2605 = vpow2.f32 %v2480_v19 }
 0x716   :  { %v2600_v10 = vpop.eup %2599 }
 0x717   :  { %v2071_v9 = vadd.f32 1.0, %v2600_v10 }
 0x718   :  { %v2602_v26 = vpop.eup %2601 }
 0x719   :  { %2607 = vrcp.f32 %v2071_v9  ;;  %v2077_v53 = vadd.f32 1.0, %v2602_v26  ;;  %v2604_v20 = vpop.eup %2603 }
 0x71a   :  { %v2606_v18 = vpop.eup %2605 }
 0x71b   :  { %2609 = vrcp.f32 %v2077_v53  ;;  %v2084_v41 = vadd.f32 1.0, %v2606_v18 }
 0x71d   :  { %2611 = vrcp.f32 %v2084_v41 }
 0x726   :  { %v2608_v33 = vpop.eup %2607 }
 0x727   :  { %v2088_v44 = vmul.f32 %v2608_v33, %v2604_v20 }
 0x728   :  { %v2610_v0 = vpop.eup %2609 }
 0x729   :  { %v2087_v36 = vmul.f32 %v2610_v0, %v3781_v5 }
 0x72a   :  { %v2612_v48 = vpop.eup %2611 }
 0x72b   :  { %v2089_v34 = vadd.f32 %v2088_v44, %v2087_v36 }
 0x72d   :  { %2613 = vtanh.f32 %v2089_v34 }
 0x73a   :  { %v2614_v35 = vpop.eup %2613 }
 0x73b   :  { %v2091_v14 = vmul.f32 %v2614_v35, %v2612_v48 }
 0x73d   :  { %v2093_v28 = vcombine.high %v2091_v14, %v2091_v14  ;;  %v2100_v25 = vrot.slane %v2091_v14, %v3254_v8  ;;  %2228 = vmatmul.mubr.f32.vlgmr.msra.gmra.mxu0 %v2091_v14  ;;  %2299 = vmatmul.mubr.f32.vlgmr.msra.gmra.mxu1 %v2091_v14 }
 0x73f   :  { %v2107_v49 = vrot.slane %v2093_v28, %v3254_v8  ;;  %v2108_v46 = vcombine.high %v2100_v25, %v2100_v25  ;;  %v2116_v62 = vrot.slane %v2100_v25, %v3254_v8  ;;  %2481 = vst.sshfl [vmem:[#allocation13 + $0x6] sm:$0x1 pattern:$0x73625140] %v2100_v25 }
 0x741   :  { %v2109_v29 = vcombine.high %v2107_v49, %v2107_v49  ;;  %v2123_v5 = vrot.slane %v2107_v49, %v3254_v8  ;;  %v2130_v27 = vrot.slane %v2108_v46, %v3254_v8  ;;  %v2138_v7 = vcombine.high %v2116_v62, %v2116_v62  ;;  %2482 = vst.sshfl [vmem:[#allocation13 + $0xe] sm:$0x1 pattern:$0x73625140] %v2108_v46 }
 0x742   :  { %2483 = vst.sshfl [vmem:[#allocation13 + $0x26] sm:$0x1 pattern:$0x73625140] %v2107_v49 }
 0x743   :  { %v2137_v4 = vrot.slane %v2109_v29, %v3254_v8  ;;  %v2139_v21 = vcombine.high %v2123_v5, %v2123_v5  ;;  %v2140_v22 = vcombine.high %v2130_v27, %v2130_v27  ;;  %2152 = vst [vmem:[#allocation13 + $0x16] sm:$0x1] %v2138_v7  ;;  %2484 = vst.sshfl [vmem:[#allocation13 + $0x2e] sm:$0x1 pattern:$0x73625140] %v2109_v29 }
 0x745   :  { %v2141_v23 = vcombine.high %v2137_v4, %v2137_v4  ;;  %2153 = vst [vmem:[#allocation13 + $0x1e] sm:$0x1] %v2140_v22  ;;  %2156 = vst [vmem:[#allocation13 + $0x36] sm:$0x1] %v2139_v21 }
 0x747   :  { %2157 = vst [vmem:[#allocation13 + $0x3e] sm:$0x1] %v2141_v23 }
 0x7fd   :  { %v2229_v24 = vpop.f32.mrf.mxu0  ;;  %v2300_v40 = vpop.f32.mrf.mxu1 }
 0x7fe   :  { %v2305_v31 = vadd.f32 %v2229_v24, %v4178_v30  ;;  %v2307_v51 = vadd.f32 %v2300_v40, %v4181_v50 }
 0x7ff   :  { %v2231_v32 = vpop.f32.mrf.mxu0  ;;  %v2302_v43 = vpop.f32.mrf.mxu1 }
 0x800   :  { %v2485_v37 = vmul.f32 -1.442695, %v2305_v31  ;;  %v2306_v39 = vadd.f32 %v2231_v32, %v4179_v38  ;;  %v2308_v47 = vadd.f32 %v2302_v43, %v4180_v45 }
 0x802   :  { %2615 = vpow2.f32 %v2485_v37  ;;  %v2486_v42 = vmul.f32 -1.442695, %v2306_v39  ;;  %v2487_v52 = vmul.f32 -1.442695, %v2308_v47 }
 0x804   :  { %2617 = vpow2.f32 %v2486_v42 }
 0x805   :  { %2619 = vtanh.f32 %v2307_v51 }
 0x806   :  { %2621 = vpow2.f32 %v2487_v52 }
 0x80f   :  { %v2616_v54 = vpop.eup %2615 }
 0x810   :  { %v2312_v55 = vadd.f32 1.0, %v2616_v54 }
 0x811   :  { %v2618_v56 = vpop.eup %2617 }
 0x812   :  { %2623 = vrcp.f32 %v2312_v55  ;;  %v2318_v57 = vadd.f32 1.0, %v2618_v56  ;;  %v2620_v58 = vpop.eup %2619 }
 0x813   :  { %v2622_v59 = vpop.eup %2621 }
 0x814   :  { %2625 = vrcp.f32 %v2318_v57  ;;  %v2325_v1 = vadd.f32 1.0, %v2622_v59 }
 0x816   :  { %2627 = vrcp.f32 %v2325_v1 }
 0x81f   :  { %v2624_v60 = vpop.eup %2623 }
 0x820   :  { %v2329_v61 = vmul.f32 %v2624_v60, %v2620_v58 }
 0x821   :  { %v2626_v63 = vpop.eup %2625 }
 0x822   :  { %v2328_v2 = vmul.f32 %v2626_v63, %v2089_v34 }
 0x823   :  { %v2628_v16 = vpop.eup %2627 }
 0x824   :  { %v2330_v12 = vadd.f32 %v2329_v61, %v2328_v2 }
 0x826   :  { %2629 = vtanh.f32 %v2330_v12 }
 0x833   :  { %v2630_v6 = vpop.eup %2629 }
 0x834   :  { %v2332_v13 = vmul.f32 %v2630_v6, %v2628_v16 }
 0x836   :  { %v2334_v17 = vcombine.high %v2332_v13, %v2332_v13  ;;  %v2341_v3 = vrot.slane %v2332_v13, %v3254_v8 }
 0x838   :  { %v2348_v15 = vrot.slane %v2334_v17, %v3254_v8  ;;  %v2349_v11 = vcombine.high %v2341_v3, %v2341_v3  ;;  %v2357_v19 = vrot.slane %v2341_v3, %v3254_v8  ;;  %2488 = vst.sshfl [vmem:[#allocation13 + $0x7] sm:$0x1 pattern:$0x73625140] %v2341_v3 }
 0x83a   :  { %v2350_v10 = vcombine.high %v2348_v15, %v2348_v15  ;;  %v2364_v9 = vrot.slane %v2348_v15, %v3254_v8  ;;  %v2371_v26 = vrot.slane %v2349_v11, %v3254_v8  ;;  %v2379_v53 = vcombine.high %v2357_v19, %v2357_v19  ;;  %2489 = vst.sshfl [vmem:[#allocation13 + $0xf] sm:$0x1 pattern:$0x73625140] %v2349_v11 }
 0x83b   :  { %2490 = vst.sshfl [vmem:[#allocation13 + $0x27] sm:$0x1 pattern:$0x73625140] %v2348_v15 }
 0x83c   :  { %v2378_v20 = vrot.slane %v2350_v10, %v3254_v8  ;;  %v2380_v18 = vcombine.high %v2364_v9, %v2364_v9  ;;  %v2381_v33 = vcombine.high %v2371_v26, %v2371_v26  ;;  %2393 = vst [vmem:[#allocation13 + $0x17] sm:$0x1] %v2379_v53  ;;  %2491 = vst.sshfl [vmem:[#allocation13 + $0x2f] sm:$0x1 pattern:$0x73625140] %v2350_v10 }
 0x83e   :  { %v2382_v44 = vcombine.high %v2378_v20, %v2378_v20  ;;  %2394 = vst [vmem:[#allocation13 + $0x1f] sm:$0x1] %v2381_v33  ;;  %2397 = vst [vmem:[#allocation13 + $0x37] sm:$0x1] %v2380_v18 }
 0x840   :  { %2398 = vst [vmem:[#allocation13 + $0x3f] sm:$0x1] %v2382_v44 }
 0x841   :  { %2786 = shalt.err (!%p2783_p10)
}
 0x842   :  { %2412 = dma.vmem_to_hbm [thread:$0]  %s2407_s3, 1024, %s3885_s4, [#allocation7], %s2807_s25, %s2807_s25, %s2808_s26  }
 0x843   :  { %2801 = dma.done.wait [#allocation7], 1024  }
 0x844   :  { %2802 = vsyncadd [#allocation7], 4294966272 }
 0x845   :  { %2416 = vsyncpa [#allocation6], 1 }
 0x846   :  { %2417 = vsyncpa [#allocation9], 1 }
 0x847   :  { %2418 = vsyncpa [#allocation12], 1 }
 0x848   :  { %2419 = vsyncpa [#allocation7], 1 }

</bundles_post_ra>
